<compile_context>
chip_gen: v7x
topology: tpu7x:2x2x1
jax: 0.10.0
libtpu: 0.0.40
codegen_flags: <defaults>
</compile_context>

<pallas_src>
import functools
import numpy as np

import jax
import jax.numpy as jnp
from jax.experimental import pallas as pl
from jax.experimental.pallas import tpu as pltpu


def _round_up(x, m):
    return ((x + m - 1) // m) * m


# ---------------------------------------------------------------------------
# Kernel 1: fused 3x3 conv + folded-BN bias + ReLU (no im2col in HBM)
# ---------------------------------------------------------------------------
def _conv3x3_kernel(x0_ref, x1_ref, x2_ref, w_ref, b_ref, o_ref, acc_ref,
                    *, H, W, relu):
    """One batch element x one Cout tile per grid step.

    x{0,1,2}_ref : ((H+2)*W, Cin) bf16 -- width-shifted, height-haloed input,
                   flattened over (padded rows, W); tap (dh, dw) is the aligned
                   sublane slice [dh*W, dh*W + H*W) of x{dw}_ref.
    w_ref        : (9, Cin, tn) bf16 (BN scale already folded in)
    b_ref        : (1, tn) f32
    o_ref        : (H*W, tn) bf16
    acc_ref      : (H*W, tn) f32 VMEM scratch accumulator
    """
    xw_refs = (x0_ref, x1_ref, x2_ref)
    first = True
    for dh in range(3):
        for dw in range(3):
            xs = xw_refs[dw][pl.ds(dh * W, H * W), :]          # (H*W, Cin)
            wt = w_ref[dh * 3 + dw]                            # (Cin, tn)
            contrib = jnp.dot(xs, wt, preferred_element_type=jnp.float32)
            if first:
                acc_ref[...] = contrib
                first = False
            else:
                acc_ref[...] += contrib
    y = acc_ref[...] + b_ref[...]
    if relu:
        y = jnp.maximum(y, 0.0)
    o_ref[...] = y.astype(o_ref.dtype)


def conv3x3_bn_relu(x, w, b, relu=True):
    """x: (N,H,W,Cin) bf16; w: (9,Cin,Cout) bf16 (BN folded); b: (Cout,) f32."""
    N, H, W, Cin = x.shape
    _, wcin, Cout = w.shape
    assert wcin == Cin
    if Cin < 8:  # keep the MXU contraction dim sane for the first (tiny-Cin) conv
        pad = 8 - Cin
        x = jnp.pad(x, ((0, 0), (0, 0), (0, 0), (0, pad)))
        w = jnp.pad(w, ((0, 0), (0, pad), (0, 0)))
        Cin = 8

    Hp = H + 2
    xp = jnp.pad(x, ((0, 0), (1, 1), (1, 1), (0, 0)))          # (N, Hp, W+2, Cin)
    # Three width-shifted copies flattened over (padded rows, W): 3x activation
    # traffic instead of the 9x of full im2col; the height shift is done
    # in-kernel as an aligned slice (W is a multiple of 8 at every level).
    xws = tuple(xp[:, :, dw:dw + W, :].reshape(N, Hp * W, Cin) for dw in range(3))

    tn = Cout if Cout <= 128 else 128                          # lane-dense Cout tiles
    jn = Cout // tn
    kernel = functools.partial(_conv3x3_kernel, H=H, W=W, relu=relu)

    out = pl.pallas_call(
        kernel,
        out_shape=jax.ShapeDtypeStruct((N, H * W, Cout), jnp.bfloat16),
        grid=(N, jn),
        in_specs=[
            pl.BlockSpec((None, Hp * W, Cin), lambda n, j: (n, 0, 0)),
            pl.BlockSpec((None, Hp * W, Cin), lambda n, j: (n, 0, 0)),
            pl.BlockSpec((None, Hp * W, Cin), lambda n, j: (n, 0, 0)),
            pl.BlockSpec((9, Cin, tn), lambda n, j: (0, 0, j)),
            pl.BlockSpec((1, tn), lambda n, j: (0, j)),
        ],
        out_specs=pl.BlockSpec((None, H * W, tn), lambda n, j: (n, 0, j)),
        scratch_shapes=[pltpu.VMEM((H * W, tn), jnp.float32)],
        compiler_params=pltpu.CompilerParams(
            dimension_semantics=("parallel", "parallel"),
            vmem_limit_bytes=32 * 1024 * 1024,
        ),
    )(xws[0], xws[1], xws[2], w, b.reshape(1, Cout))
    return out.reshape(N, H, W, Cout)


# ---------------------------------------------------------------------------
# Kernel 2: tiled fused matmul (+bias, optional activation) -- used for fc1
# ---------------------------------------------------------------------------
def _matmul_kernel(x_ref, w_ref, b_ref, o_ref, acc_ref, *, activation):
    k = pl.program_id(2)

    @pl.when(k == 0)
    def _():
        acc_ref[...] = jnp.zeros_like(acc_ref)

    acc_ref[...] += jnp.dot(x_ref[...], w_ref[...],
                            preferred_element_type=jnp.float32)

    @pl.when(k == pl.num_programs(2) - 1)
    def _():
        y = acc_ref[...] + b_ref[...]
        if activation == "relu":
            y = jnp.maximum(y, 0.0)
        o_ref[...] = y.astype(o_ref.dtype)


def fused_matmul(x, w, b, activation="none", out_dtype=jnp.float32,
                 tm=256, tk=512, tn=128):
    """(M,K)@(K,N) + bias with a tiled, pipelined, f32-accumulating kernel."""
    M, K = x.shape
    K2, N = w.shape
    assert K == K2
    tm = min(tm, _round_up(M, 8))
    tk = min(tk, _round_up(K, 128))
    tn = min(tn, _round_up(N, 128))
    Mp, Kp, Np = _round_up(M, tm), _round_up(K, tk), _round_up(N, tn)

    xp = jnp.pad(x.astype(jnp.bfloat16), ((0, Mp - M), (0, Kp - K)))
    wp = jnp.pad(w.astype(jnp.bfloat16), ((0, Kp - K), (0, Np - N)))
    bp = jnp.pad(jnp.asarray(b, jnp.float32).reshape(1, N), ((0, 0), (0, Np - N)))

    out = pl.pallas_call(
        functools.partial(_matmul_kernel, activation=activation),
        out_shape=jax.ShapeDtypeStruct((Mp, Np), out_dtype),
        grid=(Mp // tm, Np // tn, Kp // tk),
        in_specs=[
            pl.BlockSpec((tm, tk), lambda i, j, k: (i, k)),
            pl.BlockSpec((tk, tn), lambda i, j, k: (k, j)),
            pl.BlockSpec((1, tn), lambda i, j, k: (0, j)),
        ],
        out_specs=pl.BlockSpec((tm, tn), lambda i, j, k: (i, j)),
        scratch_shapes=[pltpu.VMEM((tm, tn), jnp.float32)],
        compiler_params=pltpu.CompilerParams(
            dimension_semantics=("parallel", "parallel", "arbitrary"),
            vmem_limit_bytes=32 * 1024 * 1024,
        ),
    )(xp, wp, bp)
    return out[:M, :N]


# ---------------------------------------------------------------------------
# Plain-JAX data-movement glue
# ---------------------------------------------------------------------------
def maxpool2x2(x):
    N, H, W, C = x.shape
    return x.reshape(N, H // 2, 2, W // 2, 2, C).max(axis=(2, 4))


def acs_split(c):
    base, r = divmod(c, 3)
    return (base + (1 if r >= 1 else 0), base + (1 if r >= 2 else 0), base)


def get_data_for_classification(x5_nhwc, shape1, shape2, shape3):
    """Mirror of _get_data_for_classification (all splits are static ints)."""
    B = x5_nhwc.shape[0]
    x5 = jnp.transpose(x5_nhwc, (0, 3, 1, 2))  # NCHW: matches torch slicing/flatten
    each_view = [B // 3, B // 3, B // 3]
    # TODO(synk): PyTorch distributes the remainder with random.choice; deterministic here.
    for i in range(B - sum(each_view)):
        each_view[i] += 1
    x_a = x5[:, :shape1]
    x_c = x5[:, shape1:shape1 + shape2]
    x_s = x5[:, shape1 + shape2:]
    allowed = min(x_a.shape[1], x_c.shape[1], x_s.shape[1])
    res = [x_a[:each_view[0]],
           x_c[each_view[0]:each_view[0] + each_view[1]],
           x_s[each_view[0] + each_view[1]:]]
    # torch.narrow(i, 1, 1, C-1): drop the first channel of over-wide branches.
    res = [v if v.shape[1] == allowed else v[:, 1:v.shape[1]] for v in res]
    targets = jnp.array([0] * each_view[0] + [1] * each_view[1] + [2] * each_view[2],
                        jnp.int32)
    return jnp.concatenate(res, axis=0), targets


# ---------------------------------------------------------------------------
# Parameters (BatchNorm folded, bf16 weights)
# ---------------------------------------------------------------------------
def init_conv_bn(key, cin, cout):
    kw, kg, kb = jax.random.split(key, 3)
    w = jax.random.normal(kw, (3, 3, cin, cout), jnp.float32) / np.sqrt(9 * cin)
    gamma = 1.0 + 0.1 * jax.random.normal(kg, (cout,), jnp.float32)
    beta = 0.1 * jax.random.normal(kb, (cout,), jnp.float32)
    running_mean = jnp.zeros((cout,), jnp.float32)
    running_var = jnp.ones((cout,), jnp.float32)
    scale = gamma / jnp.sqrt(running_var + 1e-5)
    w_folded = (w * scale[None, None, None, :]).reshape(9, cin, cout).astype(jnp.bfloat16)
    b_folded = (beta - running_mean * scale).astype(jnp.float32)
    return dict(w=w_folded, b=b_folded)


def init_double_conv(key, cin, cout):
    k1, k2 = jax.random.split(key)
    return dict(c1=init_conv_bn(k1, cin, cout), c2=init_conv_bn(k2, cout, cout))


def build_params(key, n_channels, bilinear=True, input_hw=(64, 128)):
    factor = 2 if bilinear else 1
    c5 = 1024 // factor
    s_a, s_c, s_s = acs_split(c5)                        # (171, 171, 170)
    h5, w5 = input_hw[0] // 16, input_hw[1] // 16
    fc_in = min(s_a, s_c, s_s) * h5 * w5                 # 170*4*8 = 5440 = 170*4*4*2
    keys = jax.random.split(key, 7)
    kfc_w, kfc_b = jax.random.split(keys[6])
    return dict(
        inc=init_double_conv(keys[0], n_channels, 64),
        down1=init_double_conv(keys[1], 64, 128),
        down2=init_double_conv(keys[2], 128, 256),
        down3=init_double_conv(keys[3], 256, 512),
        down4=init_double_conv(keys[4], 512, c5),
        fc1=dict(w=jax.random.normal(kfc_w, (fc_in, 3), jnp.float32) / np.sqrt(fc_in),
                 b=0.01 * jax.random.normal(kfc_b, (3,), jnp.float32)),
    )


# ---------------------------------------------------------------------------
# Forward pass
# ---------------------------------------------------------------------------
def double_conv(p, x):
    x = conv3x3_bn_relu(x, p["c1"]["w"], p["c1"]["b"])
    x = conv3x3_bn_relu(x, p["c2"]["w"], p["c2"]["b"])
    return x


def unet_acs_classifier_forward(params, x_nchw):
    x = jnp.transpose(x_nchw, (0, 2, 3, 1)).astype(jnp.bfloat16)  # NCHW -> NHWC

    x1 = double_conv(params["inc"], x)                             # 64
    x2 = double_conv(params["down1"], maxpool2x2(x1))              # 128
    x3 = double_conv(params["down2"], maxpool2x2(x2))              # 256
    x4 = double_conv(params["down3"], maxpool2x2(x3))              # 512
    x5 = double_conv(params["down4"], maxpool2x2(x4))              # 1024//2 = 512

    s_a, s_c, s_s = acs_split(x5.shape[-1])                        # DownACS return_splits
    x_cls, targets = get_data_for_classification(x5, s_a, s_c, s_s)
    feats = x_cls.reshape(x_cls.shape[0], -1)                      # torch .view(B, -1)
    logits = fused_matmul(feats, params["fc1"]["w"], params["fc1"]["b"],
                          activation="none", out_dtype=jnp.float32)
    return logits, targets


# ---------------------------------------------------------------------------
# Reference (for a small numerical self-check of the conv kernel)
# ---------------------------------------------------------------------------
def _conv_reference(x, w9, b, relu=True):
    cin = x.shape[-1]
    w = jnp.asarray(w9, jnp.float32).reshape(3, 3, cin, -1)
    y = jax.lax.conv_general_dilated(
        jnp.asarray(x, jnp.float32), w, window_strides=(1, 1),
        padding=((1, 1), (1, 1)),
        dimension_numbers=("NHWC", "HWIO", "NHWC"))
    y = y + jnp.asarray(b, jnp.float32)[None, None, None, :]
    return jnp.maximum(y, 0.0) if relu else y


# ---------------------------------------------------------------------------
if __name__ == "__main__":
    # --- tiny self-checks of both kernels -----------------------------------
    kt = jax.random.PRNGKey(7)
    k1, k2, k3 = jax.random.split(kt, 3)
    xt = jax.random.normal(k1, (2, 16, 24, 16), jnp.float32).astype(jnp.bfloat16)
    wt = (jax.random.normal(k2, (9, 16, 32), jnp.float32) / np.sqrt(9 * 16)).astype(jnp.bfloat16)
    bt = 0.1 * jax.random.normal(k3, (32,), jnp.float32)
    got = jnp.asarray(conv3x3_bn_relu(xt, wt, bt), jnp.float32)
    want = _conv_reference(xt, wt, bt)
    assert float(jnp.max(jnp.abs(got - want))) < 0.1, float(jnp.max(jnp.abs(got - want)))

    xm = jax.random.normal(k1, (64, 200), jnp.float32)
    wm = jax.random.normal(k2, (200, 48), jnp.float32) / np.sqrt(200)
    bm = 0.1 * jax.random.normal(k3, (48,), jnp.float32)
    gm = fused_matmul(xm, wm, bm, activation="relu")
    rm = jnp.maximum(jnp.dot(xm.astype(jnp.bfloat16).astype(jnp.float32),
                             wm.astype(jnp.bfloat16).astype(jnp.float32)) + bm, 0.0)
    assert float(jnp.max(jnp.abs(gm - rm))) < 0.1, float(jnp.max(jnp.abs(gm - rm)))

    # --- full forward --------------------------------------------------------
    key = jax.random.PRNGKey(0)
    kp, kx = jax.random.split(key)
    n_channels = 1
    batch, H, W = 3, 64, 128   # batch % 3 == 0 (deterministic view split);
                               # (H//16)*(W//16) = 32 -> fc1 in = 170*32 = 5440
                               # == Linear(170*4*4*2, 3) of the PyTorch module.

    params = build_params(kp, n_channels, bilinear=True, input_hw=(H, W))
    x = jax.random.normal(kx, (batch, n_channels, H, W), jnp.float32)

    fwd = jax.jit(unet_acs_classifier_forward)
    logits, targets = fwd(params, x)
    logits = jax.block_until_ready(logits)

    assert logits.shape == (batch, 3), logits.shape
    assert targets.shape == (batch,), targets.shape
    assert bool(jnp.all(jnp.isfinite(logits)))
    print("KERNEL_OK")
</pallas_src>

<mosaic_0001>
module attributes {stable_mosaic.version = 11 : i64} {
  func.func @_conv3x3_kernel(%arg0: i32, %arg1: i32, %arg2: memref<1x432x16xbf16, #tpu.memory_space<vmem>>, %arg3: memref<1x432x16xbf16, #tpu.memory_space<vmem>>, %arg4: memref<1x432x16xbf16, #tpu.memory_space<vmem>>, %arg5: memref<9x16x32xbf16, #tpu.memory_space<vmem>>, %arg6: memref<1x32xf32, #tpu.memory_space<vmem>>, %arg7: memref<1x384x32xbf16, #tpu.memory_space<vmem>>, %arg8: memref<384x32xf32, #tpu.memory_space<vmem>>) attributes {dimension_semantics = [#tpu.dimension_semantics<parallel>, #tpu.dimension_semantics<parallel>], iteration_bounds = array<i64: 2, 1>, scalar_prefetch = 0 : i64, scratch_operands = 1 : i64, tpu.core_type = #tpu.core_type<tc>, window_params = [{transform_indices = @transform_0, window_bounds = array<i64: 1, 432, 16>}, {transform_indices = @transform_1, window_bounds = array<i64: 1, 432, 16>}, {transform_indices = @transform_2, window_bounds = array<i64: 1, 432, 16>}, {transform_indices = @transform_3, window_bounds = array<i64: 9, 16, 32>}, {transform_indices = @transform_4, window_bounds = array<i64: 1, 32>}, {transform_indices = @transform_5, window_bounds = array<i64: 1, 384, 32>}]} {
    %c0 = arith.constant 0 : index
    %c0_0 = arith.constant 0 : index
    %c0_1 = arith.constant 0 : index
    %0 = vector.load %arg2[%c0, %c0_0, %c0_1] : memref<1x432x16xbf16, #tpu.memory_space<vmem>>, vector<1x384x16xbf16>
    %1 = vector.shape_cast %0 : vector<1x384x16xbf16> to vector<384x16xbf16>
    %c0_2 = arith.constant 0 : index
    %c0_3 = arith.constant 0 : index
    %c0_4 = arith.constant 0 : index
    %2 = vector.load %arg5[%c0_2, %c0_3, %c0_4] : memref<9x16x32xbf16, #tpu.memory_space<vmem>>, vector<1x16x32xbf16>
    %3 = vector.shape_cast %2 : vector<1x16x32xbf16> to vector<16x32xbf16>
    %cst = arith.constant dense<0.000000e+00> : vector<384x32xf32>
    %4 = tpu.matmul %1, %3, %cst {dimension_numbers = #tpu.dot_dimension_numbers<[1], [0], [0], [1], [0, 0, 1, 1], [], []>} : vector<384x16xbf16>, vector<16x32xbf16>, vector<384x32xf32> -> vector<384x32xf32>
    %c0_5 = arith.constant 0 : index
    %c0_6 = arith.constant 0 : index
    %5 = vector.load %arg8[%c0_5, %c0_6] : memref<384x32xf32, #tpu.memory_space<vmem>>, vector<384x32xf32>
    tpu.vector_store %arg8[%c0_5, %c0_6], %4 {strides = array<i32>} : memref<384x32xf32, #tpu.memory_space<vmem>>, vector<384x32xf32>,
    %c0_7 = arith.constant 0 : index
    %c0_8 = arith.constant 0 : index
    %c0_9 = arith.constant 0 : index
    %6 = vector.load %arg3[%c0_7, %c0_8, %c0_9] : memref<1x432x16xbf16, #tpu.memory_space<vmem>>, vector<1x384x16xbf16>
    %7 = vector.shape_cast %6 : vector<1x384x16xbf16> to vector<384x16xbf16>
    %c1 = arith.constant 1 : index
    %c0_10 = arith.constant 0 : index
    %c0_11 = arith.constant 0 : index
    %8 = vector.load %arg5[%c1, %c0_10, %c0_11] : memref<9x16x32xbf16, #tpu.memory_space<vmem>>, vector<1x16x32xbf16>
    %9 = vector.shape_cast %8 : vector<1x16x32xbf16> to vector<16x32xbf16>
    %cst_12 = arith.constant dense<0.000000e+00> : vector<384x32xf32>
    %10 = tpu.matmul %7, %9, %cst_12 {dimension_numbers = #tpu.dot_dimension_numbers<[1], [0], [0], [1], [0, 0, 1, 1], [], []>} : vector<384x16xbf16>, vector<16x32xbf16>, vector<384x32xf32> -> vector<384x32xf32>
    %c0_13 = arith.constant 0 : index
    %c0_14 = arith.constant 0 : index
    %11 = vector.load %arg8[%c0_13, %c0_14] : memref<384x32xf32, #tpu.memory_space<vmem>>, vector<384x32xf32>
    %12 = arith.addf %11, %10 : vector<384x32xf32>
    %c0_15 = arith.constant 0 : index
    %c0_16 = arith.constant 0 : index
    %13 = vector.load %arg8[%c0_15, %c0_16] : memref<384x32xf32, #tpu.memory_space<vmem>>, vector<384x32xf32>
    tpu.vector_store %arg8[%c0_15, %c0_16], %12 {strides = array<i32>} : memref<384x32xf32, #tpu.memory_space<vmem>>, vector<384x32xf32>,
    %c0_17 = arith.constant 0 : index
    %c0_18 = arith.constant 0 : index
    %c0_19 = arith.constant 0 : index
    %14 = vector.load %arg4[%c0_17, %c0_18, %c0_19] : memref<1x432x16xbf16, #tpu.memory_space<vmem>>, vector<1x384x16xbf16>
    %15 = vector.shape_cast %14 : vector<1x384x16xbf16> to vector<384x16xbf16>
    %c2 = arith.constant 2 : index
    %c0_20 = arith.constant 0 : index
    %c0_21 = arith.constant 0 : index
    %16 = vector.load %arg5[%c2, %c0_20, %c0_21] : memref<9x16x32xbf16, #tpu.memory_space<vmem>>, vector<1x16x32xbf16>
    %17 = vector.shape_cast %16 : vector<1x16x32xbf16> to vector<16x32xbf16>
    %cst_22 = arith.constant dense<0.000000e+00> : vector<384x32xf32>
    %18 = tpu.matmul %15, %17, %cst_22 {dimension_numbers = #tpu.dot_dimension_numbers<[1], [0], [0], [1], [0, 0, 1, 1], [], []>} : vector<384x16xbf16>, vector<16x32xbf16>, vector<384x32xf32> -> vector<384x32xf32>
    %c0_23 = arith.constant 0 : index
    %c0_24 = arith.constant 0 : index
    %19 = vector.load %arg8[%c0_23, %c0_24] : memref<384x32xf32, #tpu.memory_space<vmem>>, vector<384x32xf32>
    %20 = arith.addf %19, %18 : vector<384x32xf32>
    %c0_25 = arith.constant 0 : index
    %c0_26 = arith.constant 0 : index
    %21 = vector.load %arg8[%c0_25, %c0_26] : memref<384x32xf32, #tpu.memory_space<vmem>>, vector<384x32xf32>
    tpu.vector_store %arg8[%c0_25, %c0_26], %20 {strides = array<i32>} : memref<384x32xf32, #tpu.memory_space<vmem>>, vector<384x32xf32>,
    %c0_27 = arith.constant 0 : index
    %c24 = arith.constant 24 : index
    %c0_28 = arith.constant 0 : index
    %22 = vector.load %arg2[%c0_27, %c24, %c0_28] : memref<1x432x16xbf16, #tpu.memory_space<vmem>>, vector<1x384x16xbf16>
    %23 = vector.shape_cast %22 : vector<1x384x16xbf16> to vector<384x16xbf16>
    %c3 = arith.constant 3 : index
    %c0_29 = arith.constant 0 : index
    %c0_30 = arith.constant 0 : index
    %24 = vector.load %arg5[%c3, %c0_29, %c0_30] : memref<9x16x32xbf16, #tpu.memory_space<vmem>>, vector<1x16x32xbf16>
    %25 = vector.shape_cast %24 : vector<1x16x32xbf16> to vector<16x32xbf16>
    %cst_31 = arith.constant dense<0.000000e+00> : vector<384x32xf32>
    %26 = tpu.matmul %23, %25, %cst_31 {dimension_numbers = #tpu.dot_dimension_numbers<[1], [0], [0], [1], [0, 0, 1, 1], [], []>} : vector<384x16xbf16>, vector<16x32xbf16>, vector<384x32xf32> -> vector<384x32xf32>
    %c0_32 = arith.constant 0 : index
    %c0_33 = arith.constant 0 : index
    %27 = vector.load %arg8[%c0_32, %c0_33] : memref<384x32xf32, #tpu.memory_space<vmem>>, vector<384x32xf32>
    %28 = arith.addf %27, %26 : vector<384x32xf32>
    %c0_34 = arith.constant 0 : index
    %c0_35 = arith.constant 0 : index
    %29 = vector.load %arg8[%c0_34, %c0_35] : memref<384x32xf32, #tpu.memory_space<vmem>>, vector<384x32xf32>
    tpu.vector_store %arg8[%c0_34, %c0_35], %28 {strides = array<i32>} : memref<384x32xf32, #tpu.memory_space<vmem>>, vector<384x32xf32>,
    %c0_36 = arith.constant 0 : index
    %c24_37 = arith.constant 24 : index
    %c0_38 = arith.constant 0 : index
    %30 = vector.load %arg3[%c0_36, %c24_37, %c0_38] : memref<1x432x16xbf16, #tpu.memory_space<vmem>>, vector<1x384x16xbf16>
    %31 = vector.shape_cast %30 : vector<1x384x16xbf16> to vector<384x16xbf16>
    %c4 = arith.constant 4 : index
    %c0_39 = arith.constant 0 : index
    %c0_40 = arith.constant 0 : index
    %32 = vector.load %arg5[%c4, %c0_39, %c0_40] : memref<9x16x32xbf16, #tpu.memory_space<vmem>>, vector<1x16x32xbf16>
    %33 = vector.shape_cast %32 : vector<1x16x32xbf16> to vector<16x32xbf16>
    %cst_41 = arith.constant dense<0.000000e+00> : vector<384x32xf32>
    %34 = tpu.matmul %31, %33, %cst_41 {dimension_numbers = #tpu.dot_dimension_numbers<[1], [0], [0], [1], [0, 0, 1, 1], [], []>} : vector<384x16xbf16>, vector<16x32xbf16>, vector<384x32xf32> -> vector<384x32xf32>
    %c0_42 = arith.constant 0 : index
    %c0_43 = arith.constant 0 : index
    %35 = vector.load %arg8[%c0_42, %c0_43] : memref<384x32xf32, #tpu.memory_space<vmem>>, vector<384x32xf32>
    %36 = arith.addf %35, %34 : vector<384x32xf32>
    %c0_44 = arith.constant 0 : index
    %c0_45 = arith.constant 0 : index
    %37 = vector.load %arg8[%c0_44, %c0_45] : memref<384x32xf32, #tpu.memory_space<vmem>>, vector<384x32xf32>
    tpu.vector_store %arg8[%c0_44, %c0_45], %36 {strides = array<i32>} : memref<384x32xf32, #tpu.memory_space<vmem>>, vector<384x32xf32>,
    %c0_46 = arith.constant 0 : index
    %c24_47 = arith.constant 24 : index
    %c0_48 = arith.constant 0 : index
    %38 = vector.load %arg4[%c0_46, %c24_47, %c0_48] : memref<1x432x16xbf16, #tpu.memory_space<vmem>>, vector<1x384x16xbf16>
    %39 = vector.shape_cast %38 : vector<1x384x16xbf16> to vector<384x16xbf16>
    %c5 = arith.constant 5 : index
    %c0_49 = arith.constant 0 : index
    %c0_50 = arith.constant 0 : index
    %40 = vector.load %arg5[%c5, %c0_49, %c0_50] : memref<9x16x32xbf16, #tpu.memory_space<vmem>>, vector<1x16x32xbf16>
    %41 = vector.shape_cast %40 : vector<1x16x32xbf16> to vector<16x32xbf16>
    %cst_51 = arith.constant dense<0.000000e+00> : vector<384x32xf32>
    %42 = tpu.matmul %39, %41, %cst_51 {dimension_numbers = #tpu.dot_dimension_numbers<[1], [0], [0], [1], [0, 0, 1, 1], [], []>} : vector<384x16xbf16>, vector<16x32xbf16>, vector<384x32xf32> -> vector<384x32xf32>
    %c0_52 = arith.constant 0 : index
    %c0_53 = arith.constant 0 : index
    %43 = vector.load %arg8[%c0_52, %c0_53] : memref<384x32xf32, #tpu.memory_space<vmem>>, vector<384x32xf32>
    %44 = arith.addf %43, %42 : vector<384x32xf32>
    %c0_54 = arith.constant 0 : index
    %c0_55 = arith.constant 0 : index
    %45 = vector.load %arg8[%c0_54, %c0_55] : memref<384x32xf32, #tpu.memory_space<vmem>>, vector<384x32xf32>
    tpu.vector_store %arg8[%c0_54, %c0_55], %44 {strides = array<i32>} : memref<384x32xf32, #tpu.memory_space<vmem>>, vector<384x32xf32>,
    %c0_56 = arith.constant 0 : index
    %c48 = arith.constant 48 : index
    %c0_57 = arith.constant 0 : index
    %46 = vector.load %arg2[%c0_56, %c48, %c0_57] : memref<1x432x16xbf16, #tpu.memory_space<vmem>>, vector<1x384x16xbf16>
    %47 = vector.shape_cast %46 : vector<1x384x16xbf16> to vector<384x16xbf16>
    %c6 = arith.constant 6 : index
    %c0_58 = arith.constant 0 : index
    %c0_59 = arith.constant 0 : index
    %48 = vector.load %arg5[%c6, %c0_58, %c0_59] : memref<9x16x32xbf16, #tpu.memory_space<vmem>>, vector<1x16x32xbf16>
    %49 = vector.shape_cast %48 : vector<1x16x32xbf16> to vector<16x32xbf16>
    %cst_60 = arith.constant dense<0.000000e+00> : vector<384x32xf32>
    %50 = tpu.matmul %47, %49, %cst_60 {dimension_numbers = #tpu.dot_dimension_numbers<[1], [0], [0], [1], [0, 0, 1, 1], [], []>} : vector<384x16xbf16>, vector<16x32xbf16>, vector<384x32xf32> -> vector<384x32xf32>
    %c0_61 = arith.constant 0 : index
    %c0_62 = arith.constant 0 : index
    %51 = vector.load %arg8[%c0_61, %c0_62] : memref<384x32xf32, #tpu.memory_space<vmem>>, vector<384x32xf32>
    %52 = arith.addf %51, %50 : vector<384x32xf32>
    %c0_63 = arith.constant 0 : index
    %c0_64 = arith.constant 0 : index
    %53 = vector.load %arg8[%c0_63, %c0_64] : memref<384x32xf32, #tpu.memory_space<vmem>>, vector<384x32xf32>
    tpu.vector_store %arg8[%c0_63, %c0_64], %52 {strides = array<i32>} : memref<384x32xf32, #tpu.memory_space<vmem>>, vector<384x32xf32>,
    %c0_65 = arith.constant 0 : index
    %c48_66 = arith.constant 48 : index
    %c0_67 = arith.constant 0 : index
    %54 = vector.load %arg3[%c0_65, %c48_66, %c0_67] : memref<1x432x16xbf16, #tpu.memory_space<vmem>>, vector<1x384x16xbf16>
    %55 = vector.shape_cast %54 : vector<1x384x16xbf16> to vector<384x16xbf16>
    %c7 = arith.constant 7 : index
    %c0_68 = arith.constant 0 : index
    %c0_69 = arith.constant 0 : index
    %56 = vector.load %arg5[%c7, %c0_68, %c0_69] : memref<9x16x32xbf16, #tpu.memory_space<vmem>>, vector<1x16x32xbf16>
    %57 = vector.shape_cast %56 : vector<1x16x32xbf16> to vector<16x32xbf16>
    %cst_70 = arith.constant dense<0.000000e+00> : vector<384x32xf32>
    %58 = tpu.matmul %55, %57, %cst_70 {dimension_numbers = #tpu.dot_dimension_numbers<[1], [0], [0], [1], [0, 0, 1, 1], [], []>} : vector<384x16xbf16>, vector<16x32xbf16>, vector<384x32xf32> -> vector<384x32xf32>
    %c0_71 = arith.constant 0 : index
    %c0_72 = arith.constant 0 : index
    %59 = vector.load %arg8[%c0_71, %c0_72] : memref<384x32xf32, #tpu.memory_space<vmem>>, vector<384x32xf32>
    %60 = arith.addf %59, %58 : vector<384x32xf32>
    %c0_73 = arith.constant 0 : index
    %c0_74 = arith.constant 0 : index
    %61 = vector.load %arg8[%c0_73, %c0_74] : memref<384x32xf32, #tpu.memory_space<vmem>>, vector<384x32xf32>
    tpu.vector_store %arg8[%c0_73, %c0_74], %60 {strides = array<i32>} : memref<384x32xf32, #tpu.memory_space<vmem>>, vector<384x32xf32>,
    %c0_75 = arith.constant 0 : index
    %c48_76 = arith.constant 48 : index
    %c0_77 = arith.constant 0 : index
    %62 = vector.load %arg4[%c0_75, %c48_76, %c0_77] : memref<1x432x16xbf16, #tpu.memory_space<vmem>>, vector<1x384x16xbf16>
    %63 = vector.shape_cast %62 : vector<1x384x16xbf16> to vector<384x16xbf16>
    %c8 = arith.constant 8 : index
    %c0_78 = arith.constant 0 : index
    %c0_79 = arith.constant 0 : index
    %64 = vector.load %arg5[%c8, %c0_78, %c0_79] : memref<9x16x32xbf16, #tpu.memory_space<vmem>>, vector<1x16x32xbf16>
    %65 = vector.shape_cast %64 : vector<1x16x32xbf16> to vector<16x32xbf16>
    %cst_80 = arith.constant dense<0.000000e+00> : vector<384x32xf32>
    %66 = tpu.matmul %63, %65, %cst_80 {dimension_numbers = #tpu.dot_dimension_numbers<[1], [0], [0], [1], [0, 0, 1, 1], [], []>} : vector<384x16xbf16>, vector<16x32xbf16>, vector<384x32xf32> -> vector<384x32xf32>
    %c0_81 = arith.constant 0 : index
    %c0_82 = arith.constant 0 : index
    %67 = vector.load %arg8[%c0_81, %c0_82] : memref<384x32xf32, #tpu.memory_space<vmem>>, vector<384x32xf32>
    %68 = arith.addf %67, %66 : vector<384x32xf32>
    %c0_83 = arith.constant 0 : index
    %c0_84 = arith.constant 0 : index
    %69 = vector.load %arg8[%c0_83, %c0_84] : memref<384x32xf32, #tpu.memory_space<vmem>>, vector<384x32xf32>
    tpu.vector_store %arg8[%c0_83, %c0_84], %68 {strides = array<i32>} : memref<384x32xf32, #tpu.memory_space<vmem>>, vector<384x32xf32>,
    %c0_85 = arith.constant 0 : index
    %c0_86 = arith.constant 0 : index
    %70 = vector.load %arg8[%c0_85, %c0_86] : memref<384x32xf32, #tpu.memory_space<vmem>>, vector<384x32xf32>
    %c0_87 = arith.constant 0 : index
    %c0_88 = arith.constant 0 : index
    %71 = vector.load %arg6[%c0_87, %c0_88] : memref<1x32xf32, #tpu.memory_space<vmem>>, vector<1x32xf32>
    %72 = vector.broadcast %71 : vector<1x32xf32> to vector<384x32xf32>
    %73 = arith.addf %70, %72 : vector<384x32xf32>
    %cst_89 = arith.constant 0.000000e+00 : f32
    %74 = vector.broadcast %cst_89 : f32 to vector<384x32xf32>
    %75 = arith.maximumf %73, %74 : vector<384x32xf32>
    %76 = arith.truncf %75 : vector<384x32xf32> to vector<384x32xbf16>
    %c0_90 = arith.constant 0 : index
    %c0_91 = arith.constant 0 : index
    %c0_92 = arith.constant 0 : index
    %77 = vector.load %arg7[%c0_90, %c0_91, %c0_92] : memref<1x384x32xbf16, #tpu.memory_space<vmem>>, vector<1x384x32xbf16>
    %78 = vector.shape_cast %77 : vector<1x384x32xbf16> to vector<384x32xbf16>
    %79 = vector.shape_cast %76 : vector<384x32xbf16> to vector<1x384x32xbf16>
    tpu.vector_store %arg7[%c0_90, %c0_91, %c0_92], %79 {strides = array<i32>} : memref<1x384x32xbf16, #tpu.memory_space<vmem>>, vector<1x384x32xbf16>,
    return
  }
  func.func @transform_0(%arg0: i32, %arg1: i32) -> (i32, i32, i32) {
    %c0_i32 = arith.constant 0 : i32
    %c0_i32_0 = arith.constant 0 : i32
    %c0_i32_1 = arith.constant 0 : i32
    return %arg0, %c0_i32, %c0_i32_0 : i32, i32, i32
  }
  func.func @transform_1(%arg0: i32, %arg1: i32) -> (i32, i32, i32) {
    %c0_i32 = arith.constant 0 : i32
    %c0_i32_0 = arith.constant 0 : i32
    %c0_i32_1 = arith.constant 0 : i32
    return %arg0, %c0_i32, %c0_i32_0 : i32, i32, i32
  }
  func.func @transform_2(%arg0: i32, %arg1: i32) -> (i32, i32, i32) {
    %c0_i32 = arith.constant 0 : i32
    %c0_i32_0 = arith.constant 0 : i32
    %c0_i32_1 = arith.constant 0 : i32
    return %arg0, %c0_i32, %c0_i32_0 : i32, i32, i32
  }
  func.func @transform_3(%arg0: i32, %arg1: i32) -> (i32, i32, i32) {
    %c0_i32 = arith.constant 0 : i32
    %c0_i32_0 = arith.constant 0 : i32
    %c0_i32_1 = arith.constant 0 : i32
    return %c0_i32, %c0_i32_0, %arg1 : i32, i32, i32
  }
  func.func @transform_4(%arg0: i32, %arg1: i32) -> (i32, i32) {
    %c0_i32 = arith.constant 0 : i32
    %c0_i32_0 = arith.constant 0 : i32
    return %c0_i32, %arg1 : i32, i32
  }
  func.func @transform_5(%arg0: i32, %arg1: i32) -> (i32, i32, i32) {
    %c0_i32 = arith.constant 0 : i32
    %c0_i32_0 = arith.constant 0 : i32
    return %arg0, %c0_i32, %arg1 : i32, i32, i32
  }
}

</mosaic_0001>

<bundles_post_ra>
// kernel: tpu_custom_call.1
= control target key start
LH: loop header
LB: loop body
LE: loop exit
PB: predicated region body
PF: predicated region fallthrough
CT: control target
= control target key end

     0   :  { %s7855_s18 = smov 0   ;;  %s7857_s19 = smov 0   ;;  %s8970_s0 = inlined_call_operand.vmem [shape: bf16[2,432,16], index: 0, kind: input, shape index: {}]   ;;  %s8971_s1 = inlined_call_operand.vmem [shape: bf16[2,432,16], index: 1, kind: input, shape index: {}]   ;;  %s8972_s2 = inlined_call_operand.vmem [shape: bf16[2,432,16], index: 2, kind: input, shape index: {}]   ;;  %s8973_s3 = inlined_call_operand.vmem [shape: bf16[9,16,32], index: 3, kind: input, shape index: {}]   ;;  %s8974_s4 = inlined_call_operand.vmem [shape: f32[1,32], index: 4, kind: input, shape index: {}]   ;;  %s8975_s5 = inlined_call_operand.vmem [shape: bf16[2,384,32], index: 5, kind: output, shape index: {}]  }
   0x1   :  { %s7859_s20 = smov 0  }
   0x2 LB: > { %s27_s21 = sadd.s32 1, %s7819_s19  ;;  %p6311_p0 = scmp.ge.s32.totalorder %s7823_s20, 1  ;;  %s7823_s20 = sphi %s7859_s20, %s15_s20   ;;  %s7819_s19 = sphi %s7857_s19, %s8977_s19   ;;  %s7815_s18 = sphi %s7855_s18, %s8976_s18  }
   0x3   : > { %p29_p1 = scmp.ge.s32.totalorder %s27_s21, 2  ;;  %p238_p2 = scmp.lt.s32.totalorder %s7823_s20, 3 }
   0x5   : > { %s8979_s21 = smov (%p29_p1, %s27_s21), 0  ;;  %p239_p3 = pnand %p6311_p0, %p238_p2 }
   0x6   : > { %v7575_v0 = vld [vmem:[%s8973_s3] sm:$0xff] (!%p239_p3)   ;;  %p286_p4 = scmp.lt.s32.totalorder (!%p239_p3), %s7815_s18, 1  ;;  %v7577_v1 = vld [vmem:[%s8973_s3 + $0x8] sm:$0xff] (!%p239_p3)   ;;  %v7583_v2 = vld [vmem:[%s8973_s3 + $0x10] sm:$0xff] (!%p239_p3)   ;;  %vm493_vm0 = vcmask (!%p239_p3), 130048   ;;  %vm791_vm1 = vcmask (!%p239_p3), 261120  }
   0x7   : > { %242 = sbr.rel (%p239_p3) target bundleno = 688 (0x2b0), region = 40  ;;  %7547 = vmatprep.subr.bf16.mxu1 (!%p239_p3), %v7575_v0  ;;  %7097 = vmatprep.subr.bf16.mxu0 (!%p239_p3), %v7575_v0  ;;  %v7896_v3 = vld [vmem:[%s8973_s3 + $0x18] sm:$0xff] (!%p239_p3)   ;;  %v7903_v6 = vld [vmem:[%s8973_s3 + $0x20] sm:$0xff] (!%p239_p3)   ;;  %v8001_v46 = vld [vmem:[%s8973_s3 + $0x28] sm:$0xff] (!%p239_p3)   ;;  %vm6127_vm2 = vcmask (!%p239_p3), 257024  }
   0x8   : > { %7548 = vmatpush3.bf16.msra.mxu1 (!%p239_p3), %v7575_v0  ;;  %7098 = vmatpush3.bf16.msra.mxu0 (!%p239_p3), %v7575_v0  ;;  %v8012_v48 = vld [vmem:[%s8973_s3 + $0x30] sm:$0xff] (!%p239_p3)  }
   0x9   : > { %7147 = vmatprep.subr.bf16.mxu1 (!%p239_p3), %v7577_v1  ;;  %7197 = vmatprep.subr.bf16.mxu0 (!%p239_p3), %v7583_v2 }
   0xe   : > { %s8981_s18 = smov (!%p286_p4, %s7815_s18), 1 }
   0xf   : > { %s7885_s28 = smul.u32 216, %s8981_s18 }
  0x11   : > { %s7891_s6 = scalar_lea.vmem %s8970_s0, %s7885_s28  ;;  %s7938_s13 = scalar_lea.vmem %s8971_s1, %s7885_s28 }
  0x12   : > { %v7576_v4 = vld [vmem:[%s7891_s6 + $0x60] sm:$0xff]   ;;  %v7578_v5 = vld [vmem:[%s7891_s6 + $0x68] sm:$0xff]   ;;  %v7581_v9 = vld [vmem:[%s7891_s6 + $0x70] sm:$0xff]   ;;  %s7946_s16 = scalar_lea.vmem %s8972_s2, %s7885_s28 }
  0x13   : > { %7123 = vmatprep.mubr.msk.bf16.mxu1 %vm493_vm0, %v7576_v4  ;;  %v7579_v7 = vld [vmem:[%s7891_s6] sm:$0xff]   ;;  %v7580_v8 = vld [vmem:[%s7891_s6 + $0x8] sm:$0xff]   ;;  %v7584_v10 = vld [vmem:[%s7891_s6 + $0x10] sm:$0xff]  }
  0x14   : > { %7124 = vmatmul.mubr.msk.bf16.vlgmr.msra.gmra.mrb[0].mxu1 %vm493_vm0, %v7578_v5  ;;  %7099 = vmatprep.mubr.msk.bf16.mxu0 %vm493_vm0, %v7579_v7  ;;  %v7582_v11 = vld [vmem:[%s7891_s6 + $0x78] sm:$0xff]   ;;  %v7586_v12 = vld [vmem:[%s7891_s6 + $0x80] sm:$0xff]   ;;  %v7587_v15 = vld [vmem:[%s7891_s6 + $0x88] sm:$0xff]  }
  0x15   : > { %7148 = vmatpush3.bf16.msra.mxu1 %v7577_v1  ;;  %7100 = vmatmul.mubr.msk.bf16.vlgmr.msra.gmra.mrb[0].mxu0 %vm493_vm0, %v7580_v8  ;;  %v7585_v13 = vld [vmem:[%s7891_s6 + $0x18] sm:$0xff]   ;;  %v7588_v14 = vld [vmem:[%s7891_s6 + $0x20] sm:$0xff]   ;;  %v7590_v16 = vld [vmem:[%s7891_s6 + $0x90] sm:$0xff]  }
  0x16   : > { %7247 = vmatprep.subr.bf16.mxu1 %v7896_v3  ;;  %7127 = vmatprep.mubr.msk.bf16.mxu1 %vm493_vm0, %v7581_v9  ;;  %v7589_v17 = vld [vmem:[%s7891_s6 + $0x28] sm:$0xff]   ;;  %v7592_v18 = vld [vmem:[%s7891_s6 + $0x30] sm:$0xff]   ;;  %v7591_v19 = vld [vmem:[%s7891_s6 + $0x98] sm:$0xff]  }
  0x17   : > { %7198 = vmatpush3.bf16.msra.mxu0 %v7583_v2  ;;  %7103 = vmatprep.mubr.msk.bf16.mxu0 %vm493_vm0, %v7584_v10  ;;  %v7594_v20 = vld [vmem:[%s7891_s6 + $0xa0] sm:$0xff]   ;;  %v7593_v21 = vld [vmem:[%s7891_s6 + $0x38] sm:$0xff]   ;;  %v7595_v23 = vld [vmem:[%s7891_s6 + $0xa8] sm:$0xff]  }
  0x18   : > { %7297 = vmatprep.subr.bf16.mxu0 %v7903_v6  ;;  %v7596_v22 = vld [vmem:[%s7891_s6 + $0x40] sm:$0xff]   ;;  %v7598_v24 = vld [vmem:[%s7891_s6 + $0xb0] sm:$0xff]   ;;  %v7597_v25 = vld [vmem:[%s7891_s6 + $0x48] sm:$0xff]  }
  0x19   : > { %v7600_v26 = vld [vmem:[%s7891_s6 + $0x50] sm:$0xff]   ;;  %v7599_v27 = vld [vmem:[%s7891_s6 + $0xb8] sm:$0xff]   ;;  %v7602_v28 = vld [vmem:[%s7938_s13] sm:$0xff]  }
  0x1a   : > { %v7601_v29 = vld [vmem:[%s7891_s6 + $0x58] sm:$0xff]   ;;  %v7605_v30 = vld [vmem:[%s7946_s16] sm:$0xff]   ;;  %v7604_v31 = vld [vmem:[%s7938_s13 + $0x8] sm:$0xff]  }
  0x1b   : > { %v7606_v32 = vld [vmem:[%s7938_s13 + $0x10] sm:$0xff]   ;;  %v7607_v33 = vld [vmem:[%s7946_s16 + $0x8] sm:$0xff]   ;;  %v7608_v35 = vld [vmem:[%s7938_s13 + $0x18] sm:$0xff]  }
  0x1c   : > { %7128 = vmatmul.mubr.msk.bf16.gmra.mrb[4].mxu1 %vm493_vm0, %v7582_v11  ;;  %v7610_v34 = vld [vmem:[%s7946_s16 + $0x10] sm:$0xff]   ;;  %v7611_v36 = vld [vmem:[%s7938_s13 + $0x20] sm:$0xff]   ;;  %v7612_v37 = vld [vmem:[%s7946_s16 + $0x18] sm:$0xff]  }
  0x1d   : > { %7131 = vmatprep.mubr.msk.bf16.mxu1 %vm493_vm0, %v7586_v12  ;;  %7104 = vmatmul.mubr.msk.bf16.gmra.mrb[4].mxu0 %vm493_vm0, %v7585_v13  ;;  %v7614_v38 = vld [vmem:[%s7946_s16 + $0x20] sm:$0xff]   ;;  %v7613_v39 = vld [vmem:[%s7938_s13 + $0x28] sm:$0xff]   ;;  %v7615_v40 = vld [vmem:[%s7938_s13 + $0x30] sm:$0xff]  }
  0x1e   : > { %7107 = vmatprep.mubr.msk.bf16.mxu0 %vm493_vm0, %v7588_v14  ;;  %v7616_v41 = vld [vmem:[%s7946_s16 + $0x28] sm:$0xff]   ;;  %v7618_v42 = vld [vmem:[%s7946_s16 + $0x30] sm:$0xff]   ;;  %v7617_v43 = vld [vmem:[%s7938_s13 + $0x38] sm:$0xff]  }
  0x1f   : > { %v7619_v44 = vld [vmem:[%s7938_s13 + $0x40] sm:$0xff]   ;;  %v7620_v45 = vld [vmem:[%s7946_s16 + $0x38] sm:$0xff]   ;;  %v7621_v49 = vld [vmem:[%s7938_s13 + $0x48] sm:$0xff]  }
  0x20   : > { %v7622_v47 = vld [vmem:[%s7946_s16 + $0x40] sm:$0xff]   ;;  %v7623_v50 = vld [vmem:[%s7938_s13 + $0x50] sm:$0xff]   ;;  %v7624_v51 = vld [vmem:[%s7946_s16 + $0x48] sm:$0xff]  }
  0x21   : > { %v7626_v52 = vld [vmem:[%s7946_s16 + $0x50] sm:$0xff]   ;;  %v7625_v53 = vld [vmem:[%s7938_s13 + $0x58] sm:$0xff]   ;;  %v7627_v54 = vld [vmem:[%s7938_s13 + $0x60] sm:$0xff]  }
  0x22   : > { %v7628_v55 = vld [vmem:[%s7946_s16 + $0x58] sm:$0xff]   ;;  %v7630_v56 = vld [vmem:[%s7946_s16 + $0x60] sm:$0xff]   ;;  %v7629_v57 = vld [vmem:[%s7938_s13 + $0x68] sm:$0xff]  }
  0x23   : > { %v7631_v58 = vld [vmem:[%s7938_s13 + $0x70] sm:$0xff]   ;;  %v7632_v59 = vld [vmem:[%s7946_s16 + $0x68] sm:$0xff]   ;;  %v7633_v61 = vld [vmem:[%s7938_s13 + $0x78] sm:$0xff]  }
  0x24   : > { %7132 = vmatmul.mubr.msk.bf16.gmra.mrb[8].mxu1 %vm493_vm0, %v7587_v15  ;;  %v7634_v60 = vld [vmem:[%s7946_s16 + $0x70] sm:$0xff]   ;;  %v7635_v62 = vld [vmem:[%s7938_s13 + $0x80] sm:$0xff]   ;;  %v7636_v63 = vld [vmem:[%s7946_s16 + $0x78] sm:$0xff]  }
  0x25   : > { %7135 = vmatprep.mubr.msk.bf16.mxu1 %vm493_vm0, %v7590_v16  ;;  %7108 = vmatmul.mubr.msk.bf16.gmra.mrb[8].mxu0 %vm493_vm0, %v7589_v17  ;;  %v7638_v0 = vld [vmem:[%s7946_s16 + $0x80] sm:$0xff]   ;;  %v7637_v1 = vld [vmem:[%s7938_s13 + $0x88] sm:$0xff]   ;;  %v7639_v2 = vld [vmem:[%s7938_s13 + $0x90] sm:$0xff]  }
  0x26   : > { %7111 = vmatprep.mubr.msk.bf16.mxu0 %vm493_vm0, %v7592_v18  ;;  %v7642_v4 = vld [vmem:[%s7946_s16 + $0x90] sm:$0xff]   ;;  %v7641_v5 = vld [vmem:[%s7938_s13 + $0x98] sm:$0xff]   ;;  %v7646_v8 = vld [vmem:[%s7946_s16 + $0xa0] sm:$0xff]  }
  0x27   : > { %v7644_v7 = vld [vmem:[%s7946_s16 + $0x98] sm:$0xff]   ;;  %v7645_v9 = vld [vmem:[%s7938_s13 + $0xa8] sm:$0xff]   ;;  %v7647_v10 = vld [vmem:[%s7938_s13 + $0xb0] sm:$0xff]  }
  0x28   : > { %v7648_v11 = vld [vmem:[%s7946_s16 + $0xa8] sm:$0xff]   ;;  %v7650_v12 = vld [vmem:[%s7946_s16 + $0xb0] sm:$0xff]   ;;  %v7649_v13 = vld [vmem:[%s7938_s13 + $0xb8] sm:$0xff]  }
  0x29   : > { %v7651_v14 = vld [vmem:[%s7946_s16 + $0xb8] sm:$0xff]   ;;  %v7652_v15 = vld [vmem:[%s7891_s6 + $0xc] sm:$0xff]  }
  0x2a   : > { %v7655_v16 = vld [vmem:[%s7938_s13 + $0xc] sm:$0xff]   ;;  %v7654_v17 = vld [vmem:[%s7891_s6 + $0x14] sm:$0xff]   ;;  %v7656_v18 = vld [vmem:[%s7891_s6 + $0x1c] sm:$0xff]  }
  0x2c   : > { %7136 = vmatmul.mubr.msk.bf16.gmra.mrb[12].mxu1 %vm493_vm0, %v7591_v19  ;;  %v7657_v19 = vld [vmem:[%s7938_s13 + $0x14] sm:$0xff]  }
  0x2d   : > { %7139 = vmatprep.mubr.msk.bf16.mxu1 %vm493_vm0, %v7594_v20  ;;  %7112 = vmatmul.mubr.msk.bf16.gmra.mrb[12].mxu0 %vm493_vm0, %v7593_v21  ;;  %v7660_v20 = vld [vmem:[%s7938_s13 + $0x1c] sm:$0xff]  }
  0x2e   : > { %7115 = vmatprep.mubr.msk.bf16.mxu0 %vm493_vm0, %v7596_v22  ;;  %v8086_v21 = vld [vmem:[%s8973_s3 + $0x38] sm:$0xff]   ;;  %v8091_v22 = vld [vmem:[%s8973_s3 + $0x40] sm:$0xff]  }
  0x34   : > { %7140 = vmatmul.mubr.msk.bf16.gmra.mrb[16].mxu1 %vm493_vm0, %v7595_v23  ;;  %v7658_v23 = vld [vmem:[%s7891_s6 + $0x24] sm:$0xff]  }
  0x35   : > { %7143 = vmatprep.mubr.msk.bf16.mxu1 %vm493_vm0, %v7598_v24  ;;  %7116 = vmatmul.mubr.msk.bf16.gmra.mrb[16].mxu0 %vm493_vm0, %v7597_v25  ;;  %v7661_v24 = vld [vmem:[%s7891_s6 + $0x2c] sm:$0xff]   ;;  %v7662_v25 = vld [vmem:[%s7938_s13 + $0x24] sm:$0xff]  }
  0x36   : > { %7119 = vmatprep.mubr.msk.bf16.mxu0 %vm493_vm0, %v7600_v26  ;;  %v7664_v26 = vld [vmem:[%s7938_s13 + $0x2c] sm:$0xff]  }
  0x3c   : > { %7144 = vmatmul.mubr.msk.bf16.gmra.mrb[20].mxu1 %vm493_vm0, %v7599_v27  ;;  %v7663_v27 = vld [vmem:[%s7891_s6 + $0x34] sm:$0xff]  }
  0x3d   : > { %7149 = vmatprep.mubr.msk.bf16.mxu1 %vm493_vm0, %v7602_v28  ;;  %7120 = vmatmul.mubr.msk.bf16.gmra.mrb[20].mxu0 %vm493_vm0, %v7601_v29  ;;  %v7665_v28 = vld [vmem:[%s7891_s6 + $0x3c] sm:$0xff]   ;;  %v7666_v29 = vld [vmem:[%s7938_s13 + $0x34] sm:$0xff]  }
  0x3e   : > { %7199 = vmatprep.mubr.msk.bf16.mxu0 %vm493_vm0, %v7605_v30  ;;  %v7668_v30 = vld [vmem:[%s7938_s13 + $0x3c] sm:$0xff]  }
  0x44   : > { %7150 = vmatmul.mubr.msk.bf16.vlgmr.msra.gmra.mrb[24].mxu1 %vm493_vm0, %v7604_v31  ;;  %v7667_v31 = vld [vmem:[%s7891_s6 + $0x44] sm:$0xff]  }
  0x45   : > { %7248 = vmatpush3.bf16.msra.mxu1 %v7896_v3  ;;  %7153 = vmatprep.mubr.msk.bf16.mxu1 %vm493_vm0, %v7606_v32  ;;  %v7640_v3 = vld [vmem:[%s7946_s16 + $0x88] sm:$0xff]  }
  0x46   : > { %7200 = vmatmul.mubr.msk.bf16.vlgmr.msra.gmra.mrb[24].mxu0 %vm493_vm0, %v7607_v33  ;;  %7347 = vmatprep.subr.bf16.mxu1 %v8001_v46  ;;  %v7669_v32 = vld [vmem:[%s7891_s6 + $0x4c] sm:$0xff]   ;;  %v7670_v33 = vld [vmem:[%s7938_s13 + $0x44] sm:$0xff]  }
  0x47   : > { %7298 = vmatpush3.bf16.msra.mxu0 %v7903_v6  ;;  %7203 = vmatprep.mubr.msk.bf16.mxu0 %vm493_vm0, %v7610_v34  ;;  %v7643_v6 = vld [vmem:[%s7938_s13 + $0xa0] sm:$0xff]   ;;  %v7672_v34 = vld [vmem:[%s7938_s13 + $0x4c] sm:$0xff]  }
  0x48   : > { %7397 = vmatprep.subr.bf16.mxu0 %v8012_v48 }
  0x4c   : > { %7154 = vmatmul.mubr.msk.bf16.gmra.mrb[28].mxu1 %vm493_vm0, %v7608_v35  ;;  %v7671_v35 = vld [vmem:[%s7891_s6 + $0x54] sm:$0xff]  }
  0x4d   : > { %7157 = vmatprep.mubr.msk.bf16.mxu1 %vm493_vm0, %v7611_v36  ;;  %v7673_v36 = vld [vmem:[%s7891_s6 + $0x5c] sm:$0xff]  }
  0x4e   : > { %7204 = vmatmul.mubr.msk.bf16.gmra.mrb[28].mxu0 %vm493_vm0, %v7612_v37  ;;  %v7674_v37 = vld [vmem:[%s7938_s13 + $0x54] sm:$0xff]  }
  0x4f   : > { %7207 = vmatprep.mubr.msk.bf16.mxu0 %vm493_vm0, %v7614_v38  ;;  %v7676_v38 = vld [vmem:[%s7938_s13 + $0x5c] sm:$0xff]  }
  0x54   : > { %7158 = vmatmul.mubr.msk.bf16.gmra.mrb[32].mxu1 %vm493_vm0, %v7613_v39  ;;  %v7675_v39 = vld [vmem:[%s7891_s6 + $0x64] sm:$0xff]  }
  0x55   : > { %7161 = vmatprep.mubr.msk.bf16.mxu1 %vm493_vm0, %v7615_v40  ;;  %v7677_v40 = vld [vmem:[%s7891_s6 + $0x6c] sm:$0xff]  }
  0x56   : > { %7208 = vmatmul.mubr.msk.bf16.gmra.mrb[32].mxu0 %vm493_vm0, %v7616_v41  ;;  %v7678_v41 = vld [vmem:[%s7938_s13 + $0x64] sm:$0xff]  }
  0x57   : > { %7211 = vmatprep.mubr.msk.bf16.mxu0 %vm493_vm0, %v7618_v42  ;;  %v7680_v42 = vld [vmem:[%s7938_s13 + $0x6c] sm:$0xff]  }
  0x5c   : > { %7162 = vmatmul.mubr.msk.bf16.gmra.mrb[36].mxu1 %vm493_vm0, %v7617_v43  ;;  %v7679_v43 = vld [vmem:[%s7891_s6 + $0x74] sm:$0xff]  }
  0x5d   : > { %7165 = vmatprep.mubr.msk.bf16.mxu1 %vm493_vm0, %v7619_v44  ;;  %v7681_v44 = vld [vmem:[%s7891_s6 + $0x7c] sm:$0xff]  }
  0x5e   : > { %7212 = vmatmul.mubr.msk.bf16.gmra.mrb[36].mxu0 %vm493_vm0, %v7620_v45  ;;  %v7682_v45 = vld [vmem:[%s7938_s13 + $0x74] sm:$0xff]  }
  0x5f   : > { %7215 = vmatprep.mubr.msk.bf16.mxu0 %vm493_vm0, %v7622_v47  ;;  %v7683_v47 = vld [vmem:[%s7891_s6 + $0x84] sm:$0xff]  }
  0x64   : > { %7166 = vmatmul.mubr.msk.bf16.gmra.mrb[40].mxu1 %vm493_vm0, %v7621_v49  ;;  %v7686_v49 = vld [vmem:[%s7938_s13 + $0x84] sm:$0xff]  }
  0x65   : > { %7169 = vmatprep.mubr.msk.bf16.mxu1 %vm493_vm0, %v7623_v50  ;;  %v7688_v50 = vld [vmem:[%s7938_s13 + $0x8c] sm:$0xff]  }
  0x66   : > { %7216 = vmatmul.mubr.msk.bf16.gmra.mrb[40].mxu0 %vm493_vm0, %v7624_v51  ;;  %v7687_v51 = vld [vmem:[%s7891_s6 + $0x94] sm:$0xff]  }
  0x67   : > { %7219 = vmatprep.mubr.msk.bf16.mxu0 %vm493_vm0, %v7626_v52  ;;  %v7689_v52 = vld [vmem:[%s7891_s6 + $0x9c] sm:$0xff]  }
  0x6c   : > { %7170 = vmatmul.mubr.msk.bf16.gmra.mrb[44].mxu1 %vm493_vm0, %v7625_v53  ;;  %v7690_v53 = vld [vmem:[%s7938_s13 + $0x94] sm:$0xff]  }
  0x6d   : > { %7173 = vmatprep.mubr.msk.bf16.mxu1 %vm493_vm0, %v7627_v54  ;;  %v7692_v54 = vld [vmem:[%s7938_s13 + $0x9c] sm:$0xff]  }
  0x6e   : > { %7220 = vmatmul.mubr.msk.bf16.gmra.mrb[44].mxu0 %vm493_vm0, %v7628_v55 }
  0x6f   : > { %7223 = vmatprep.mubr.msk.bf16.mxu0 %vm493_vm0, %v7630_v56 }
  0x74   : > { %7174 = vmatmul.mubr.msk.bf16.gmra.mrb[48].mxu1 %vm493_vm0, %v7629_v57  ;;  %v7691_v57 = vld [vmem:[%s7891_s6 + $0xa4] sm:$0xff]  }
  0x75   : > { %7177 = vmatprep.mubr.msk.bf16.mxu1 %vm493_vm0, %v7631_v58 }
  0x76   : > { %7224 = vmatmul.mubr.msk.bf16.gmra.mrb[48].mxu0 %vm493_vm0, %v7632_v59 }
  0x77   : > { %7227 = vmatprep.mubr.msk.bf16.mxu0 %vm493_vm0, %v7634_v60  ;;  %v7693_v60 = vld [vmem:[%s7891_s6 + $0xac] sm:$0xff]  }
  0x7c   : > { %7178 = vmatmul.mubr.msk.bf16.gmra.mrb[52].mxu1 %vm493_vm0, %v7633_v61 }
  0x7d   : > { %7181 = vmatprep.mubr.msk.bf16.mxu1 %vm493_vm0, %v7635_v62 }
  0x7e   : > { %7228 = vmatmul.mubr.msk.bf16.gmra.mrb[52].mxu0 %vm493_vm0, %v7636_v63  ;;  %v7694_v63 = vld [vmem:[%s7938_s13 + $0xa4] sm:$0xff]  }
  0x7f   : > { %7231 = vmatprep.mubr.msk.bf16.mxu0 %vm493_vm0, %v7638_v0 }
  0x84   : > { %7182 = vmatmul.mubr.msk.bf16.gmra.mrb[56].mxu1 %vm493_vm0, %v7637_v1  ;;  %v7696_v1 = vld [vmem:[%s7938_s13 + $0xac] sm:$0xff]  }
  0x85   : > { %7185 = vmatprep.mubr.msk.bf16.mxu1 %vm493_vm0, %v7639_v2 }
  0x86   : > { %7232 = vmatmul.mubr.msk.bf16.gmra.mrb[56].mxu0 %vm493_vm0, %v7640_v3 }
  0x87   : > { %7235 = vmatprep.mubr.msk.bf16.mxu0 %vm493_vm0, %v7642_v4 }
  0x8c   : > { %7186 = vmatmul.mubr.msk.bf16.gmra.mrb[60].mxu1 %vm493_vm0, %v7641_v5  ;;  %v7695_v5 = vld [vmem:[%s7891_s6 + $0xb4] sm:$0xff]  }
  0x8d   : > { %7189 = vmatprep.mubr.msk.bf16.mxu1 %vm493_vm0, %v7643_v6 }
  0x8e   : > { %7236 = vmatmul.mubr.msk.bf16.gmra.mrb[60].mxu0 %vm493_vm0, %v7644_v7 }
  0x8f   : > { %7239 = vmatprep.mubr.msk.bf16.mxu0 %vm493_vm0, %v7646_v8  ;;  %v7697_v8 = vld [vmem:[%s7891_s6 + $0xbc] sm:$0xff]  }
  0x94   : > { %7190 = vmatmul.mubr.msk.bf16.gmra.mrb[64].mxu1 %vm493_vm0, %v7645_v9 }
  0x95   : > { %7193 = vmatprep.mubr.msk.bf16.mxu1 %vm493_vm0, %v7647_v10 }
  0x96   : > { %7240 = vmatmul.mubr.msk.bf16.gmra.mrb[64].mxu0 %vm493_vm0, %v7648_v11  ;;  %v7698_v11 = vld [vmem:[%s7938_s13 + $0xb4] sm:$0xff]  }
  0x97   : > { %7243 = vmatprep.mubr.msk.bf16.mxu0 %vm493_vm0, %v7650_v12 }
  0x9c   : > { %7194 = vmatmul.mubr.msk.bf16.gmra.mrb[68].mxu1 %vm493_vm0, %v7649_v13  ;;  %v7700_v13 = vld [vmem:[%s7938_s13 + $0xbc] sm:$0xff]  }
  0x9d   : > { %7249 = vmatprep.mubr.msk.bf16.mxu1 %vm493_vm0, %v7652_v15 }
  0x9e   : > { %7244 = vmatmul.mubr.msk.bf16.gmra.mrb[68].mxu0 %vm493_vm0, %v7651_v14 }
  0x9f   : > { %7299 = vmatprep.mubr.msk.bf16.mxu0 %vm493_vm0, %v7655_v16 }
  0xa4   : > { %7250 = vmatmul.mubr.msk.bf16.vlgmr.msra.gmra.mrb[72].mxu1 %vm493_vm0, %v7654_v17  ;;  %v7699_v17 = vld [vmem:[%s7891_s6 + $0xc4] sm:$0xff]  }
  0xa5   : > { %7348 = vmatpush3.bf16.msra.mxu1 %v8001_v46  ;;  %7253 = vmatprep.mubr.msk.bf16.mxu1 %vm493_vm0, %v7656_v18  ;;  %v7684_v46 = vld [vmem:[%s7938_s13 + $0x7c] sm:$0xff]  }
  0xa6   : > { %7300 = vmatmul.mubr.msk.bf16.vlgmr.msra.gmra.mrb[72].mxu0 %vm493_vm0, %v7657_v19  ;;  %7447 = vmatprep.subr.bf16.mxu1 %v8086_v21 }
  0xa7   : > { %7398 = vmatpush3.bf16.msra.mxu0 %v8012_v48  ;;  %7303 = vmatprep.mubr.msk.bf16.mxu0 %vm493_vm0, %v7660_v20  ;;  %v7685_v48 = vld [vmem:[%s7891_s6 + $0x8c] sm:$0xff]  }
  0xa8   : > { %7497 = vmatprep.subr.bf16.mxu0 %v8091_v22  ;;  %v7702_v20 = vld [vmem:[%s7946_s16 + $0xc] sm:$0xff]  }
  0xac   : > { %7254 = vmatmul.mubr.msk.bf16.gmra.mrb[76].mxu1 %vm493_vm0, %v7658_v23 }
  0xad   : > { %7257 = vmatprep.mubr.msk.bf16.mxu1 %vm493_vm0, %v7661_v24 }
  0xae   : > { %7304 = vmatmul.mubr.msk.bf16.gmra.mrb[76].mxu0 %vm493_vm0, %v7662_v25  ;;  %v7701_v25 = vld [vmem:[%s7938_s13 + $0xc4] sm:$0xff]  }
  0xaf   : > { %7307 = vmatprep.mubr.msk.bf16.mxu0 %vm493_vm0, %v7664_v26 }
  0xb4   : > { %7258 = vmatmul.mubr.msk.bf16.gmra.mrb[80].mxu1 %vm493_vm0, %v7663_v27  ;;  %v7705_v27 = vld [vmem:[%s7891_s6 + $0x18] sm:$0xff]  }
  0xb5   : > { %7261 = vmatprep.mubr.msk.bf16.mxu1 %vm493_vm0, %v7665_v28 }
  0xb6   : > { %7308 = vmatmul.mubr.msk.bf16.gmra.mrb[80].mxu0 %vm493_vm0, %v7666_v29 }
  0xb7   : > { %7311 = vmatprep.mubr.msk.bf16.mxu0 %vm493_vm0, %v7668_v30 }
  0xbc   : > { %7262 = vmatmul.mubr.msk.bf16.gmra.mrb[84].mxu1 %vm493_vm0, %v7667_v31  ;;  %v7704_v31 = vld [vmem:[%s7946_s16 + $0x14] sm:$0xff]  }
  0xbd   : > { %7265 = vmatprep.mubr.msk.bf16.mxu1 %vm493_vm0, %v7669_v32 }
  0xbe   : > { %7312 = vmatmul.mubr.msk.bf16.gmra.mrb[84].mxu0 %vm493_vm0, %v7670_v33 }
  0xbf   : > { %7315 = vmatprep.mubr.msk.bf16.mxu0 %vm493_vm0, %v7672_v34  ;;  %v7706_v34 = vld [vmem:[%s7946_s16 + $0x1c] sm:$0xff]  }
  0xc4   : > { %7266 = vmatmul.mubr.msk.bf16.gmra.mrb[88].mxu1 %vm493_vm0, %v7671_v35 }
  0xc5   : > { %7269 = vmatprep.mubr.msk.bf16.mxu1 %vm493_vm0, %v7673_v36 }
  0xc6   : > { %7316 = vmatmul.mubr.msk.bf16.gmra.mrb[88].mxu0 %vm493_vm0, %v7674_v37  ;;  %v7707_v37 = vld [vmem:[%s7891_s6 + $0x20] sm:$0xff]  }
  0xc7   : > { %7319 = vmatprep.mubr.msk.bf16.mxu0 %vm493_vm0, %v7676_v38 }
  0xcc   : > { %7270 = vmatmul.mubr.msk.bf16.gmra.mrb[92].mxu1 %vm493_vm0, %v7675_v39  ;;  %v7710_v39 = vld [vmem:[%s7891_s6 + $0x28] sm:$0xff]  }
  0xcd   : > { %7273 = vmatprep.mubr.msk.bf16.mxu1 %vm493_vm0, %v7677_v40 }
  0xce   : > { %7320 = vmatmul.mubr.msk.bf16.gmra.mrb[92].mxu0 %vm493_vm0, %v7678_v41 }
  0xcf   : > { %7323 = vmatprep.mubr.msk.bf16.mxu0 %vm493_vm0, %v7680_v42 }
  0xd4   : > { %7274 = vmatmul.mubr.msk.bf16.gmra.mrb[96].mxu1 %vm493_vm0, %v7679_v43  ;;  %v7708_v43 = vld [vmem:[%s7946_s16 + $0x24] sm:$0xff]  }
  0xd5   : > { %7277 = vmatprep.mubr.msk.bf16.mxu1 %vm493_vm0, %v7681_v44 }
  0xd6   : > { %7324 = vmatmul.mubr.msk.bf16.gmra.mrb[96].mxu0 %vm493_vm0, %v7682_v45  ;;  %v7711_v45 = vld [vmem:[%s7946_s16 + $0x2c] sm:$0xff]  }
  0xd7   : > { %7327 = vmatprep.mubr.msk.bf16.mxu0 %vm493_vm0, %v7684_v46 }
  0xdc   : > { %7278 = vmatmul.mubr.msk.bf16.gmra.mrb[100].mxu1 %vm493_vm0, %v7683_v47 }
  0xdd   : > { %7281 = vmatprep.mubr.msk.bf16.mxu1 %vm493_vm0, %v7685_v48 }
  0xde   : > { %7328 = vmatmul.mubr.msk.bf16.gmra.mrb[100].mxu0 %vm493_vm0, %v7686_v49  ;;  %v7714_v49 = vld [vmem:[%s7891_s6 + $0x38] sm:$0xff]  }
  0xdf   : > { %7331 = vmatprep.mubr.msk.bf16.mxu0 %vm493_vm0, %v7688_v50 }
  0xe4   : > { %7282 = vmatmul.mubr.msk.bf16.gmra.mrb[104].mxu1 %vm493_vm0, %v7687_v51 }
  0xe5   : > { %7285 = vmatprep.mubr.msk.bf16.mxu1 %vm493_vm0, %v7689_v52 }
  0xe6   : > { %7332 = vmatmul.mubr.msk.bf16.gmra.mrb[104].mxu0 %vm493_vm0, %v7690_v53  ;;  %v7713_v53 = vld [vmem:[%s7946_s16 + $0x34] sm:$0xff]  }
  0xe7   : > { %v7125_v55 = vpop.f32.mrb[0].mxu1  ;;  %7335 = vmatprep.mubr.msk.bf16.mxu0 %vm493_vm0, %v7692_v54 }
  0xe8   : > { %818 = vst.msk [vmem:[#allocation2 + $0xd0] sm:$0xff] %vm791_vm1, %v7125_v55  ;;  %v696_v56 = vpop.f32.mrb[1].mxu1  ;;  %v7101_v59 = vpop.f32.mrb[0].mxu0 }
  0xe9   : > { %816 = vst.msk [vmem:[#allocation2 + $0xc0] sm:$0xff] %vm791_vm1, %v696_v56  ;;  %v7126_v58 = vpop.f32.mrb[2].mxu1  ;;  %794 = vst.msk [vmem:[#allocation2 + $0x10] sm:$0xff] %vm791_vm1, %v7101_v59  ;;  %v600_v62 = vpop.f32.mrb[1].mxu0  ;;  %v7715_v56 = vld [vmem:[%s7946_s16 + $0x3c] sm:$0xff]  }
  0xea   : > { %819 = vst.msk [vmem:[#allocation2 + $0xd8] sm:$0xff] %vm791_vm1, %v7126_v58  ;;  %v699_v61 = vpop.f32.mrb[3].mxu1  ;;  %792 = vst.msk [vmem:[#allocation2] sm:$0xff] %vm791_vm1, %v600_v62  ;;  %v7102_v0 = vpop.f32.mrb[2].mxu0  ;;  %v7716_v59 = vld [vmem:[%s7891_s6 + $0x40] sm:$0xff]  }
  0xeb   : > { %817 = vst.msk [vmem:[#allocation2 + $0xc8] sm:$0xff] %vm791_vm1, %v699_v61  ;;  %795 = vst.msk [vmem:[#allocation2 + $0x18] sm:$0xff] %vm791_vm1, %v7102_v0  ;;  %v603_v2 = vpop.f32.mrb[3].mxu0  ;;  %v7718_v61 = vld [vmem:[%s7891_s6 + $0x48] sm:$0xff]  }
  0xec   : > { %7286 = vmatmul.mubr.msk.bf16.gmra.mrb[108].mxu1 %vm493_vm0, %v7691_v57  ;;  %793 = vst.msk [vmem:[#allocation2 + $0x8] sm:$0xff] %vm791_vm1, %v603_v2 }
  0xed   : > { %7289 = vmatprep.mubr.msk.bf16.mxu1 %vm493_vm0, %v7693_v60 }
  0xee   : > { %7336 = vmatmul.mubr.msk.bf16.gmra.mrb[108].mxu0 %vm493_vm0, %v7694_v63 }
  0xef   : > { %v7129_v3 = vpop.f32.mrb[4].mxu1  ;;  %7339 = vmatprep.mubr.msk.bf16.mxu0 %vm493_vm0, %v7696_v1 }
  0xf0   : > { %822 = vst.msk [vmem:[#allocation2 + $0xf0] sm:$0xff] %vm791_vm1, %v7129_v3  ;;  %v712_v4 = vpop.f32.mrb[5].mxu1  ;;  %v7105_v7 = vpop.f32.mrb[4].mxu0  ;;  %v1316_v0 = vld [vmem:[#allocation2 + $0x10] sm:$0xff] }
  0xf1   : > { %820 = vst.msk [vmem:[#allocation2 + $0xe0] sm:$0xff] %vm791_vm1, %v712_v4  ;;  %v7130_v6 = vpop.f32.mrb[6].mxu1  ;;  %798 = vst.msk [vmem:[#allocation2 + $0x30] sm:$0xff] %vm791_vm1, %v7105_v7  ;;  %v616_v10 = vpop.f32.mrb[5].mxu0  ;;  %v1314_v3 = vld [vmem:[#allocation2] sm:$0xff] }
  0xf2   : > { %823 = vst.msk [vmem:[#allocation2 + $0xf8] sm:$0xff] %vm791_vm1, %v7130_v6  ;;  %v715_v9 = vpop.f32.mrb[7].mxu1  ;;  %796 = vst.msk [vmem:[#allocation2 + $0x20] sm:$0xff] %vm791_vm1, %v616_v10  ;;  %v7106_v12 = vpop.f32.mrb[6].mxu0  ;;  %v7717_v4 = vld [vmem:[%s7946_s16 + $0x44] sm:$0xff]   ;;  %v1317_v7 = vld [vmem:[#allocation2 + $0x18] sm:$0xff] }
  0xf3   : > { %821 = vst.msk [vmem:[#allocation2 + $0xe8] sm:$0xff] %vm791_vm1, %v715_v9  ;;  %799 = vst.msk [vmem:[#allocation2 + $0x38] sm:$0xff] %vm791_vm1, %v7106_v12  ;;  %v619_v14 = vpop.f32.mrb[7].mxu0  ;;  %v7719_v9 = vld [vmem:[%s7946_s16 + $0x4c] sm:$0xff]  }
  0xf4   : > { %7290 = vmatmul.mubr.msk.bf16.gmra.mrb[112].mxu1 %vm493_vm0, %v7695_v5  ;;  %797 = vst.msk [vmem:[#allocation2 + $0x28] sm:$0xff] %vm791_vm1, %v619_v14  ;;  %v1315_v12 = vld [vmem:[#allocation2 + $0x8] sm:$0xff]  ;;  %v7720_v14 = vld [vmem:[%s7891_s6 + $0x50] sm:$0xff]  }
  0xf5   : > { %7293 = vmatprep.mubr.msk.bf16.mxu1 %vm493_vm0, %v7697_v8 }
  0xf6   : > { %7340 = vmatmul.mubr.msk.bf16.gmra.mrb[112].mxu0 %vm493_vm0, %v7698_v11 }
  0xf7   : > { %v7133_v15 = vpop.f32.mrb[8].mxu1  ;;  %7343 = vmatprep.mubr.msk.bf16.mxu0 %vm493_vm0, %v7700_v13 }
  0xf8   : > { %826 = vst.msk [vmem:[#allocation2 + $0x110] sm:$0xff] %vm791_vm1, %v7133_v15  ;;  %v728_v16 = vpop.f32.mrb[9].mxu1  ;;  %v7109_v19 = vpop.f32.mrb[8].mxu0 }
  0xf9   : > { %824 = vst.msk [vmem:[#allocation2 + $0x100] sm:$0xff] %vm791_vm1, %v728_v16  ;;  %v7134_v18 = vpop.f32.mrb[10].mxu1  ;;  %802 = vst.msk [vmem:[#allocation2 + $0x50] sm:$0xff] %vm791_vm1, %v7109_v19  ;;  %v632_v24 = vpop.f32.mrb[9].mxu0 }
  0xfa   : > { %827 = vst.msk [vmem:[#allocation2 + $0x118] sm:$0xff] %vm791_vm1, %v7134_v18  ;;  %v731_v23 = vpop.f32.mrb[11].mxu1  ;;  %800 = vst.msk [vmem:[#allocation2 + $0x40] sm:$0xff] %vm791_vm1, %v632_v24  ;;  %v7110_v26 = vpop.f32.mrb[10].mxu0 }
  0xfb   : > { %825 = vst.msk [vmem:[#allocation2 + $0x108] sm:$0xff] %vm791_vm1, %v731_v23  ;;  %803 = vst.msk [vmem:[#allocation2 + $0x58] sm:$0xff] %vm791_vm1, %v7110_v26  ;;  %v635_v28 = vpop.f32.mrb[11].mxu0  ;;  %v7721_v26 = vld [vmem:[%s7946_s16 + $0x54] sm:$0xff]  }
  0xfc   : > { %7294 = vmatmul.mubr.msk.bf16.gmra.mrb[116].mxu1 %vm493_vm0, %v7699_v17  ;;  %801 = vst.msk [vmem:[#allocation2 + $0x48] sm:$0xff] %vm791_vm1, %v635_v28  ;;  %v7722_v17 = vld [vmem:[%s7891_s6 + $0x58] sm:$0xff]  }
  0xfd   : > { %7349 = vmatprep.mubr.msk.bf16.mxu1 %vm493_vm0, %v7702_v20  ;;  %v1320_v20 = vld [vmem:[#allocation2 + $0x30] sm:$0xff] }
  0xfe   : > { %7344 = vmatmul.mubr.msk.bf16.gmra.mrb[116].mxu0 %vm493_vm0, %v7701_v25  ;;  %v1318_v25 = vld [vmem:[#allocation2 + $0x20] sm:$0xff] }
  0xff   : > { %v7137_v29 = vpop.f32.mrb[12].mxu1  ;;  %7399 = vmatprep.mubr.msk.bf16.mxu0 %vm493_vm0, %v7705_v27 }
 0x100   : > { %830 = vst.msk [vmem:[#allocation2 + $0x130] sm:$0xff] %vm791_vm1, %v7137_v29  ;;  %v744_v30 = vpop.f32.mrb[13].mxu1  ;;  %v7113_v33 = vpop.f32.mrb[12].mxu0 }
 0x101   : > { %828 = vst.msk [vmem:[#allocation2 + $0x120] sm:$0xff] %vm791_vm1, %v744_v30  ;;  %v7138_v32 = vpop.f32.mrb[14].mxu1  ;;  %806 = vst.msk [vmem:[#allocation2 + $0x70] sm:$0xff] %vm791_vm1, %v7113_v33  ;;  %v648_v36 = vpop.f32.mrb[13].mxu0  ;;  %v1321_v30 = vld [vmem:[#allocation2 + $0x38] sm:$0xff] }
 0x102   : > { %831 = vst.msk [vmem:[#allocation2 + $0x138] sm:$0xff] %vm791_vm1, %v7138_v32  ;;  %v747_v35 = vpop.f32.mrb[15].mxu1  ;;  %804 = vst.msk [vmem:[#allocation2 + $0x60] sm:$0xff] %vm791_vm1, %v648_v36  ;;  %v7114_v38 = vpop.f32.mrb[14].mxu0  ;;  %v7723_v32 = vld [vmem:[%s7946_s16 + $0x5c] sm:$0xff]  }
 0x103   : > { %829 = vst.msk [vmem:[#allocation2 + $0x128] sm:$0xff] %vm791_vm1, %v747_v35  ;;  %807 = vst.msk [vmem:[#allocation2 + $0x78] sm:$0xff] %vm791_vm1, %v7114_v38  ;;  %v651_v40 = vpop.f32.mrb[15].mxu0 }
 0x104   : > { %7350 = vmatmul.mubr.msk.bf16.vlgmr.msra.gmra.mrb[120].mxu1 %vm493_vm0, %v7704_v31  ;;  %805 = vst.msk [vmem:[#allocation2 + $0x68] sm:$0xff] %vm791_vm1, %v651_v40 }
 0x105   : > { %7448 = vmatpush3.bf16.msra.mxu1 %v8086_v21  ;;  %7353 = vmatprep.mubr.msk.bf16.mxu1 %vm493_vm0, %v7706_v34 }
 0x106   : > { %7400 = vmatmul.mubr.msk.bf16.vlgmr.msra.gmra.mrb[120].mxu0 %vm493_vm0, %v7707_v37  ;;  %v1319_v37 = vld [vmem:[#allocation2 + $0x28] sm:$0xff] }
 0x107   : > { %v7141_v41 = vpop.f32.mrb[16].mxu1  ;;  %7498 = vmatpush3.bf16.msra.mxu0 %v8091_v22  ;;  %7403 = vmatprep.mubr.msk.bf16.mxu0 %vm493_vm0, %v7710_v39  ;;  %v7712_v22 = vld [vmem:[%s7891_s6 + $0x30] sm:$0xff]   ;;  %v7724_v39 = vld [vmem:[%s7891_s6 + $0x60] sm:$0xff]  }
 0x108   : > { %834 = vst.msk [vmem:[#allocation2 + $0x150] sm:$0xff] %vm791_vm1, %v7141_v41  ;;  %v760_v42 = vpop.f32.mrb[17].mxu1  ;;  %v7117_v44 = vpop.f32.mrb[16].mxu0 }
 0x109   : > { %832 = vst.msk [vmem:[#allocation2 + $0x140] sm:$0xff] %vm791_vm1, %v760_v42  ;;  %v7142_v21 = vpop.f32.mrb[18].mxu1  ;;  %810 = vst.msk [vmem:[#allocation2 + $0x90] sm:$0xff] %vm791_vm1, %v7117_v44  ;;  %v664_v47 = vpop.f32.mrb[17].mxu0 }
 0x10a   : > { %835 = vst.msk [vmem:[#allocation2 + $0x158] sm:$0xff] %vm791_vm1, %v7142_v21  ;;  %v763_v46 = vpop.f32.mrb[19].mxu1  ;;  %808 = vst.msk [vmem:[#allocation2 + $0x80] sm:$0xff] %vm791_vm1, %v664_v47  ;;  %v7118_v48 = vpop.f32.mrb[18].mxu0  ;;  %v7726_v21 = vld [vmem:[%s7891_s6 + $0x68] sm:$0xff]  }
 0x10b   : > { %833 = vst.msk [vmem:[#allocation2 + $0x148] sm:$0xff] %vm791_vm1, %v763_v46  ;;  %811 = vst.msk [vmem:[#allocation2 + $0x98] sm:$0xff] %vm791_vm1, %v7118_v48  ;;  %v667_v50 = vpop.f32.mrb[19].mxu0  ;;  %v1324_v48 = vld [vmem:[#allocation2 + $0x50] sm:$0xff] }
 0x10c   : > { %7354 = vmatmul.mubr.msk.bf16.gmra.mrb[124].mxu1 %vm493_vm0, %v7708_v43  ;;  %809 = vst.msk [vmem:[#allocation2 + $0x88] sm:$0xff] %vm791_vm1, %v667_v50 }
 0x10d   : > { %7357 = vmatprep.mubr.msk.bf16.mxu1 %vm493_vm0, %v7711_v45 }
 0x10e   : > { %7404 = vmatmul.mubr.msk.bf16.gmra.mrb[124].mxu0 %vm493_vm0, %v7712_v22 }
 0x10f   : > { %v7145_v51 = vpop.f32.mrb[20].mxu1  ;;  %7407 = vmatprep.mubr.msk.bf16.mxu0 %vm493_vm0, %v7714_v49 }
 0x110   : > { %838 = vst.msk [vmem:[#allocation2 + $0x170] sm:$0xff] %vm791_vm1, %v7145_v51  ;;  %v776_v52 = vpop.f32.mrb[21].mxu1  ;;  %v7121_v55 = vpop.f32.mrb[20].mxu0  ;;  %v1322_v51 = vld [vmem:[#allocation2 + $0x40] sm:$0xff] }
 0x111   : > { %836 = vst.msk [vmem:[#allocation2 + $0x160] sm:$0xff] %vm791_vm1, %v776_v52  ;;  %v7146_v54 = vpop.f32.mrb[22].mxu1  ;;  %814 = vst.msk [vmem:[#allocation2 + $0xb0] sm:$0xff] %vm791_vm1, %v7121_v55  ;;  %v680_v58 = vpop.f32.mrb[21].mxu0  ;;  %v7725_v52 = vld [vmem:[%s7946_s16 + $0x64] sm:$0xff]  }
 0x112   : > { %839 = vst.msk [vmem:[#allocation2 + $0x178] sm:$0xff] %vm791_vm1, %v7146_v54  ;;  %v779_v57 = vpop.f32.mrb[23].mxu1  ;;  %812 = vst.msk [vmem:[#allocation2 + $0xa0] sm:$0xff] %vm791_vm1, %v680_v58  ;;  %v7122_v60 = vpop.f32.mrb[22].mxu0  ;;  %v7727_v58 = vld [vmem:[%s7946_s16 + $0x6c] sm:$0xff]  }
 0x113   : > { %837 = vst.msk [vmem:[#allocation2 + $0x168] sm:$0xff] %vm791_vm1, %v779_v57  ;;  %815 = vst.msk [vmem:[#allocation2 + $0xb8] sm:$0xff] %vm791_vm1, %v7122_v60  ;;  %v683_v62 = vpop.f32.mrb[23].mxu0 }
 0x114   : > { %7358 = vmatmul.mubr.msk.bf16.gmra.mrb[128].mxu1 %vm493_vm0, %v7713_v53  ;;  %813 = vst.msk [vmem:[#allocation2 + $0xa8] sm:$0xff] %vm791_vm1, %v683_v62 }
 0x115   : > { %7361 = vmatprep.mubr.msk.bf16.mxu1 %vm493_vm0, %v7715_v56  ;;  %v1325_v56 = vld [vmem:[#allocation2 + $0x58] sm:$0xff] }
 0x116   : > { %7408 = vmatmul.mubr.msk.bf16.gmra.mrb[128].mxu0 %vm493_vm0, %v7716_v59 }
 0x117   : > { %v7151_v63 = vpop.f32.mrb[24].mxu1  ;;  %7411 = vmatprep.mubr.msk.bf16.mxu0 %vm493_vm0, %v7718_v61 }
 0x118   : > { %v1364_v1 = vadd.f32 %v7151_v63, %v1316_v0  ;;  %v1123_v2 = vpop.f32.mrb[25].mxu1  ;;  %v1323_v63 = vld [vmem:[#allocation2 + $0x48] sm:$0xff] }
 0x119   : > { %v1362_v5 = vadd.f32 %v1314_v3, %v1123_v2  ;;  %v7152_v6 = vpop.f32.mrb[26].mxu1  ;;  %v7201_v8 = vpop.f32.mrb[24].mxu0 }
 0x11a   : > { %1412 = vst.msk [vmem:[#allocation2 + $0x10] sm:$0xff] %vm791_vm1, %v1364_v1  ;;  %v1365_v10 = vadd.f32 %v7152_v6, %v1317_v7  ;;  %v1126_v11 = vpop.f32.mrb[27].mxu1  ;;  %v1741_v13 = vpop.f32.mrb[25].mxu0  ;;  %v7728_v1 = vld [vmem:[%s7891_s6 + $0x70] sm:$0xff]   ;;  %v7730_v6 = vld [vmem:[%s7891_s6 + $0x78] sm:$0xff]  }
 0x11b   : > { %1410 = vst.msk [vmem:[#allocation2] sm:$0xff] %vm791_vm1, %v1362_v5  ;;  %v1363_v15 = vadd.f32 %v1315_v12, %v1126_v11  ;;  %v7202_v16 = vpop.f32.mrb[26].mxu0  ;;  %v1328_v12 = vld [vmem:[#allocation2 + $0x70] sm:$0xff] }
 0x11c   : > { %1413 = vst.msk [vmem:[#allocation2 + $0x18] sm:$0xff] %vm791_vm1, %v1365_v10  ;;  %7362 = vmatmul.mubr.msk.bf16.gmra.mrb[132].mxu1 %vm493_vm0, %v7717_v4  ;;  %v1744_v18 = vpop.f32.mrb[27].mxu0 }
 0x11d   : > { %1411 = vst.msk [vmem:[#allocation2 + $0x8] sm:$0xff] %vm791_vm1, %v1363_v15  ;;  %7365 = vmatprep.mubr.msk.bf16.mxu1 %vm493_vm0, %v7719_v9  ;;  %v1326_v15 = vld [vmem:[#allocation2 + $0x60] sm:$0xff] }
 0x11e   : > { %7412 = vmatmul.mubr.msk.bf16.gmra.mrb[132].mxu0 %vm493_vm0, %v7720_v14 }
 0x11f   : > { %v7155_v19 = vpop.f32.mrb[28].mxu1  ;;  %7415 = vmatprep.mubr.msk.bf16.mxu0 %vm493_vm0, %v7722_v17 }
 0x120   : > { %v1368_v23 = vadd.f32 %v7155_v19, %v1320_v20  ;;  %v1139_v24 = vpop.f32.mrb[29].mxu1  ;;  %v1329_v20 = vld [vmem:[#allocation2 + $0x78] sm:$0xff] }
 0x121   : > { %v1934_v27 = vld [vmem:[#allocation2 + $0x10] sm:$0xff]  ;;  %v1366_v28 = vadd.f32 %v1318_v25, %v1139_v24  ;;  %v7156_v29 = vpop.f32.mrb[30].mxu1  ;;  %v7205_v31 = vpop.f32.mrb[28].mxu0  ;;  %v7731_v24 = vld [vmem:[%s7946_s16 + $0x7c] sm:$0xff]  }
 0x122   : > { %v1982_v33 = vadd.f32 %v7201_v8, %v1934_v27  ;;  %1416 = vst.msk [vmem:[#allocation2 + $0x30] sm:$0xff] %vm791_vm1, %v1368_v23  ;;  %v1932_v34 = vld [vmem:[#allocation2] sm:$0xff]  ;;  %v1369_v35 = vadd.f32 %v7156_v29, %v1321_v30  ;;  %v1142_v36 = vpop.f32.mrb[31].mxu1  ;;  %v1757_v38 = vpop.f32.mrb[29].mxu0  ;;  %v1327_v29 = vld [vmem:[#allocation2 + $0x68] sm:$0xff] }
 0x123   : > { %v1980_v40 = vadd.f32 %v1932_v34, %v1741_v13  ;;  %1414 = vst.msk [vmem:[#allocation2 + $0x20] sm:$0xff] %vm791_vm1, %v1366_v28  ;;  %v1935_v41 = vld [vmem:[#allocation2 + $0x18] sm:$0xff]  ;;  %v1367_v42 = vadd.f32 %v1319_v37, %v1142_v36  ;;  %v7206_v43 = vpop.f32.mrb[30].mxu0  ;;  %v7734_v36 = vld [vmem:[%s7891_s6 + $0x88] sm:$0xff]  }
 0x124   : > { %2030 = vst.msk [vmem:[#allocation2 + $0x10] sm:$0xff] %vm791_vm1, %v1982_v33  ;;  %v1983_v44 = vadd.f32 %v7202_v16, %v1935_v41  ;;  %1417 = vst.msk [vmem:[#allocation2 + $0x38] sm:$0xff] %vm791_vm1, %v1369_v35  ;;  %v1933_v45 = vld [vmem:[#allocation2 + $0x8] sm:$0xff]  ;;  %7366 = vmatmul.mubr.msk.bf16.gmra.mrb[136].mxu1 %vm493_vm0, %v7721_v26  ;;  %v1760_v46 = vpop.f32.mrb[31].mxu0  ;;  %v7729_v16 = vld [vmem:[%s7946_s16 + $0x74] sm:$0xff]  }
 0x125   : > { %2028 = vst.msk [vmem:[#allocation2] sm:$0xff] %vm791_vm1, %v1980_v40  ;;  %v1981_v47 = vadd.f32 %v1933_v45, %v1744_v18  ;;  %1415 = vst.msk [vmem:[#allocation2 + $0x28] sm:$0xff] %vm791_vm1, %v1367_v42  ;;  %7369 = vmatprep.mubr.msk.bf16.mxu1 %vm493_vm0, %v7723_v32  ;;  %v1332_v42 = vld [vmem:[#allocation2 + $0x90] sm:$0xff]  ;;  %v7733_v45 = vld [vmem:[%s7946_s16 + $0x84] sm:$0xff]  }
 0x126   : > { %2031 = vst.msk [vmem:[#allocation2 + $0x18] sm:$0xff] %vm791_vm1, %v1983_v44  ;;  %7416 = vmatmul.mubr.msk.bf16.gmra.mrb[136].mxu0 %vm493_vm0, %v7724_v39  ;;  %v1330_v44 = vld [vmem:[#allocation2 + $0x80] sm:$0xff] }
 0x127   : > { %2029 = vst.msk [vmem:[#allocation2 + $0x8] sm:$0xff] %vm791_vm1, %v1981_v47  ;;  %v7159_v22 = vpop.f32.mrb[32].mxu1  ;;  %7419 = vmatprep.mubr.msk.bf16.mxu0 %vm493_vm0, %v7726_v21 }
 0x128   : > { %v1372_v49 = vadd.f32 %v7159_v22, %v1324_v48  ;;  %v1155_v50 = vpop.f32.mrb[33].mxu1  ;;  %v1333_v48 = vld [vmem:[#allocation2 + $0x98] sm:$0xff] }
 0x129   : > { %v1938_v53 = vld [vmem:[#allocation2 + $0x30] sm:$0xff]  ;;  %v1370_v54 = vadd.f32 %v1322_v51, %v1155_v50  ;;  %v7160_v55 = vpop.f32.mrb[34].mxu1  ;;  %v7209_v57 = vpop.f32.mrb[32].mxu0 }
 0x12a   : > { %v1986_v59 = vadd.f32 %v7205_v31, %v1938_v53  ;;  %1420 = vst.msk [vmem:[#allocation2 + $0x50] sm:$0xff] %vm791_vm1, %v1372_v49  ;;  %v1936_v60 = vld [vmem:[#allocation2 + $0x20] sm:$0xff]  ;;  %v1373_v61 = vadd.f32 %v7160_v55, %v1325_v56  ;;  %v1158_v62 = vpop.f32.mrb[35].mxu1  ;;  %v1773_v0 = vpop.f32.mrb[33].mxu0  ;;  %v7735_v50 = vld [vmem:[%s7946_s16 + $0x8c] sm:$0xff]  }
 0x12b   : > { %v1984_v2 = vadd.f32 %v1936_v60, %v1757_v38  ;;  %1418 = vst.msk [vmem:[#allocation2 + $0x40] sm:$0xff] %vm791_vm1, %v1370_v54  ;;  %v1939_v3 = vld [vmem:[#allocation2 + $0x38] sm:$0xff]  ;;  %v1371_v4 = vadd.f32 %v1323_v63, %v1158_v62  ;;  %v7210_v5 = vpop.f32.mrb[34].mxu0  ;;  %v7732_v31 = vld [vmem:[%s7891_s6 + $0x80] sm:$0xff]   ;;  %v1331_v55 = vld [vmem:[#allocation2 + $0x88] sm:$0xff] }
 0x12c   : > { %2034 = vst.msk [vmem:[#allocation2 + $0x30] sm:$0xff] %vm791_vm1, %v1986_v59  ;;  %v1987_v7 = vadd.f32 %v7206_v43, %v1939_v3  ;;  %1421 = vst.msk [vmem:[#allocation2 + $0x58] sm:$0xff] %vm791_vm1, %v1373_v61  ;;  %v1937_v8 = vld [vmem:[#allocation2 + $0x28] sm:$0xff]  ;;  %7370 = vmatmul.mubr.msk.bf16.gmra.mrb[140].mxu1 %vm493_vm0, %v7725_v52  ;;  %v1776_v9 = vpop.f32.mrb[35].mxu0  ;;  %v7738_v62 = vld [vmem:[%s7891_s6 + $0x98] sm:$0xff]  }
 0x12d   : > { %2032 = vst.msk [vmem:[#allocation2 + $0x20] sm:$0xff] %vm791_vm1, %v1984_v2  ;;  %v1985_v10 = vadd.f32 %v1937_v8, %v1760_v46  ;;  %1419 = vst.msk [vmem:[#allocation2 + $0x48] sm:$0xff] %vm791_vm1, %v1371_v4  ;;  %7373 = vmatprep.mubr.msk.bf16.mxu1 %vm493_vm0, %v7727_v58  ;;  %v1336_v4 = vld [vmem:[#allocation2 + $0xb0] sm:$0xff] }
 0x12e   : > { %2035 = vst.msk [vmem:[#allocation2 + $0x38] sm:$0xff] %vm791_vm1, %v1987_v7  ;;  %7420 = vmatmul.mubr.msk.bf16.gmra.mrb[140].mxu0 %vm493_vm0, %v7728_v1  ;;  %v1334_v7 = vld [vmem:[#allocation2 + $0xa0] sm:$0xff]  ;;  %v7737_v8 = vld [vmem:[%s7946_s16 + $0x94] sm:$0xff]  }
 0x12f   : > { %2033 = vst.msk [vmem:[#allocation2 + $0x28] sm:$0xff] %vm791_vm1, %v1985_v10  ;;  %v7163_v11 = vpop.f32.mrb[36].mxu1  ;;  %7423 = vmatprep.mubr.msk.bf16.mxu0 %vm493_vm0, %v7730_v6 }
 0x130   : > { %v1376_v13 = vadd.f32 %v7163_v11, %v1328_v12  ;;  %v1171_v14 = vpop.f32.mrb[37].mxu1  ;;  %v1337_v12 = vld [vmem:[#allocation2 + $0xb8] sm:$0xff] }
 0x131   : > { %v1942_v17 = vld [vmem:[#allocation2 + $0x50] sm:$0xff]  ;;  %v1374_v18 = vadd.f32 %v1326_v15, %v1171_v14  ;;  %v7164_v19 = vpop.f32.mrb[38].mxu1  ;;  %v7213_v23 = vpop.f32.mrb[36].mxu0  ;;  %v7739_v14 = vld [vmem:[%s7946_s16 + $0x9c] sm:$0xff]  }
 0x132   : > { %v1990_v25 = vadd.f32 %v7209_v57, %v1942_v17  ;;  %1424 = vst.msk [vmem:[#allocation2 + $0x70] sm:$0xff] %vm791_vm1, %v1376_v13  ;;  %v1940_v26 = vld [vmem:[#allocation2 + $0x40] sm:$0xff]  ;;  %v1377_v27 = vadd.f32 %v7164_v19, %v1329_v20  ;;  %v1174_v28 = vpop.f32.mrb[39].mxu1  ;;  %v1789_v30 = vpop.f32.mrb[37].mxu0  ;;  %v7736_v57 = vld [vmem:[%s7891_s6 + $0x90] sm:$0xff]   ;;  %v1335_v19 = vld [vmem:[#allocation2 + $0xa8] sm:$0xff] }
 0x133   : > { %v1988_v32 = vadd.f32 %v1940_v26, %v1773_v0  ;;  %1422 = vst.msk [vmem:[#allocation2 + $0x60] sm:$0xff] %vm791_vm1, %v1374_v18  ;;  %v1943_v33 = vld [vmem:[#allocation2 + $0x58] sm:$0xff]  ;;  %v1375_v34 = vadd.f32 %v1327_v29, %v1174_v28  ;;  %v7214_v35 = vpop.f32.mrb[38].mxu0  ;;  %v7742_v28 = vld [vmem:[%s7891_s6 + $0xa8] sm:$0xff]  }
 0x134   : > { %2038 = vst.msk [vmem:[#allocation2 + $0x50] sm:$0xff] %vm791_vm1, %v1990_v25  ;;  %v1991_v37 = vadd.f32 %v7210_v5, %v1943_v33  ;;  %1425 = vst.msk [vmem:[#allocation2 + $0x78] sm:$0xff] %vm791_vm1, %v1377_v27  ;;  %v1941_v38 = vld [vmem:[#allocation2 + $0x48] sm:$0xff]  ;;  %7374 = vmatmul.mubr.msk.bf16.gmra.mrb[144].mxu1 %vm493_vm0, %v7729_v16  ;;  %v1792_v39 = vpop.f32.mrb[39].mxu0 }
 0x135   : > { %2036 = vst.msk [vmem:[#allocation2 + $0x40] sm:$0xff] %vm791_vm1, %v1988_v32  ;;  %v1989_v40 = vadd.f32 %v1941_v38, %v1776_v9  ;;  %1423 = vst.msk [vmem:[#allocation2 + $0x68] sm:$0xff] %vm791_vm1, %v1375_v34  ;;  %7377 = vmatprep.mubr.msk.bf16.mxu1 %vm493_vm0, %v7731_v24  ;;  %v1340_v34 = vld [vmem:[#allocation2 + $0xd0] sm:$0xff]  ;;  %v7741_v38 = vld [vmem:[%s7946_s16 + $0xa4] sm:$0xff]  }
 0x136   : > { %2039 = vst.msk [vmem:[#allocation2 + $0x58] sm:$0xff] %vm791_vm1, %v1991_v37  ;;  %7424 = vmatmul.mubr.msk.bf16.gmra.mrb[144].mxu0 %vm493_vm0, %v7732_v31  ;;  %v1338_v37 = vld [vmem:[#allocation2 + $0xc0] sm:$0xff] }
 0x137   : > { %2037 = vst.msk [vmem:[#allocation2 + $0x48] sm:$0xff] %vm791_vm1, %v1989_v40  ;;  %v7167_v41 = vpop.f32.mrb[40].mxu1  ;;  %7427 = vmatprep.mubr.msk.bf16.mxu0 %vm493_vm0, %v7734_v36 }
 0x138   : > { %v1380_v43 = vadd.f32 %v7167_v41, %v1332_v42  ;;  %v1187_v21 = vpop.f32.mrb[41].mxu1  ;;  %v1341_v42 = vld [vmem:[#allocation2 + $0xd8] sm:$0xff] }
 0x139   : > { %v1946_v46 = vld [vmem:[#allocation2 + $0x70] sm:$0xff]  ;;  %v1378_v47 = vadd.f32 %v1330_v44, %v1187_v21  ;;  %v7168_v22 = vpop.f32.mrb[42].mxu1  ;;  %v7217_v49 = vpop.f32.mrb[40].mxu0 }
 0x13a   : > { %v1994_v51 = vadd.f32 %v7213_v23, %v1946_v46  ;;  %1428 = vst.msk [vmem:[#allocation2 + $0x90] sm:$0xff] %vm791_vm1, %v1380_v43  ;;  %v1944_v52 = vld [vmem:[#allocation2 + $0x60] sm:$0xff]  ;;  %v1381_v53 = vadd.f32 %v7168_v22, %v1333_v48  ;;  %v1190_v54 = vpop.f32.mrb[43].mxu1  ;;  %v1805_v56 = vpop.f32.mrb[41].mxu0  ;;  %v7743_v21 = vld [vmem:[%s7946_s16 + $0xac] sm:$0xff]  }
 0x13b   : > { %v1992_v58 = vadd.f32 %v1944_v52, %v1789_v30  ;;  %1426 = vst.msk [vmem:[#allocation2 + $0x80] sm:$0xff] %vm791_vm1, %v1378_v47  ;;  %v1947_v59 = vld [vmem:[#allocation2 + $0x78] sm:$0xff]  ;;  %v1379_v60 = vadd.f32 %v1331_v55, %v1190_v54  ;;  %v7218_v61 = vpop.f32.mrb[42].mxu0  ;;  %v7740_v23 = vld [vmem:[%s7891_s6 + $0xa0] sm:$0xff]   ;;  %v1339_v22 = vld [vmem:[#allocation2 + $0xc8] sm:$0xff] }
 0x13c   : > { %2042 = vst.msk [vmem:[#allocation2 + $0x70] sm:$0xff] %vm791_vm1, %v1994_v51  ;;  %v1995_v63 = vadd.f32 %v7214_v35, %v1947_v59  ;;  %1429 = vst.msk [vmem:[#allocation2 + $0x98] sm:$0xff] %vm791_vm1, %v1381_v53  ;;  %v1945_v0 = vld [vmem:[#allocation2 + $0x68] sm:$0xff]  ;;  %7378 = vmatmul.mubr.msk.bf16.gmra.mrb[148].mxu1 %vm493_vm0, %v7733_v45  ;;  %v1808_v1 = vpop.f32.mrb[43].mxu0  ;;  %v7746_v54 = vld [vmem:[%s7891_s6 + $0xb8] sm:$0xff]  }
 0x13d   : > { %2040 = vst.msk [vmem:[#allocation2 + $0x60] sm:$0xff] %vm791_vm1, %v1992_v58  ;;  %v1993_v2 = vadd.f32 %v1945_v0, %v1792_v39  ;;  %1427 = vst.msk [vmem:[#allocation2 + $0x88] sm:$0xff] %vm791_vm1, %v1379_v60  ;;  %7381 = vmatprep.mubr.msk.bf16.mxu1 %vm493_vm0, %v7735_v50  ;;  %v1344_v60 = vld [vmem:[#allocation2 + $0xf0] sm:$0xff] }
 0x13e   : > { %2043 = vst.msk [vmem:[#allocation2 + $0x78] sm:$0xff] %vm791_vm1, %v1995_v63  ;;  %7428 = vmatmul.mubr.msk.bf16.gmra.mrb[148].mxu0 %vm493_vm0, %v7736_v57  ;;  %v1342_v63 = vld [vmem:[#allocation2 + $0xe0] sm:$0xff]  ;;  %v7745_v0 = vld [vmem:[%s7946_s16 + $0xb4] sm:$0xff]  }
 0x13f   : > { %2041 = vst.msk [vmem:[#allocation2 + $0x68] sm:$0xff] %vm791_vm1, %v1993_v2  ;;  %v7171_v3 = vpop.f32.mrb[44].mxu1  ;;  %7431 = vmatprep.mubr.msk.bf16.mxu0 %vm493_vm0, %v7738_v62 }
 0x140   : > { %v1384_v5 = vadd.f32 %v7171_v3, %v1336_v4  ;;  %v1203_v6 = vpop.f32.mrb[45].mxu1  ;;  %v1345_v4 = vld [vmem:[#allocation2 + $0xf8] sm:$0xff] }
 0x141   : > { %v1950_v9 = vld [vmem:[#allocation2 + $0x90] sm:$0xff]  ;;  %v1382_v10 = vadd.f32 %v1334_v7, %v1203_v6  ;;  %v7172_v11 = vpop.f32.mrb[46].mxu1  ;;  %v7221_v13 = vpop.f32.mrb[44].mxu0  ;;  %v7747_v6 = vld [vmem:[%s7946_s16 + $0xbc] sm:$0xff]  }
 0x142   : > { %v1998_v15 = vadd.f32 %v7217_v49, %v1950_v9  ;;  %1432 = vst.msk [vmem:[#allocation2 + $0xb0] sm:$0xff] %vm791_vm1, %v1384_v5  ;;  %v1948_v16 = vld [vmem:[#allocation2 + $0x80] sm:$0xff]  ;;  %v1385_v17 = vadd.f32 %v7172_v11, %v1337_v12  ;;  %v1206_v18 = vpop.f32.mrb[47].mxu1  ;;  %v1821_v20 = vpop.f32.mrb[45].mxu0  ;;  %v7744_v49 = vld [vmem:[%s7891_s6 + $0xb0] sm:$0xff]   ;;  %v1343_v11 = vld [vmem:[#allocation2 + $0xe8] sm:$0xff] }
 0x143   : > { %v1996_v24 = vadd.f32 %v1948_v16, %v1805_v56  ;;  %1430 = vst.msk [vmem:[#allocation2 + $0xa0] sm:$0xff] %vm791_vm1, %v1382_v10  ;;  %v1951_v25 = vld [vmem:[#allocation2 + $0x98] sm:$0xff]  ;;  %v1383_v26 = vadd.f32 %v1335_v19, %v1206_v18  ;;  %v7222_v27 = vpop.f32.mrb[46].mxu0  ;;  %v7750_v18 = vld [vmem:[%s7891_s6 + $0xc8] sm:$0xff]  }
 0x144   : > { %2046 = vst.msk [vmem:[#allocation2 + $0x90] sm:$0xff] %vm791_vm1, %v1998_v15  ;;  %v1999_v29 = vadd.f32 %v7218_v61, %v1951_v25  ;;  %1433 = vst.msk [vmem:[#allocation2 + $0xb8] sm:$0xff] %vm791_vm1, %v1385_v17  ;;  %v1949_v30 = vld [vmem:[#allocation2 + $0x88] sm:$0xff]  ;;  %7382 = vmatmul.mubr.msk.bf16.gmra.mrb[152].mxu1 %vm493_vm0, %v7737_v8  ;;  %v1824_v31 = vpop.f32.mrb[47].mxu0 }
 0x145   : > { %2044 = vst.msk [vmem:[#allocation2 + $0x80] sm:$0xff] %vm791_vm1, %v1996_v24  ;;  %v1997_v32 = vadd.f32 %v1949_v30, %v1808_v1  ;;  %1431 = vst.msk [vmem:[#allocation2 + $0xa8] sm:$0xff] %vm791_vm1, %v1383_v26  ;;  %7385 = vmatprep.mubr.msk.bf16.mxu1 %vm493_vm0, %v7739_v14  ;;  %v1348_v26 = vld [vmem:[#allocation2 + $0x110] sm:$0xff]  ;;  %v7749_v30 = vld [vmem:[%s7946_s16 + $0xc4] sm:$0xff]  }
 0x146   : > { %2047 = vst.msk [vmem:[#allocation2 + $0x98] sm:$0xff] %vm791_vm1, %v1999_v29  ;;  %7432 = vmatmul.mubr.msk.bf16.gmra.mrb[152].mxu0 %vm493_vm0, %v7740_v23  ;;  %v1346_v29 = vld [vmem:[#allocation2 + $0x100] sm:$0xff] }
 0x147   : > { %2045 = vst.msk [vmem:[#allocation2 + $0x88] sm:$0xff] %vm791_vm1, %v1997_v32  ;;  %v7175_v33 = vpop.f32.mrb[48].mxu1  ;;  %7435 = vmatprep.mubr.msk.bf16.mxu0 %vm493_vm0, %v7742_v28 }
 0x148   : > { %v1388_v35 = vadd.f32 %v7175_v33, %v1340_v34  ;;  %v1219_v36 = vpop.f32.mrb[49].mxu1  ;;  %v1349_v34 = vld [vmem:[#allocation2 + $0x118] sm:$0xff] }
 0x149   : > { %v1954_v39 = vld [vmem:[#allocation2 + $0xb0] sm:$0xff]  ;;  %v1386_v40 = vadd.f32 %v1338_v37, %v1219_v36  ;;  %v7176_v41 = vpop.f32.mrb[50].mxu1  ;;  %v7225_v43 = vpop.f32.mrb[48].mxu0  ;;  %v7752_v36 = vld [vmem:[%s7938_s13 + $0x18] sm:$0xff]  }
 0x14a   : > { %v2002_v44 = vadd.f32 %v7221_v13, %v1954_v39  ;;  %1436 = vst.msk [vmem:[#allocation2 + $0xd0] sm:$0xff] %vm791_vm1, %v1388_v35  ;;  %v1952_v45 = vld [vmem:[#allocation2 + $0xa0] sm:$0xff]  ;;  %v1389_v46 = vadd.f32 %v7176_v41, %v1341_v42  ;;  %v1222_v47 = vpop.f32.mrb[51].mxu1  ;;  %v1837_v48 = vpop.f32.mrb[49].mxu0  ;;  %v1347_v41 = vld [vmem:[#allocation2 + $0x108] sm:$0xff] }
 0x14b   : > { %v2000_v50 = vadd.f32 %v1952_v45, %v1821_v20  ;;  %1434 = vst.msk [vmem:[#allocation2 + $0xc0] sm:$0xff] %vm791_vm1, %v1386_v40  ;;  %v1955_v51 = vld [vmem:[#allocation2 + $0xb8] sm:$0xff]  ;;  %v1387_v52 = vadd.f32 %v1339_v22, %v1222_v47  ;;  %v7226_v53 = vpop.f32.mrb[50].mxu0  ;;  %v7748_v13 = vld [vmem:[%s7891_s6 + $0xc0] sm:$0xff]  }
 0x14c   : > { %2050 = vst.msk [vmem:[#allocation2 + $0xb0] sm:$0xff] %vm791_vm1, %v2002_v44  ;;  %v2003_v55 = vadd.f32 %v7222_v27, %v1955_v51  ;;  %1437 = vst.msk [vmem:[#allocation2 + $0xd8] sm:$0xff] %vm791_vm1, %v1389_v46  ;;  %v1953_v56 = vld [vmem:[#allocation2 + $0xa8] sm:$0xff]  ;;  %7386 = vmatmul.mubr.msk.bf16.gmra.mrb[156].mxu1 %vm493_vm0, %v7741_v38  ;;  %v1840_v57 = vpop.f32.mrb[51].mxu0  ;;  %v7754_v47 = vld [vmem:[%s7946_s16 + $0x18] sm:$0xff]  }
 0x14d   : > { %2048 = vst.msk [vmem:[#allocation2 + $0xa0] sm:$0xff] %vm791_vm1, %v2000_v50  ;;  %v2001_v58 = vadd.f32 %v1953_v56, %v1824_v31  ;;  %1435 = vst.msk [vmem:[#allocation2 + $0xc8] sm:$0xff] %vm791_vm1, %v1387_v52  ;;  %7389 = vmatprep.mubr.msk.bf16.mxu1 %vm493_vm0, %v7743_v21  ;;  %v1352_v52 = vld [vmem:[#allocation2 + $0x130] sm:$0xff]  ;;  %v7753_v56 = vld [vmem:[%s7938_s13 + $0x20] sm:$0xff]  }
 0x14e   : > { %2051 = vst.msk [vmem:[#allocation2 + $0xb8] sm:$0xff] %vm791_vm1, %v2003_v55  ;;  %7436 = vmatmul.mubr.msk.bf16.gmra.mrb[156].mxu0 %vm493_vm0, %v7744_v49  ;;  %v1350_v55 = vld [vmem:[#allocation2 + $0x120] sm:$0xff] }
 0x14f   : > { %2049 = vst.msk [vmem:[#allocation2 + $0xa8] sm:$0xff] %vm791_vm1, %v2001_v58  ;;  %v7179_v59 = vpop.f32.mrb[52].mxu1  ;;  %7439 = vmatprep.mubr.msk.bf16.mxu0 %vm493_vm0, %v7746_v54 }
 0x150   : > { %v1392_v61 = vadd.f32 %v7179_v59, %v1344_v60  ;;  %v1235_v62 = vpop.f32.mrb[53].mxu1  ;;  %v1353_v60 = vld [vmem:[#allocation2 + $0x138] sm:$0xff] }
 0x151   : > { %v1958_v1 = vld [vmem:[#allocation2 + $0xd0] sm:$0xff]  ;;  %v1390_v2 = vadd.f32 %v1342_v63, %v1235_v62  ;;  %v7180_v3 = vpop.f32.mrb[54].mxu1  ;;  %v7229_v5 = vpop.f32.mrb[52].mxu0  ;;  %v7755_v62 = vld [vmem:[%s7938_s13 + $0x28] sm:$0xff]  }
 0x152   : > { %v2006_v7 = vadd.f32 %v7225_v43, %v1958_v1  ;;  %1440 = vst.msk [vmem:[#allocation2 + $0xf0] sm:$0xff] %vm791_vm1, %v1392_v61  ;;  %v1956_v8 = vld [vmem:[#allocation2 + $0xc0] sm:$0xff]  ;;  %v1393_v9 = vadd.f32 %v7180_v3, %v1345_v4  ;;  %v1238_v10 = vpop.f32.mrb[55].mxu1  ;;  %v1853_v12 = vpop.f32.mrb[53].mxu0  ;;  %v7751_v43 = vld [vmem:[%s7891_s6 + $0xd0] sm:$0xff]   ;;  %v1351_v3 = vld [vmem:[#allocation2 + $0x128] sm:$0xff] }
 0x153   : > { %v2004_v14 = vadd.f32 %v1956_v8, %v1837_v48  ;;  %1438 = vst.msk [vmem:[#allocation2 + $0xe0] sm:$0xff] %vm791_vm1, %v1390_v2  ;;  %v1959_v15 = vld [vmem:[#allocation2 + $0xd8] sm:$0xff]  ;;  %v1391_v16 = vadd.f32 %v1343_v11, %v1238_v10  ;;  %v7230_v17 = vpop.f32.mrb[54].mxu0  ;;  %v7758_v10 = vld [vmem:[%s7946_s16 + $0x28] sm:$0xff]   ;;  %s7550_s6 = smul.u32 192, %s8981_s18 }
 0x154   : > { %2054 = vst.msk [vmem:[#allocation2 + $0xd0] sm:$0xff] %vm791_vm1, %v2006_v7  ;;  %v2007_v19 = vadd.f32 %v7226_v53, %v1959_v15  ;;  %1441 = vst.msk [vmem:[#allocation2 + $0xf8] sm:$0xff] %vm791_vm1, %v1393_v9  ;;  %v1957_v20 = vld [vmem:[#allocation2 + $0xc8] sm:$0xff]  ;;  %7390 = vmatmul.mubr.msk.bf16.gmra.mrb[160].mxu1 %vm493_vm0, %v7745_v0  ;;  %v1856_v23 = vpop.f32.mrb[55].mxu0 }
 0x155   : > { %2052 = vst.msk [vmem:[#allocation2 + $0xc0] sm:$0xff] %vm791_vm1, %v2004_v14  ;;  %v2005_v24 = vadd.f32 %v1957_v20, %v1840_v57  ;;  %1439 = vst.msk [vmem:[#allocation2 + $0xe8] sm:$0xff] %vm791_vm1, %v1391_v16  ;;  %7393 = vmatprep.mubr.msk.bf16.mxu1 %vm493_vm0, %v7747_v6  ;;  %v1356_v16 = vld [vmem:[#allocation2 + $0x150] sm:$0xff]  ;;  %s8746_s8 = scalar_lea.vmem %s8975_s5, %s7550_s6 }
 0x156   : > { %2055 = vst.msk [vmem:[#allocation2 + $0xd8] sm:$0xff] %vm791_vm1, %v2007_v19  ;;  %7440 = vmatmul.mubr.msk.bf16.gmra.mrb[160].mxu0 %vm493_vm0, %v7748_v13  ;;  %v1354_v19 = vld [vmem:[#allocation2 + $0x140] sm:$0xff]  ;;  %v7757_v20 = vld [vmem:[%s7938_s13 + $0x30] sm:$0xff]  }
 0x157   : > { %2053 = vst.msk [vmem:[#allocation2 + $0xc8] sm:$0xff] %vm791_vm1, %v2005_v24  ;;  %v7183_v25 = vpop.f32.mrb[56].mxu1  ;;  %7443 = vmatprep.mubr.msk.bf16.mxu0 %vm493_vm0, %v7750_v18 }
 0x158   : > { %v1396_v27 = vadd.f32 %v7183_v25, %v1348_v26  ;;  %v1251_v28 = vpop.f32.mrb[57].mxu1  ;;  %v1357_v26 = vld [vmem:[#allocation2 + $0x158] sm:$0xff] }
 0x159   : > { %v1962_v31 = vld [vmem:[#allocation2 + $0xf0] sm:$0xff]  ;;  %v1394_v32 = vadd.f32 %v1346_v29, %v1251_v28  ;;  %v7184_v33 = vpop.f32.mrb[58].mxu1  ;;  %v7233_v35 = vpop.f32.mrb[56].mxu0  ;;  %v7759_v28 = vld [vmem:[%s7938_s13 + $0x38] sm:$0xff]  }
 0x15a   : > { %v2010_v37 = vadd.f32 %v7229_v5, %v1962_v31  ;;  %1444 = vst.msk [vmem:[#allocation2 + $0x110] sm:$0xff] %vm791_vm1, %v1396_v27  ;;  %v1960_v38 = vld [vmem:[#allocation2 + $0xe0] sm:$0xff]  ;;  %v1397_v39 = vadd.f32 %v7184_v33, %v1349_v34  ;;  %v1254_v40 = vpop.f32.mrb[59].mxu1  ;;  %v1869_v42 = vpop.f32.mrb[57].mxu0  ;;  %v1355_v33 = vld [vmem:[#allocation2 + $0x148] sm:$0xff] }
 0x15b   : > { %v2008_v21 = vadd.f32 %v1960_v38, %v1853_v12  ;;  %1442 = vst.msk [vmem:[#allocation2 + $0x100] sm:$0xff] %vm791_vm1, %v1394_v32  ;;  %v1963_v44 = vld [vmem:[#allocation2 + $0xf8] sm:$0xff]  ;;  %v1395_v45 = vadd.f32 %v1347_v41, %v1254_v40  ;;  %v7234_v46 = vpop.f32.mrb[58].mxu0  ;;  %v7756_v5 = vld [vmem:[%s7946_s16 + $0x20] sm:$0xff]  }
 0x15c   : > { %2058 = vst.msk [vmem:[#allocation2 + $0xf0] sm:$0xff] %vm791_vm1, %v2010_v37  ;;  %v2011_v22 = vadd.f32 %v7230_v17, %v1963_v44  ;;  %1445 = vst.msk [vmem:[#allocation2 + $0x118] sm:$0xff] %vm791_vm1, %v1397_v39  ;;  %v1961_v48 = vld [vmem:[#allocation2 + $0xe8] sm:$0xff]  ;;  %7394 = vmatmul.mubr.msk.bf16.gmra.mrb[164].mxu1 %vm493_vm0, %v7749_v30  ;;  %v1872_v49 = vpop.f32.mrb[59].mxu0  ;;  %v7762_v40 = vld [vmem:[%s7946_s16 + $0x38] sm:$0xff]  }
 0x15d   : > { %2056 = vst.msk [vmem:[#allocation2 + $0xe0] sm:$0xff] %vm791_vm1, %v2008_v21  ;;  %v2009_v50 = vadd.f32 %v1961_v48, %v1856_v23  ;;  %1443 = vst.msk [vmem:[#allocation2 + $0x108] sm:$0xff] %vm791_vm1, %v1395_v45  ;;  %7449 = vmatprep.mubr.msk.bf16.mxu1 %vm493_vm0, %v7752_v36  ;;  %v1360_v45 = vld [vmem:[#allocation2 + $0x170] sm:$0xff]  ;;  %v7761_v48 = vld [vmem:[%s7938_s13 + $0x40] sm:$0xff]  }
 0x15e   : > { %2059 = vst.msk [vmem:[#allocation2 + $0xf8] sm:$0xff] %vm791_vm1, %v2011_v22  ;;  %7444 = vmatmul.mubr.msk.bf16.gmra.mrb[164].mxu0 %vm493_vm0, %v7751_v43  ;;  %v1358_v22 = vld [vmem:[#allocation2 + $0x160] sm:$0xff] }
 0x15f   : > { %2057 = vst.msk [vmem:[#allocation2 + $0xe8] sm:$0xff] %vm791_vm1, %v2009_v50  ;;  %v7187_v51 = vpop.f32.mrb[60].mxu1  ;;  %7499 = vmatprep.mubr.msk.bf16.mxu0 %vm493_vm0, %v7754_v47 }
 0x160   : > { %v1400_v53 = vadd.f32 %v7187_v51, %v1352_v52  ;;  %v1267_v54 = vpop.f32.mrb[61].mxu1  ;;  %v1361_v52 = vld [vmem:[#allocation2 + $0x178] sm:$0xff] }
 0x161   : > { %v1966_v57 = vld [vmem:[#allocation2 + $0x110] sm:$0xff]  ;;  %v1398_v58 = vadd.f32 %v1350_v55, %v1267_v54  ;;  %v7188_v59 = vpop.f32.mrb[62].mxu1  ;;  %v7237_v61 = vpop.f32.mrb[60].mxu0  ;;  %v7763_v54 = vld [vmem:[%s7938_s13 + $0x48] sm:$0xff]  }
 0x162   : > { %v2014_v63 = vadd.f32 %v7233_v35, %v1966_v57  ;;  %1448 = vst.msk [vmem:[#allocation2 + $0x130] sm:$0xff] %vm791_vm1, %v1400_v53  ;;  %v1964_v0 = vld [vmem:[#allocation2 + $0x100] sm:$0xff]  ;;  %v1401_v1 = vadd.f32 %v7188_v59, %v1353_v60  ;;  %v1270_v2 = vpop.f32.mrb[63].mxu1  ;;  %v1885_v4 = vpop.f32.mrb[61].mxu0  ;;  %v7760_v35 = vld [vmem:[%s7946_s16 + $0x30] sm:$0xff]   ;;  %v1359_v59 = vld [vmem:[#allocation2 + $0x168] sm:$0xff] }
 0x163   : > { %v2012_v6 = vadd.f32 %v1964_v0, %v1869_v42  ;;  %1446 = vst.msk [vmem:[#allocation2 + $0x120] sm:$0xff] %vm791_vm1, %v1398_v58  ;;  %v1967_v7 = vld [vmem:[#allocation2 + $0x118] sm:$0xff]  ;;  %v1399_v8 = vadd.f32 %v1351_v3, %v1270_v2  ;;  %v7238_v9 = vpop.f32.mrb[62].mxu0  ;;  %v7766_v2 = vld [vmem:[%s7946_s16 + $0x48] sm:$0xff]  }
 0x164   : > { %2062 = vst.msk [vmem:[#allocation2 + $0x110] sm:$0xff] %vm791_vm1, %v2014_v63  ;;  %v2015_v11 = vadd.f32 %v7234_v46, %v1967_v7  ;;  %1449 = vst.msk [vmem:[#allocation2 + $0x138] sm:$0xff] %vm791_vm1, %v1401_v1  ;;  %v1965_v12 = vld [vmem:[#allocation2 + $0x108] sm:$0xff]  ;;  %7450 = vmatmul.mubr.msk.bf16.vlgmr.msra.gmra.mrb[168].mxu1 %vm493_vm0, %v7753_v56  ;;  %v1888_v13 = vpop.f32.mrb[63].mxu0 }
 0x165   : > { %2060 = vst.msk [vmem:[#allocation2 + $0x100] sm:$0xff] %vm791_vm1, %v2012_v6  ;;  %v2013_v14 = vadd.f32 %v1965_v12, %v1872_v49  ;;  %1447 = vst.msk [vmem:[#allocation2 + $0x128] sm:$0xff] %vm791_vm1, %v1399_v8  ;;  %7453 = vmatprep.mubr.msk.bf16.mxu1 %vm493_vm0, %v7755_v62  ;;  %v2552_v8 = vld [vmem:[#allocation2 + $0x10] sm:$0xff] }
 0x166   : > { %2063 = vst.msk [vmem:[#allocation2 + $0x118] sm:$0xff] %vm791_vm1, %v2015_v11  ;;  %7500 = vmatmul.mubr.msk.bf16.vlgmr.msra.gmra.mrb[168].mxu0 %vm493_vm0, %v7756_v5  ;;  %v2550_v11 = vld [vmem:[#allocation2] sm:$0xff]  ;;  %v7765_v12 = vld [vmem:[%s7938_s13 + $0x50] sm:$0xff]  }
 0x167   : > { %2061 = vst.msk [vmem:[#allocation2 + $0x108] sm:$0xff] %vm791_vm1, %v2013_v14  ;;  %v7191_v15 = vpop.f32.mrb[64].mxu1  ;;  %7503 = vmatprep.mubr.msk.bf16.mxu0 %vm493_vm0, %v7758_v10 }
 0x168   : > { %v1404_v17 = vadd.f32 %v7191_v15, %v1356_v16  ;;  %v1283_v18 = vpop.f32.mrb[65].mxu1  ;;  %v2553_v16 = vld [vmem:[#allocation2 + $0x18] sm:$0xff] }
 0x169   : > { %v1970_v23 = vld [vmem:[#allocation2 + $0x130] sm:$0xff]  ;;  %v1402_v24 = vadd.f32 %v1354_v19, %v1283_v18  ;;  %v7192_v25 = vpop.f32.mrb[66].mxu1  ;;  %v7241_v27 = vpop.f32.mrb[64].mxu0  ;;  %v7767_v18 = vld [vmem:[%s7938_s13 + $0x58] sm:$0xff]  }
 0x16a   : > { %v2018_v29 = vadd.f32 %v7237_v61, %v1970_v23  ;;  %1452 = vst.msk [vmem:[#allocation2 + $0x150] sm:$0xff] %vm791_vm1, %v1404_v17  ;;  %v1968_v30 = vld [vmem:[#allocation2 + $0x120] sm:$0xff]  ;;  %v1405_v31 = vadd.f32 %v7192_v25, %v1357_v26  ;;  %v1286_v32 = vpop.f32.mrb[67].mxu1  ;;  %v1901_v34 = vpop.f32.mrb[65].mxu0  ;;  %v2551_v25 = vld [vmem:[#allocation2 + $0x8] sm:$0xff] }
 0x16b   : > { %v2016_v36 = vadd.f32 %v1968_v30, %v1885_v4  ;;  %1450 = vst.msk [vmem:[#allocation2 + $0x140] sm:$0xff] %vm791_vm1, %v1402_v24  ;;  %v1971_v37 = vld [vmem:[#allocation2 + $0x138] sm:$0xff]  ;;  %v1403_v38 = vadd.f32 %v1355_v33, %v1286_v32  ;;  %v7242_v39 = vpop.f32.mrb[66].mxu0  ;;  %v7764_v61 = vld [vmem:[%s7946_s16 + $0x40] sm:$0xff]  }
 0x16c   : > { %2066 = vst.msk [vmem:[#allocation2 + $0x130] sm:$0xff] %vm791_vm1, %v2018_v29  ;;  %v2019_v41 = vadd.f32 %v7238_v9, %v1971_v37  ;;  %1453 = vst.msk [vmem:[#allocation2 + $0x158] sm:$0xff] %vm791_vm1, %v1405_v31  ;;  %v1969_v42 = vld [vmem:[#allocation2 + $0x128] sm:$0xff]  ;;  %7454 = vmatmul.mubr.msk.bf16.gmra.mrb[172].mxu1 %vm493_vm0, %v7757_v20  ;;  %v1904_v43 = vpop.f32.mrb[67].mxu0  ;;  %v7770_v32 = vld [vmem:[%s7946_s16 + $0x58] sm:$0xff]  }
 0x16d   : > { %2064 = vst.msk [vmem:[#allocation2 + $0x120] sm:$0xff] %vm791_vm1, %v2016_v36  ;;  %v2017_v21 = vadd.f32 %v1969_v42, %v1888_v13  ;;  %1451 = vst.msk [vmem:[#allocation2 + $0x148] sm:$0xff] %vm791_vm1, %v1403_v38  ;;  %7457 = vmatprep.mubr.msk.bf16.mxu1 %vm493_vm0, %v7759_v28  ;;  %v2556_v38 = vld [vmem:[#allocation2 + $0x30] sm:$0xff]  ;;  %v7769_v42 = vld [vmem:[%s7938_s13 + $0x60] sm:$0xff]  }
 0x16e   : > { %2067 = vst.msk [vmem:[#allocation2 + $0x138] sm:$0xff] %vm791_vm1, %v2019_v41  ;;  %7504 = vmatmul.mubr.msk.bf16.gmra.mrb[172].mxu0 %vm493_vm0, %v7760_v35  ;;  %v2554_v41 = vld [vmem:[#allocation2 + $0x20] sm:$0xff] }
 0x16f   : > { %2065 = vst.msk [vmem:[#allocation2 + $0x128] sm:$0xff] %vm791_vm1, %v2017_v21  ;;  %v7195_v44 = vpop.f32.mrb[68].mxu1  ;;  %7507 = vmatprep.mubr.msk.bf16.mxu0 %vm493_vm0, %v7762_v40 }
 0x170   : > { %v1408_v46 = vadd.f32 %v7195_v44, %v1360_v45  ;;  %v1299_v47 = vpop.f32.mrb[69].mxu1  ;;  %v2557_v45 = vld [vmem:[#allocation2 + $0x38] sm:$0xff] }
 0x171   : > { %v1974_v49 = vld [vmem:[#allocation2 + $0x150] sm:$0xff]  ;;  %v1406_v50 = vadd.f32 %v1358_v22, %v1299_v47  ;;  %v7196_v51 = vpop.f32.mrb[70].mxu1  ;;  %v7245_v53 = vpop.f32.mrb[68].mxu0  ;;  %v7771_v47 = vld [vmem:[%s7938_s13 + $0x68] sm:$0xff]  }
 0x172   : > { %v2022_v55 = vadd.f32 %v7241_v27, %v1974_v49  ;;  %1456 = vst.msk [vmem:[#allocation2 + $0x170] sm:$0xff] %vm791_vm1, %v1408_v46  ;;  %v1972_v56 = vld [vmem:[#allocation2 + $0x140] sm:$0xff]  ;;  %v1409_v57 = vadd.f32 %v7196_v51, %v1361_v52  ;;  %v1302_v58 = vpop.f32.mrb[71].mxu1  ;;  %v1917_v60 = vpop.f32.mrb[69].mxu0  ;;  %v7768_v27 = vld [vmem:[%s7946_s16 + $0x50] sm:$0xff]   ;;  %v2555_v51 = vld [vmem:[#allocation2 + $0x28] sm:$0xff] }
 0x173   : > { %v2020_v62 = vadd.f32 %v1972_v56, %v1901_v34  ;;  %1454 = vst.msk [vmem:[#allocation2 + $0x160] sm:$0xff] %vm791_vm1, %v1406_v50  ;;  %v1975_v63 = vld [vmem:[#allocation2 + $0x158] sm:$0xff]  ;;  %v1407_v0 = vadd.f32 %v1359_v59, %v1302_v58  ;;  %v7246_v1 = vpop.f32.mrb[70].mxu0  ;;  %v7774_v58 = vld [vmem:[%s7946_s16 + $0x68] sm:$0xff]  }
 0x174   : > { %2070 = vst.msk [vmem:[#allocation2 + $0x150] sm:$0xff] %vm791_vm1, %v2022_v55  ;;  %v2023_v3 = vadd.f32 %v7242_v39, %v1975_v63  ;;  %1457 = vst.msk [vmem:[#allocation2 + $0x178] sm:$0xff] %vm791_vm1, %v1409_v57  ;;  %v1973_v4 = vld [vmem:[#allocation2 + $0x148] sm:$0xff]  ;;  %7458 = vmatmul.mubr.msk.bf16.gmra.mrb[176].mxu1 %vm493_vm0, %v7761_v48  ;;  %v1920_v5 = vpop.f32.mrb[71].mxu0 }
 0x175   : > { %2068 = vst.msk [vmem:[#allocation2 + $0x140] sm:$0xff] %vm791_vm1, %v2020_v62  ;;  %v2021_v6 = vadd.f32 %v1973_v4, %v1904_v43  ;;  %1455 = vst.msk [vmem:[#allocation2 + $0x168] sm:$0xff] %vm791_vm1, %v1407_v0  ;;  %7461 = vmatprep.mubr.msk.bf16.mxu1 %vm493_vm0, %v7763_v54  ;;  %v2560_v0 = vld [vmem:[#allocation2 + $0x50] sm:$0xff] }
 0x176   : > { %2071 = vst.msk [vmem:[#allocation2 + $0x158] sm:$0xff] %vm791_vm1, %v2023_v3  ;;  %7508 = vmatmul.mubr.msk.bf16.gmra.mrb[176].mxu0 %vm493_vm0, %v7764_v61  ;;  %v2558_v3 = vld [vmem:[#allocation2 + $0x40] sm:$0xff]  ;;  %v7773_v4 = vld [vmem:[%s7938_s13 + $0x70] sm:$0xff]  }
 0x177   : > { %2069 = vst.msk [vmem:[#allocation2 + $0x148] sm:$0xff] %vm791_vm1, %v2021_v6  ;;  %v7251_v7 = vpop.f32.mrb[72].mxu1  ;;  %7511 = vmatprep.mubr.msk.bf16.mxu0 %vm493_vm0, %v7766_v2 }
 0x178   : > { %v2600_v9 = vadd.f32 %v7251_v7, %v2552_v8  ;;  %v2359_v10 = vpop.f32.mrb[73].mxu1  ;;  %v2561_v8 = vld [vmem:[#allocation2 + $0x58] sm:$0xff] }
 0x179   : > { %v1978_v13 = vld [vmem:[#allocation2 + $0x170] sm:$0xff]  ;;  %v2598_v14 = vadd.f32 %v2550_v11, %v2359_v10  ;;  %v7252_v15 = vpop.f32.mrb[74].mxu1  ;;  %v7301_v17 = vpop.f32.mrb[72].mxu0  ;;  %v7775_v10 = vld [vmem:[%s7938_s13 + $0x78] sm:$0xff]  }
 0x17a   : > { %v2026_v19 = vadd.f32 %v7245_v53, %v1978_v13  ;;  %v1976_v20 = vld [vmem:[#allocation2 + $0x160] sm:$0xff]  ;;  %2648 = vst.msk [vmem:[#allocation2 + $0x10] sm:$0xff] %vm791_vm1, %v2600_v9  ;;  %v2601_v23 = vadd.f32 %v7252_v15, %v2553_v16  ;;  %v2362_v24 = vpop.f32.mrb[75].mxu1  ;;  %v2977_v26 = vpop.f32.mrb[73].mxu0  ;;  %v2559_v15 = vld [vmem:[#allocation2 + $0x48] sm:$0xff] }
 0x17b   : > { %v2024_v28 = vadd.f32 %v1976_v20, %v1917_v60  ;;  %v1979_v29 = vld [vmem:[#allocation2 + $0x178] sm:$0xff]  ;;  %2646 = vst.msk [vmem:[#allocation2] sm:$0xff] %vm791_vm1, %v2598_v14  ;;  %v2599_v30 = vadd.f32 %v2551_v25, %v2362_v24  ;;  %v7302_v31 = vpop.f32.mrb[74].mxu0  ;;  %v7772_v53 = vld [vmem:[%s7946_s16 + $0x60] sm:$0xff]  }
 0x17c   : > { %2074 = vst.msk [vmem:[#allocation2 + $0x170] sm:$0xff] %vm791_vm1, %v2026_v19  ;;  %v2027_v33 = vadd.f32 %v7246_v1, %v1979_v29  ;;  %v1977_v34 = vld [vmem:[#allocation2 + $0x168] sm:$0xff]  ;;  %2649 = vst.msk [vmem:[#allocation2 + $0x18] sm:$0xff] %vm791_vm1, %v2601_v23  ;;  %7462 = vmatmul.mubr.msk.bf16.gmra.mrb[180].mxu1 %vm493_vm0, %v7765_v12  ;;  %v2980_v35 = vpop.f32.mrb[75].mxu0  ;;  %v7778_v24 = vld [vmem:[%s7946_s16 + $0x78] sm:$0xff]  }
 0x17d   : > { %2072 = vst.msk [vmem:[#allocation2 + $0x160] sm:$0xff] %vm791_vm1, %v2024_v28  ;;  %v2025_v36 = vadd.f32 %v1977_v34, %v1920_v5  ;;  %2647 = vst.msk [vmem:[#allocation2 + $0x8] sm:$0xff] %vm791_vm1, %v2599_v30  ;;  %7465 = vmatprep.mubr.msk.bf16.mxu1 %vm493_vm0, %v7767_v18  ;;  %v2564_v30 = vld [vmem:[#allocation2 + $0x70] sm:$0xff]  ;;  %v7777_v34 = vld [vmem:[%s7938_s13 + $0x80] sm:$0xff]  }
 0x17e   : > { %2075 = vst.msk [vmem:[#allocation2 + $0x178] sm:$0xff] %vm791_vm1, %v2027_v33  ;;  %7512 = vmatmul.mubr.msk.bf16.gmra.mrb[180].mxu0 %vm493_vm0, %v7768_v27  ;;  %v2562_v33 = vld [vmem:[#allocation2 + $0x60] sm:$0xff] }
 0x17f   : > { %2073 = vst.msk [vmem:[#allocation2 + $0x168] sm:$0xff] %vm791_vm1, %v2025_v36  ;;  %v7255_v37 = vpop.f32.mrb[76].mxu1  ;;  %7515 = vmatprep.mubr.msk.bf16.mxu0 %vm493_vm0, %v7770_v32 }
 0x180   : > { %v2604_v39 = vadd.f32 %v7255_v37, %v2556_v38  ;;  %v2375_v40 = vpop.f32.mrb[77].mxu1  ;;  %v2565_v38 = vld [vmem:[#allocation2 + $0x78] sm:$0xff] }
 0x181   : > { %v3170_v43 = vld [vmem:[#allocation2 + $0x10] sm:$0xff]  ;;  %v2602_v21 = vadd.f32 %v2554_v41, %v2375_v40  ;;  %v7256_v44 = vpop.f32.mrb[78].mxu1  ;;  %v7305_v46 = vpop.f32.mrb[76].mxu0  ;;  %v7779_v40 = vld [vmem:[%s7938_s13 + $0x88] sm:$0xff]  }
 0x182   : > { %v3218_v22 = vadd.f32 %v7301_v17, %v3170_v43  ;;  %2652 = vst.msk [vmem:[#allocation2 + $0x30] sm:$0xff] %vm791_vm1, %v2604_v39  ;;  %v3168_v48 = vld [vmem:[#allocation2] sm:$0xff]  ;;  %v2605_v49 = vadd.f32 %v7256_v44, %v2557_v45  ;;  %v2378_v50 = vpop.f32.mrb[79].mxu1  ;;  %v2993_v52 = vpop.f32.mrb[77].mxu0  ;;  %v7776_v17 = vld [vmem:[%s7946_s16 + $0x70] sm:$0xff]   ;;  %v2563_v44 = vld [vmem:[#allocation2 + $0x68] sm:$0xff] }
 0x183   : > { %v3216_v54 = vadd.f32 %v3168_v48, %v2977_v26  ;;  %2650 = vst.msk [vmem:[#allocation2 + $0x20] sm:$0xff] %vm791_vm1, %v2602_v21  ;;  %v3171_v55 = vld [vmem:[#allocation2 + $0x18] sm:$0xff]  ;;  %v2603_v56 = vadd.f32 %v2555_v51, %v2378_v50  ;;  %v7306_v57 = vpop.f32.mrb[78].mxu0  ;;  %v7782_v50 = vld [vmem:[%s7946_s16 + $0x88] sm:$0xff]  }
 0x184   : > { %3266 = vst.msk [vmem:[#allocation2 + $0x10] sm:$0xff] %vm791_vm1, %v3218_v22  ;;  %v3219_v59 = vadd.f32 %v7302_v31, %v3171_v55  ;;  %2653 = vst.msk [vmem:[#allocation2 + $0x38] sm:$0xff] %vm791_vm1, %v2605_v49  ;;  %v3169_v60 = vld [vmem:[#allocation2 + $0x8] sm:$0xff]  ;;  %7466 = vmatmul.mubr.msk.bf16.gmra.mrb[184].mxu1 %vm493_vm0, %v7769_v42  ;;  %v2996_v61 = vpop.f32.mrb[79].mxu0 }
 0x185   : > { %3264 = vst.msk [vmem:[#allocation2] sm:$0xff] %vm791_vm1, %v3216_v54  ;;  %v3217_v62 = vadd.f32 %v3169_v60, %v2980_v35  ;;  %2651 = vst.msk [vmem:[#allocation2 + $0x28] sm:$0xff] %vm791_vm1, %v2603_v56  ;;  %7469 = vmatprep.mubr.msk.bf16.mxu1 %vm493_vm0, %v7771_v47  ;;  %v2568_v56 = vld [vmem:[#allocation2 + $0x90] sm:$0xff] }
 0x186   : > { %3267 = vst.msk [vmem:[#allocation2 + $0x18] sm:$0xff] %vm791_vm1, %v3219_v59  ;;  %7516 = vmatmul.mubr.msk.bf16.gmra.mrb[184].mxu0 %vm493_vm0, %v7772_v53  ;;  %v2566_v59 = vld [vmem:[#allocation2 + $0x80] sm:$0xff]  ;;  %v7781_v60 = vld [vmem:[%s7938_s13 + $0x90] sm:$0xff]  }
 0x187   : > { %3265 = vst.msk [vmem:[#allocation2 + $0x8] sm:$0xff] %vm791_vm1, %v3217_v62  ;;  %v7259_v63 = vpop.f32.mrb[80].mxu1  ;;  %7519 = vmatprep.mubr.msk.bf16.mxu0 %vm493_vm0, %v7774_v58 }
 0x188   : > { %v2608_v1 = vadd.f32 %v7259_v63, %v2560_v0  ;;  %v2391_v2 = vpop.f32.mrb[81].mxu1  ;;  %v2569_v0 = vld [vmem:[#allocation2 + $0x98] sm:$0xff] }
 0x189   : > { %v3174_v5 = vld [vmem:[#allocation2 + $0x30] sm:$0xff]  ;;  %v2606_v6 = vadd.f32 %v2558_v3, %v2391_v2  ;;  %v7260_v7 = vpop.f32.mrb[82].mxu1  ;;  %v7309_v9 = vpop.f32.mrb[80].mxu0  ;;  %v7783_v2 = vld [vmem:[%s7938_s13 + $0x98] sm:$0xff]  }
 0x18a   : > { %v3222_v11 = vadd.f32 %v7305_v46, %v3174_v5  ;;  %2656 = vst.msk [vmem:[#allocation2 + $0x50] sm:$0xff] %vm791_vm1, %v2608_v1  ;;  %v3172_v12 = vld [vmem:[#allocation2 + $0x20] sm:$0xff]  ;;  %v2609_v13 = vadd.f32 %v7260_v7, %v2561_v8  ;;  %v2394_v14 = vpop.f32.mrb[83].mxu1  ;;  %v3009_v16 = vpop.f32.mrb[81].mxu0  ;;  %v2567_v7 = vld [vmem:[#allocation2 + $0x88] sm:$0xff] }
 0x18b   : > { %v3220_v18 = vadd.f32 %v3172_v12, %v2993_v52  ;;  %2654 = vst.msk [vmem:[#allocation2 + $0x40] sm:$0xff] %vm791_vm1, %v2606_v6  ;;  %v3175_v19 = vld [vmem:[#allocation2 + $0x38] sm:$0xff]  ;;  %v2607_v20 = vadd.f32 %v2559_v15, %v2394_v14  ;;  %v7310_v23 = vpop.f32.mrb[82].mxu0  ;;  %v7780_v46 = vld [vmem:[%s7946_s16 + $0x80] sm:$0xff]  }
 0x18c   : > { %3270 = vst.msk [vmem:[#allocation2 + $0x30] sm:$0xff] %vm791_vm1, %v3222_v11  ;;  %v3223_v25 = vadd.f32 %v7306_v57, %v3175_v19  ;;  %2657 = vst.msk [vmem:[#allocation2 + $0x58] sm:$0xff] %vm791_vm1, %v2609_v13  ;;  %v3173_v26 = vld [vmem:[#allocation2 + $0x28] sm:$0xff]  ;;  %7470 = vmatmul.mubr.msk.bf16.gmra.mrb[188].mxu1 %vm493_vm0, %v7773_v4  ;;  %v3012_v27 = vpop.f32.mrb[83].mxu0  ;;  %v7786_v14 = vld [vmem:[%s7946_s16 + $0x98] sm:$0xff]  }
 0x18d   : > { %3268 = vst.msk [vmem:[#allocation2 + $0x20] sm:$0xff] %vm791_vm1, %v3220_v18  ;;  %v3221_v28 = vadd.f32 %v3173_v26, %v2996_v61  ;;  %2655 = vst.msk [vmem:[#allocation2 + $0x48] sm:$0xff] %vm791_vm1, %v2607_v20  ;;  %7473 = vmatprep.mubr.msk.bf16.mxu1 %vm493_vm0, %v7775_v10  ;;  %v2572_v20 = vld [vmem:[#allocation2 + $0xb0] sm:$0xff]  ;;  %v7785_v26 = vld [vmem:[%s7938_s13 + $0xa0] sm:$0xff]  }
 0x18e   : > { %3271 = vst.msk [vmem:[#allocation2 + $0x38] sm:$0xff] %vm791_vm1, %v3223_v25  ;;  %7520 = vmatmul.mubr.msk.bf16.gmra.mrb[188].mxu0 %vm493_vm0, %v7776_v17  ;;  %v2570_v25 = vld [vmem:[#allocation2 + $0xa0] sm:$0xff] }
 0x18f   : > { %3269 = vst.msk [vmem:[#allocation2 + $0x28] sm:$0xff] %vm791_vm1, %v3221_v28  ;;  %v7263_v29 = vpop.f32.mrb[84].mxu1  ;;  %7523 = vmatprep.mubr.msk.bf16.mxu0 %vm493_vm0, %v7778_v24 }
 0x190   : > { %v2612_v31 = vadd.f32 %v7263_v29, %v2564_v30  ;;  %v2407_v32 = vpop.f32.mrb[85].mxu1  ;;  %v2573_v30 = vld [vmem:[#allocation2 + $0xb8] sm:$0xff] }
 0x191   : > { %v3178_v35 = vld [vmem:[#allocation2 + $0x50] sm:$0xff]  ;;  %v2610_v36 = vadd.f32 %v2562_v33, %v2407_v32  ;;  %v7264_v37 = vpop.f32.mrb[86].mxu1  ;;  %v7313_v39 = vpop.f32.mrb[84].mxu0  ;;  %v7787_v32 = vld [vmem:[%s7938_s13 + $0xa8] sm:$0xff]  }
 0x192   : > { %v3226_v41 = vadd.f32 %v7309_v9, %v3178_v35  ;;  %2660 = vst.msk [vmem:[#allocation2 + $0x70] sm:$0xff] %vm791_vm1, %v2612_v31  ;;  %v3176_v42 = vld [vmem:[#allocation2 + $0x40] sm:$0xff]  ;;  %v2613_v43 = vadd.f32 %v7264_v37, %v2565_v38  ;;  %v2410_v21 = vpop.f32.mrb[87].mxu1  ;;  %v3025_v45 = vpop.f32.mrb[85].mxu0  ;;  %v7784_v9 = vld [vmem:[%s7946_s16 + $0x90] sm:$0xff]   ;;  %v2571_v37 = vld [vmem:[#allocation2 + $0xa8] sm:$0xff] }
 0x193   : > { %v3224_v47 = vadd.f32 %v3176_v42, %v3009_v16  ;;  %2658 = vst.msk [vmem:[#allocation2 + $0x60] sm:$0xff] %vm791_vm1, %v2610_v36  ;;  %v3179_v22 = vld [vmem:[#allocation2 + $0x58] sm:$0xff]  ;;  %v2611_v48 = vadd.f32 %v2563_v44, %v2410_v21  ;;  %v7314_v49 = vpop.f32.mrb[86].mxu0  ;;  %v7790_v21 = vld [vmem:[%s7946_s16 + $0xa8] sm:$0xff]  }
 0x194   : > { %3274 = vst.msk [vmem:[#allocation2 + $0x50] sm:$0xff] %vm791_vm1, %v3226_v41  ;;  %v3227_v51 = vadd.f32 %v7310_v23, %v3179_v22  ;;  %2661 = vst.msk [vmem:[#allocation2 + $0x78] sm:$0xff] %vm791_vm1, %v2613_v43  ;;  %v3177_v52 = vld [vmem:[#allocation2 + $0x48] sm:$0xff]  ;;  %7474 = vmatmul.mubr.msk.bf16.gmra.mrb[192].mxu1 %vm493_vm0, %v7777_v34  ;;  %v3028_v53 = vpop.f32.mrb[87].mxu0 }
 0x195   : > { %3272 = vst.msk [vmem:[#allocation2 + $0x40] sm:$0xff] %vm791_vm1, %v3224_v47  ;;  %v3225_v54 = vadd.f32 %v3177_v52, %v3012_v27  ;;  %2659 = vst.msk [vmem:[#allocation2 + $0x68] sm:$0xff] %vm791_vm1, %v2611_v48  ;;  %7477 = vmatprep.mubr.msk.bf16.mxu1 %vm493_vm0, %v7779_v40  ;;  %v2576_v48 = vld [vmem:[#allocation2 + $0xd0] sm:$0xff] }
 0x196   : > { %3275 = vst.msk [vmem:[#allocation2 + $0x58] sm:$0xff] %vm791_vm1, %v3227_v51  ;;  %7524 = vmatmul.mubr.msk.bf16.gmra.mrb[192].mxu0 %vm493_vm0, %v7780_v46  ;;  %v2574_v51 = vld [vmem:[#allocation2 + $0xc0] sm:$0xff]  ;;  %v7789_v52 = vld [vmem:[%s7938_s13 + $0xb0] sm:$0xff]  }
 0x197   : > { %3273 = vst.msk [vmem:[#allocation2 + $0x48] sm:$0xff] %vm791_vm1, %v3225_v54  ;;  %v7267_v55 = vpop.f32.mrb[88].mxu1  ;;  %7527 = vmatprep.mubr.msk.bf16.mxu0 %vm493_vm0, %v7782_v50 }
 0x198   : > { %v2616_v57 = vadd.f32 %v7267_v55, %v2568_v56  ;;  %v2423_v58 = vpop.f32.mrb[89].mxu1  ;;  %v2577_v56 = vld [vmem:[#allocation2 + $0xd8] sm:$0xff] }
 0x199   : > { %v3182_v61 = vld [vmem:[#allocation2 + $0x70] sm:$0xff]  ;;  %v2614_v62 = vadd.f32 %v2566_v59, %v2423_v58  ;;  %v7268_v63 = vpop.f32.mrb[90].mxu1  ;;  %v7317_v1 = vpop.f32.mrb[88].mxu0  ;;  %v7791_v58 = vld [vmem:[%s7938_s13 + $0xb8] sm:$0xff]  }
 0x19a   : > { %v3230_v3 = vadd.f32 %v7313_v39, %v3182_v61  ;;  %2664 = vst.msk [vmem:[#allocation2 + $0x90] sm:$0xff] %vm791_vm1, %v2616_v57  ;;  %v3180_v4 = vld [vmem:[#allocation2 + $0x60] sm:$0xff]  ;;  %v2617_v5 = vadd.f32 %v7268_v63, %v2569_v0  ;;  %v2426_v6 = vpop.f32.mrb[91].mxu1  ;;  %v3041_v8 = vpop.f32.mrb[89].mxu0  ;;  %v2575_v63 = vld [vmem:[#allocation2 + $0xc8] sm:$0xff] }
 0x19b   : > { %v3228_v10 = vadd.f32 %v3180_v4, %v3025_v45  ;;  %2662 = vst.msk [vmem:[#allocation2 + $0x80] sm:$0xff] %vm791_vm1, %v2614_v62  ;;  %v3183_v11 = vld [vmem:[#allocation2 + $0x78] sm:$0xff]  ;;  %v2615_v12 = vadd.f32 %v2567_v7, %v2426_v6  ;;  %v7318_v13 = vpop.f32.mrb[90].mxu0  ;;  %v7788_v39 = vld [vmem:[%s7946_s16 + $0xa0] sm:$0xff]  }
 0x19c   : > { %3278 = vst.msk [vmem:[#allocation2 + $0x70] sm:$0xff] %vm791_vm1, %v3230_v3  ;;  %v3231_v15 = vadd.f32 %v7314_v49, %v3183_v11  ;;  %2665 = vst.msk [vmem:[#allocation2 + $0x98] sm:$0xff] %vm791_vm1, %v2617_v5  ;;  %v3181_v16 = vld [vmem:[#allocation2 + $0x68] sm:$0xff]  ;;  %7478 = vmatmul.mubr.msk.bf16.gmra.mrb[196].mxu1 %vm493_vm0, %v7781_v60  ;;  %v3044_v17 = vpop.f32.mrb[91].mxu0  ;;  %v7794_v6 = vld [vmem:[%s7946_s16 + $0xb8] sm:$0xff]  }
 0x19d   : > { %3276 = vst.msk [vmem:[#allocation2 + $0x60] sm:$0xff] %vm791_vm1, %v3228_v10  ;;  %v3229_v18 = vadd.f32 %v3181_v16, %v3028_v53  ;;  %2663 = vst.msk [vmem:[#allocation2 + $0x88] sm:$0xff] %vm791_vm1, %v2615_v12  ;;  %7481 = vmatprep.mubr.msk.bf16.mxu1 %vm493_vm0, %v7783_v2  ;;  %v2580_v12 = vld [vmem:[#allocation2 + $0xf0] sm:$0xff]  ;;  %v7793_v16 = vld [vmem:[%s7938_s13 + $0xc0] sm:$0xff]  }
 0x19e   : > { %3279 = vst.msk [vmem:[#allocation2 + $0x78] sm:$0xff] %vm791_vm1, %v3231_v15  ;;  %7528 = vmatmul.mubr.msk.bf16.gmra.mrb[196].mxu0 %vm493_vm0, %v7784_v9  ;;  %v2578_v15 = vld [vmem:[#allocation2 + $0xe0] sm:$0xff] }
 0x19f   : > { %3277 = vst.msk [vmem:[#allocation2 + $0x68] sm:$0xff] %vm791_vm1, %v3229_v18  ;;  %v7271_v19 = vpop.f32.mrb[92].mxu1  ;;  %7531 = vmatprep.mubr.msk.bf16.mxu0 %vm493_vm0, %v7786_v14 }
 0x1a0   : > { %v2620_v23 = vadd.f32 %v7271_v19, %v2572_v20  ;;  %v2439_v24 = vpop.f32.mrb[93].mxu1  ;;  %v2581_v20 = vld [vmem:[#allocation2 + $0xf8] sm:$0xff] }
 0x1a1   : > { %v3186_v27 = vld [vmem:[#allocation2 + $0x90] sm:$0xff]  ;;  %v2618_v28 = vadd.f32 %v2570_v25, %v2439_v24  ;;  %v7272_v29 = vpop.f32.mrb[94].mxu1  ;;  %v7321_v31 = vpop.f32.mrb[92].mxu0  ;;  %v7795_v24 = vld [vmem:[%s7938_s13 + $0xc8] sm:$0xff]  }
 0x1a2   : > { %v3234_v33 = vadd.f32 %v7317_v1, %v3186_v27  ;;  %2668 = vst.msk [vmem:[#allocation2 + $0xb0] sm:$0xff] %vm791_vm1, %v2620_v23  ;;  %v3184_v34 = vld [vmem:[#allocation2 + $0x80] sm:$0xff]  ;;  %v2621_v35 = vadd.f32 %v7272_v29, %v2573_v30  ;;  %v2442_v36 = vpop.f32.mrb[95].mxu1  ;;  %v3057_v38 = vpop.f32.mrb[93].mxu0  ;;  %v7792_v1 = vld [vmem:[%s7946_s16 + $0xb0] sm:$0xff]   ;;  %v2579_v29 = vld [vmem:[#allocation2 + $0xe8] sm:$0xff] }
 0x1a3   : > { %v3232_v40 = vadd.f32 %v3184_v34, %v3041_v8  ;;  %2666 = vst.msk [vmem:[#allocation2 + $0xa0] sm:$0xff] %vm791_vm1, %v2618_v28  ;;  %v3187_v41 = vld [vmem:[#allocation2 + $0x98] sm:$0xff]  ;;  %v2619_v42 = vadd.f32 %v2571_v37, %v2442_v36  ;;  %v7322_v43 = vpop.f32.mrb[94].mxu0  ;;  %v7798_v36 = vld [vmem:[%s7946_s16 + $0xc8] sm:$0xff]  }
 0x1a4   : > { %3282 = vst.msk [vmem:[#allocation2 + $0x90] sm:$0xff] %vm791_vm1, %v3234_v33  ;;  %v3235_v44 = vadd.f32 %v7318_v13, %v3187_v41  ;;  %2669 = vst.msk [vmem:[#allocation2 + $0xb8] sm:$0xff] %vm791_vm1, %v2621_v35  ;;  %v3185_v45 = vld [vmem:[#allocation2 + $0x88] sm:$0xff]  ;;  %7482 = vmatmul.mubr.msk.bf16.gmra.mrb[200].mxu1 %vm493_vm0, %v7785_v26  ;;  %v3060_v46 = vpop.f32.mrb[95].mxu0 }
 0x1a5   : > { %3280 = vst.msk [vmem:[#allocation2 + $0x80] sm:$0xff] %vm791_vm1, %v3232_v40  ;;  %v3233_v47 = vadd.f32 %v3185_v45, %v3044_v17  ;;  %2667 = vst.msk [vmem:[#allocation2 + $0xa8] sm:$0xff] %vm791_vm1, %v2619_v42  ;;  %7485 = vmatprep.mubr.msk.bf16.mxu1 %vm493_vm0, %v7787_v32  ;;  %v2584_v42 = vld [vmem:[#allocation2 + $0x110] sm:$0xff] }
 0x1a6   : > { %3283 = vst.msk [vmem:[#allocation2 + $0x98] sm:$0xff] %vm791_vm1, %v3235_v44  ;;  %7532 = vmatmul.mubr.msk.bf16.gmra.mrb[200].mxu0 %vm493_vm0, %v7788_v39  ;;  %v2582_v44 = vld [vmem:[#allocation2 + $0x100] sm:$0xff]  ;;  %v7797_v45 = vld [vmem:[%s7938_s13 + $0xd0] sm:$0xff]  }
 0x1a7   : > { %3281 = vst.msk [vmem:[#allocation2 + $0x88] sm:$0xff] %vm791_vm1, %v3233_v47  ;;  %v7275_v22 = vpop.f32.mrb[96].mxu1  ;;  %7535 = vmatprep.mubr.msk.bf16.mxu0 %vm493_vm0, %v7790_v21 }
 0x1a8   : > { %v2624_v49 = vadd.f32 %v7275_v22, %v2576_v48  ;;  %v2455_v50 = vpop.f32.mrb[97].mxu1  ;;  %v2585_v48 = vld [vmem:[#allocation2 + $0x118] sm:$0xff] }
 0x1a9   : > { %v3190_v53 = vld [vmem:[#allocation2 + $0xb0] sm:$0xff]  ;;  %v2622_v54 = vadd.f32 %v2574_v51, %v2455_v50  ;;  %v7276_v55 = vpop.f32.mrb[98].mxu1  ;;  %v7325_v57 = vpop.f32.mrb[96].mxu0 }
 0x1aa   : > { %v3238_v59 = vadd.f32 %v7321_v31, %v3190_v53  ;;  %2672 = vst.msk [vmem:[#allocation2 + $0xd0] sm:$0xff] %vm791_vm1, %v2624_v49  ;;  %v3188_v60 = vld [vmem:[#allocation2 + $0xa0] sm:$0xff]  ;;  %v2625_v61 = vadd.f32 %v7276_v55, %v2577_v56  ;;  %v2458_v62 = vpop.f32.mrb[99].mxu1  ;;  %v3073_v0 = vpop.f32.mrb[97].mxu0  ;;  %v7799_v56 = vld [vmem:[%s7946_s16 + $0xd0] sm:$0xff]  }
 0x1ab   : > { %v3236_v2 = vadd.f32 %v3188_v60, %v3057_v38  ;;  %2670 = vst.msk [vmem:[#allocation2 + $0xc0] sm:$0xff] %vm791_vm1, %v2622_v54  ;;  %v3191_v3 = vld [vmem:[#allocation2 + $0xb8] sm:$0xff]  ;;  %v2623_v4 = vadd.f32 %v2575_v63, %v2458_v62  ;;  %v7326_v5 = vpop.f32.mrb[98].mxu0  ;;  %v7796_v31 = vld [vmem:[%s7946_s16 + $0xc0] sm:$0xff]   ;;  %v2583_v54 = vld [vmem:[#allocation2 + $0x108] sm:$0xff] }
 0x1ac   : > { %3286 = vst.msk [vmem:[#allocation2 + $0xb0] sm:$0xff] %vm791_vm1, %v3238_v59  ;;  %v3239_v7 = vadd.f32 %v7322_v43, %v3191_v3  ;;  %2673 = vst.msk [vmem:[#allocation2 + $0xd8] sm:$0xff] %vm791_vm1, %v2625_v61  ;;  %v3189_v8 = vld [vmem:[#allocation2 + $0xa8] sm:$0xff]  ;;  %7486 = vmatmul.mubr.msk.bf16.gmra.mrb[204].mxu1 %vm493_vm0, %v7789_v52  ;;  %v3076_v9 = vpop.f32.mrb[99].mxu0 }
 0x1ad   : > { %3284 = vst.msk [vmem:[#allocation2 + $0xa0] sm:$0xff] %vm791_vm1, %v3236_v2  ;;  %v3237_v10 = vadd.f32 %v3189_v8, %v3060_v46  ;;  %2671 = vst.msk [vmem:[#allocation2 + $0xc8] sm:$0xff] %vm791_vm1, %v2623_v4  ;;  %7489 = vmatprep.mubr.msk.bf16.mxu1 %vm493_vm0, %v7791_v58  ;;  %v2588_v2 = vld [vmem:[#allocation2 + $0x130] sm:$0xff] }
 0x1ae   : > { %3287 = vst.msk [vmem:[#allocation2 + $0xb8] sm:$0xff] %vm791_vm1, %v3239_v7  ;;  %7536 = vmatmul.mubr.msk.bf16.gmra.mrb[204].mxu0 %vm493_vm0, %v7792_v1 }
 0x1af   : > { %3285 = vst.msk [vmem:[#allocation2 + $0xa8] sm:$0xff] %vm791_vm1, %v3237_v10  ;;  %v7279_v11 = vpop.f32.mrb[100].mxu1  ;;  %7539 = vmatprep.mubr.msk.bf16.mxu0 %vm493_vm0, %v7794_v6 }
 0x1b0   : > { %v2628_v13 = vadd.f32 %v7279_v11, %v2580_v12  ;;  %v2471_v14 = vpop.f32.mrb[101].mxu1 }
 0x1b1   : > { %v3194_v17 = vld [vmem:[#allocation2 + $0xd0] sm:$0xff]  ;;  %v2626_v18 = vadd.f32 %v2578_v15, %v2471_v14  ;;  %v7280_v19 = vpop.f32.mrb[102].mxu1  ;;  %v7329_v23 = vpop.f32.mrb[100].mxu0  ;;  %v2587_v15 = vld [vmem:[#allocation2 + $0x128] sm:$0xff] }
 0x1b2   : > { %v3242_v25 = vadd.f32 %v7325_v57, %v3194_v17  ;;  %2676 = vst.msk [vmem:[#allocation2 + $0xf0] sm:$0xff] %vm791_vm1, %v2628_v13  ;;  %v3192_v26 = vld [vmem:[#allocation2 + $0xc0] sm:$0xff]  ;;  %v2629_v27 = vadd.f32 %v7280_v19, %v2581_v20  ;;  %v2474_v28 = vpop.f32.mrb[103].mxu1  ;;  %v3089_v30 = vpop.f32.mrb[101].mxu0 }
 0x1b3   : > { %v3240_v32 = vadd.f32 %v3192_v26, %v3073_v0  ;;  %2674 = vst.msk [vmem:[#allocation2 + $0xe0] sm:$0xff] %vm791_vm1, %v2626_v18  ;;  %v3195_v33 = vld [vmem:[#allocation2 + $0xd8] sm:$0xff]  ;;  %v2627_v34 = vadd.f32 %v2579_v29, %v2474_v28  ;;  %v7330_v35 = vpop.f32.mrb[102].mxu0  ;;  %v2592_v28 = vld [vmem:[#allocation2 + $0x150] sm:$0xff] }
 0x1b4   : > { %3290 = vst.msk [vmem:[#allocation2 + $0xd0] sm:$0xff] %vm791_vm1, %v3242_v25  ;;  %v3243_v37 = vadd.f32 %v7326_v5, %v3195_v33  ;;  %2677 = vst.msk [vmem:[#allocation2 + $0xf8] sm:$0xff] %vm791_vm1, %v2629_v27  ;;  %v3193_v38 = vld [vmem:[#allocation2 + $0xc8] sm:$0xff]  ;;  %7490 = vmatmul.mubr.msk.bf16.gmra.mrb[208].mxu1 %vm493_vm0, %v7793_v16  ;;  %v3092_v39 = vpop.f32.mrb[103].mxu0  ;;  %v2586_v5 = vld [vmem:[#allocation2 + $0x120] sm:$0xff] }
 0x1b5   : > { %3288 = vst.msk [vmem:[#allocation2 + $0xc0] sm:$0xff] %vm791_vm1, %v3240_v32  ;;  %v3241_v40 = vadd.f32 %v3193_v38, %v3076_v9  ;;  %2675 = vst.msk [vmem:[#allocation2 + $0xe8] sm:$0xff] %vm791_vm1, %v2627_v34  ;;  %7493 = vmatprep.mubr.msk.bf16.mxu1 %vm493_vm0, %v7795_v24  ;;  %v2589_v9 = vld [vmem:[#allocation2 + $0x138] sm:$0xff] }
 0x1b6   : > { %3291 = vst.msk [vmem:[#allocation2 + $0xd8] sm:$0xff] %vm791_vm1, %v3243_v37  ;;  %7540 = vmatmul.mubr.msk.bf16.gmra.mrb[208].mxu0 %vm493_vm0, %v7796_v31  ;;  %v2590_v31 = vld [vmem:[#allocation2 + $0x140] sm:$0xff] }
 0x1b7   : > { %3289 = vst.msk [vmem:[#allocation2 + $0xc8] sm:$0xff] %vm791_vm1, %v3241_v40  ;;  %v7283_v41 = vpop.f32.mrb[104].mxu1  ;;  %7543 = vmatprep.mubr.msk.bf16.mxu0 %vm493_vm0, %v7798_v36 }
 0x1b8   : > { %v2632_v43 = vadd.f32 %v7283_v41, %v2584_v42  ;;  %v2487_v21 = vpop.f32.mrb[105].mxu1  ;;  %v2591_v41 = vld [vmem:[#allocation2 + $0x148] sm:$0xff] }
 0x1b9   : > { %v3198_v46 = vld [vmem:[#allocation2 + $0xf0] sm:$0xff]  ;;  %v2630_v47 = vadd.f32 %v2582_v44, %v2487_v21  ;;  %v7284_v22 = vpop.f32.mrb[106].mxu1  ;;  %v7333_v49 = vpop.f32.mrb[104].mxu0 }
 0x1ba   : > { %v3246_v50 = vadd.f32 %v7329_v23, %v3198_v46  ;;  %2680 = vst.msk [vmem:[#allocation2 + $0x110] sm:$0xff] %vm791_vm1, %v2632_v43  ;;  %v3196_v51 = vld [vmem:[#allocation2 + $0xe0] sm:$0xff]  ;;  %v2633_v52 = vadd.f32 %v7284_v22, %v2585_v48  ;;  %v2490_v53 = vpop.f32.mrb[107].mxu1  ;;  %v3105_v55 = vpop.f32.mrb[105].mxu0 }
 0x1bb   : > { %v3244_v57 = vadd.f32 %v3196_v51, %v3089_v30  ;;  %2678 = vst.msk [vmem:[#allocation2 + $0x100] sm:$0xff] %vm791_vm1, %v2630_v47  ;;  %v3199_v58 = vld [vmem:[#allocation2 + $0xf8] sm:$0xff]  ;;  %v2631_v59 = vadd.f32 %v2583_v54, %v2490_v53  ;;  %v7334_v60 = vpop.f32.mrb[106].mxu0  ;;  %v2594_v53 = vld [vmem:[#allocation2 + $0x160] sm:$0xff] }
 0x1bc   : > { %3294 = vst.msk [vmem:[#allocation2 + $0xf0] sm:$0xff] %vm791_vm1, %v3246_v50  ;;  %v3247_v61 = vadd.f32 %v7330_v35, %v3199_v58  ;;  %2681 = vst.msk [vmem:[#allocation2 + $0x118] sm:$0xff] %vm791_vm1, %v2633_v52  ;;  %v3197_v62 = vld [vmem:[#allocation2 + $0xe8] sm:$0xff]  ;;  %7494 = vmatmul.mubr.msk.bf16.gmra.mrb[212].mxu1 %vm493_vm0, %v7797_v45  ;;  %v3108_v63 = vpop.f32.mrb[107].mxu0  ;;  %v2593_v35 = vld [vmem:[#allocation2 + $0x158] sm:$0xff] }
 0x1bd   : > { %3292 = vst.msk [vmem:[#allocation2 + $0xe0] sm:$0xff] %vm791_vm1, %v3244_v57  ;;  %v3245_v0 = vadd.f32 %v3197_v62, %v3092_v39  ;;  %2679 = vst.msk [vmem:[#allocation2 + $0x108] sm:$0xff] %vm791_vm1, %v2631_v59  ;;  %v2596_v50 = vld [vmem:[#allocation2 + $0x170] sm:$0xff]  ;;  %v2597_v57 = vld [vmem:[#allocation2 + $0x178] sm:$0xff] }
 0x1be   : > { %3295 = vst.msk [vmem:[#allocation2 + $0xf8] sm:$0xff] %vm791_vm1, %v3247_v61  ;;  %7544 = vmatmul.mubr.msk.bf16.gmra.mrb[212].mxu0 %vm493_vm0, %v7799_v56 }
 0x1bf   : > { %3293 = vst.msk [vmem:[#allocation2 + $0xe8] sm:$0xff] %vm791_vm1, %v3245_v0  ;;  %v7287_v1 = vpop.f32.mrb[108].mxu1 }
 0x1c0   : > { %v2636_v3 = vadd.f32 %v7287_v1, %v2588_v2  ;;  %v2503_v4 = vpop.f32.mrb[109].mxu1 }
 0x1c1   : > { %v3202_v6 = vld [vmem:[#allocation2 + $0x110] sm:$0xff]  ;;  %v2634_v7 = vadd.f32 %v2586_v5, %v2503_v4  ;;  %v7288_v8 = vpop.f32.mrb[110].mxu1  ;;  %v7337_v10 = vpop.f32.mrb[108].mxu0 }
 0x1c2   : > { %v3250_v11 = vadd.f32 %v7333_v49, %v3202_v6  ;;  %2684 = vst.msk [vmem:[#allocation2 + $0x130] sm:$0xff] %vm791_vm1, %v2636_v3  ;;  %v3200_v12 = vld [vmem:[#allocation2 + $0x100] sm:$0xff]  ;;  %v2637_v13 = vadd.f32 %v7288_v8, %v2589_v9  ;;  %v2506_v14 = vpop.f32.mrb[111].mxu1  ;;  %v3121_v16 = vpop.f32.mrb[109].mxu0 }
 0x1c3   : > { %v3248_v17 = vadd.f32 %v3200_v12, %v3105_v55  ;;  %2682 = vst.msk [vmem:[#allocation2 + $0x120] sm:$0xff] %vm791_vm1, %v2634_v7  ;;  %v3203_v18 = vld [vmem:[#allocation2 + $0x118] sm:$0xff]  ;;  %v2635_v19 = vadd.f32 %v2587_v15, %v2506_v14  ;;  %v7338_v20 = vpop.f32.mrb[110].mxu0 }
 0x1c4   : > { %3298 = vst.msk [vmem:[#allocation2 + $0x110] sm:$0xff] %vm791_vm1, %v3250_v11  ;;  %v3251_v23 = vadd.f32 %v7334_v60, %v3203_v18  ;;  %2685 = vst.msk [vmem:[#allocation2 + $0x138] sm:$0xff] %vm791_vm1, %v2637_v13  ;;  %v3201_v24 = vld [vmem:[#allocation2 + $0x108] sm:$0xff]  ;;  %v3124_v25 = vpop.f32.mrb[111].mxu0  ;;  %v3786_v13 = vld [vmem:[#allocation2] sm:$0xff] }
 0x1c5   : > { %3296 = vst.msk [vmem:[#allocation2 + $0x100] sm:$0xff] %vm791_vm1, %v3248_v17  ;;  %v3249_v26 = vadd.f32 %v3201_v24, %v3108_v63  ;;  %2683 = vst.msk [vmem:[#allocation2 + $0x128] sm:$0xff] %vm791_vm1, %v2635_v19  ;;  %v2595_v63 = vld [vmem:[#allocation2 + $0x168] sm:$0xff]  ;;  %v3789_v17 = vld [vmem:[#allocation2 + $0x18] sm:$0xff] }
 0x1c6   : > { %3299 = vst.msk [vmem:[#allocation2 + $0x118] sm:$0xff] %vm791_vm1, %v3251_v23 }
 0x1c7   : > { %3297 = vst.msk [vmem:[#allocation2 + $0x108] sm:$0xff] %vm791_vm1, %v3249_v26  ;;  %v7291_v27 = vpop.f32.mrb[112].mxu1 }
 0x1c8   : > { %v2640_v29 = vadd.f32 %v7291_v27, %v2592_v28  ;;  %v2519_v30 = vpop.f32.mrb[113].mxu1 }
 0x1c9   : > { %v3206_v32 = vld [vmem:[#allocation2 + $0x130] sm:$0xff]  ;;  %v2638_v33 = vadd.f32 %v2590_v31, %v2519_v30  ;;  %v7292_v34 = vpop.f32.mrb[114].mxu1  ;;  %v7341_v36 = vpop.f32.mrb[112].mxu0 }
 0x1ca   : > { %v3254_v37 = vadd.f32 %v7337_v10, %v3206_v32  ;;  %2688 = vst.msk [vmem:[#allocation2 + $0x150] sm:$0xff] %vm791_vm1, %v2640_v29  ;;  %v3204_v38 = vld [vmem:[#allocation2 + $0x120] sm:$0xff]  ;;  %v2641_v39 = vadd.f32 %v7292_v34, %v2593_v35  ;;  %v2522_v40 = vpop.f32.mrb[115].mxu1  ;;  %v3137_v42 = vpop.f32.mrb[113].mxu0  ;;  %v3788_v10 = vld [vmem:[#allocation2 + $0x10] sm:$0xff] }
 0x1cb   : > { %v3252_v43 = vadd.f32 %v3204_v38, %v3121_v16  ;;  %2686 = vst.msk [vmem:[#allocation2 + $0x140] sm:$0xff] %vm791_vm1, %v2638_v33  ;;  %v3207_v21 = vld [vmem:[#allocation2 + $0x138] sm:$0xff]  ;;  %v2639_v44 = vadd.f32 %v2591_v41, %v2522_v40  ;;  %v7342_v45 = vpop.f32.mrb[114].mxu0 }
 0x1cc   : > { %3302 = vst.msk [vmem:[#allocation2 + $0x130] sm:$0xff] %vm791_vm1, %v3254_v37  ;;  %v3255_v46 = vadd.f32 %v7338_v20, %v3207_v21  ;;  %2689 = vst.msk [vmem:[#allocation2 + $0x158] sm:$0xff] %vm791_vm1, %v2641_v39  ;;  %v3205_v47 = vld [vmem:[#allocation2 + $0x128] sm:$0xff]  ;;  %v3140_v22 = vpop.f32.mrb[115].mxu0  ;;  %v3790_v39 = vld [vmem:[#allocation2 + $0x20] sm:$0xff] }
 0x1cd   : > { %3300 = vst.msk [vmem:[#allocation2 + $0x120] sm:$0xff] %vm791_vm1, %v3252_v43  ;;  %v3253_v48 = vadd.f32 %v3205_v47, %v3124_v25  ;;  %2687 = vst.msk [vmem:[#allocation2 + $0x148] sm:$0xff] %vm791_vm1, %v2639_v44  ;;  %v3787_v25 = vld [vmem:[#allocation2 + $0x8] sm:$0xff]  ;;  %v3793_v43 = vld [vmem:[#allocation2 + $0x38] sm:$0xff] }
 0x1ce   : > { %3303 = vst.msk [vmem:[#allocation2 + $0x138] sm:$0xff] %vm791_vm1, %v3255_v46 }
 0x1cf   : > { %3301 = vst.msk [vmem:[#allocation2 + $0x128] sm:$0xff] %vm791_vm1, %v3253_v48  ;;  %v7295_v49 = vpop.f32.mrb[116].mxu1 }
 0x1d0   : > { %v2644_v51 = vadd.f32 %v7295_v49, %v2596_v50  ;;  %v2535_v52 = vpop.f32.mrb[117].mxu1 }
 0x1d1   : > { %v3210_v54 = vld [vmem:[#allocation2 + $0x150] sm:$0xff]  ;;  %v2642_v55 = vadd.f32 %v2594_v53, %v2535_v52  ;;  %v7296_v56 = vpop.f32.mrb[118].mxu1  ;;  %v7345_v58 = vpop.f32.mrb[116].mxu0 }
 0x1d2   : > { %v3258_v59 = vadd.f32 %v7341_v36, %v3210_v54  ;;  %2692 = vst.msk [vmem:[#allocation2 + $0x170] sm:$0xff] %vm791_vm1, %v2644_v51  ;;  %v3208_v60 = vld [vmem:[#allocation2 + $0x140] sm:$0xff]  ;;  %v2645_v61 = vadd.f32 %v7296_v56, %v2597_v57  ;;  %v2538_v62 = vpop.f32.mrb[119].mxu1  ;;  %v3153_v0 = vpop.f32.mrb[117].mxu0  ;;  %v3792_v36 = vld [vmem:[#allocation2 + $0x30] sm:$0xff] }
 0x1d3   : > { %v3256_v1 = vadd.f32 %v3208_v60, %v3137_v42  ;;  %2690 = vst.msk [vmem:[#allocation2 + $0x160] sm:$0xff] %vm791_vm1, %v2642_v55  ;;  %v3211_v2 = vld [vmem:[#allocation2 + $0x158] sm:$0xff]  ;;  %v2643_v3 = vadd.f32 %v2595_v63, %v2538_v62  ;;  %v7346_v4 = vpop.f32.mrb[118].mxu0 }
 0x1d4   : > { %3306 = vst.msk [vmem:[#allocation2 + $0x150] sm:$0xff] %vm791_vm1, %v3258_v59  ;;  %v3259_v5 = vadd.f32 %v7342_v45, %v3211_v2  ;;  %2693 = vst.msk [vmem:[#allocation2 + $0x178] sm:$0xff] %vm791_vm1, %v2645_v61  ;;  %v3209_v6 = vld [vmem:[#allocation2 + $0x148] sm:$0xff]  ;;  %v3156_v7 = vpop.f32.mrb[119].mxu0  ;;  %v3794_v61 = vld [vmem:[#allocation2 + $0x40] sm:$0xff] }
 0x1d5   : > { %3304 = vst.msk [vmem:[#allocation2 + $0x140] sm:$0xff] %vm791_vm1, %v3256_v1  ;;  %v3257_v8 = vadd.f32 %v3209_v6, %v3140_v22  ;;  %2691 = vst.msk [vmem:[#allocation2 + $0x168] sm:$0xff] %vm791_vm1, %v2643_v3  ;;  %v3791_v22 = vld [vmem:[#allocation2 + $0x28] sm:$0xff]  ;;  %v3797_v1 = vld [vmem:[#allocation2 + $0x58] sm:$0xff] }
 0x1d6   : > { %3307 = vst.msk [vmem:[#allocation2 + $0x158] sm:$0xff] %vm791_vm1, %v3259_v5 }
 0x1d7   : > { %3305 = vst.msk [vmem:[#allocation2 + $0x148] sm:$0xff] %vm791_vm1, %v3257_v8  ;;  %v7351_v9 = vpop.f32.mrb[120].mxu1 }
 0x1d8   : > { %v3836_v11 = vadd.f32 %v7351_v9, %v3788_v10  ;;  %v3595_v12 = vpop.f32.mrb[121].mxu1 }
 0x1d9   : > { %v3214_v14 = vld [vmem:[#allocation2 + $0x170] sm:$0xff]  ;;  %v3834_v15 = vadd.f32 %v3786_v13, %v3595_v12  ;;  %v7352_v16 = vpop.f32.mrb[122].mxu1  ;;  %v7401_v18 = vpop.f32.mrb[120].mxu0 }
 0x1da   : > { %v3262_v19 = vadd.f32 %v7345_v58, %v3214_v14  ;;  %v3212_v20 = vld [vmem:[#allocation2 + $0x160] sm:$0xff]  ;;  %3884 = vst.msk [vmem:[#allocation2 + $0x10] sm:$0xff] %vm791_vm1, %v3836_v11  ;;  %v3837_v23 = vadd.f32 %v7352_v16, %v3789_v17  ;;  %v3598_v24 = vpop.f32.mrb[123].mxu1  ;;  %v4213_v26 = vpop.f32.mrb[121].mxu0  ;;  %v3796_v58 = vld [vmem:[#allocation2 + $0x50] sm:$0xff] }
 0x1db   : > { %v3260_v27 = vadd.f32 %v3212_v20, %v3153_v0  ;;  %v3215_v28 = vld [vmem:[#allocation2 + $0x178] sm:$0xff]  ;;  %3882 = vst.msk [vmem:[#allocation2] sm:$0xff] %vm791_vm1, %v3834_v15  ;;  %v3835_v29 = vadd.f32 %v3787_v25, %v3598_v24  ;;  %v7402_v30 = vpop.f32.mrb[122].mxu0 }
 0x1dc   : > { %3310 = vst.msk [vmem:[#allocation2 + $0x170] sm:$0xff] %vm791_vm1, %v3262_v19  ;;  %v3263_v31 = vadd.f32 %v7346_v4, %v3215_v28  ;;  %v3213_v32 = vld [vmem:[#allocation2 + $0x168] sm:$0xff]  ;;  %3885 = vst.msk [vmem:[#allocation2 + $0x18] sm:$0xff] %vm791_vm1, %v3837_v23  ;;  %v4216_v33 = vpop.f32.mrb[123].mxu0  ;;  %v3798_v23 = vld [vmem:[#allocation2 + $0x60] sm:$0xff] }
 0x1dd   : > { %3308 = vst.msk [vmem:[#allocation2 + $0x160] sm:$0xff] %vm791_vm1, %v3260_v27  ;;  %v3261_v34 = vadd.f32 %v3213_v32, %v3156_v7  ;;  %3883 = vst.msk [vmem:[#allocation2 + $0x8] sm:$0xff] %vm791_vm1, %v3835_v29  ;;  %v3795_v7 = vld [vmem:[#allocation2 + $0x48] sm:$0xff]  ;;  %v3801_v27 = vld [vmem:[#allocation2 + $0x78] sm:$0xff] }
 0x1de   : > { %3311 = vst.msk [vmem:[#allocation2 + $0x178] sm:$0xff] %vm791_vm1, %v3263_v31 }
 0x1df   : > { %3309 = vst.msk [vmem:[#allocation2 + $0x168] sm:$0xff] %vm791_vm1, %v3261_v34  ;;  %v7355_v35 = vpop.f32.mrb[124].mxu1 }
 0x1e0   : > { %v3840_v37 = vadd.f32 %v7355_v35, %v3792_v36  ;;  %v3611_v38 = vpop.f32.mrb[125].mxu1 }
 0x1e1   : > { %v4406_v40 = vld [vmem:[#allocation2 + $0x10] sm:$0xff]  ;;  %v3838_v41 = vadd.f32 %v3790_v39, %v3611_v38  ;;  %v7356_v42 = vpop.f32.mrb[126].mxu1  ;;  %v7405_v21 = vpop.f32.mrb[124].mxu0 }
 0x1e2   : > { %v4454_v44 = vadd.f32 %v7401_v18, %v4406_v40  ;;  %3888 = vst.msk [vmem:[#allocation2 + $0x30] sm:$0xff] %vm791_vm1, %v3840_v37  ;;  %v4404_v45 = vld [vmem:[#allocation2] sm:$0xff]  ;;  %v3841_v46 = vadd.f32 %v7356_v42, %v3793_v43  ;;  %v3614_v47 = vpop.f32.mrb[127].mxu1  ;;  %v4229_v48 = vpop.f32.mrb[125].mxu0  ;;  %v3800_v18 = vld [vmem:[#allocation2 + $0x70] sm:$0xff] }
 0x1e3   : > { %v4452_v49 = vadd.f32 %v4404_v45, %v4213_v26  ;;  %3886 = vst.msk [vmem:[#allocation2 + $0x20] sm:$0xff] %vm791_vm1, %v3838_v41  ;;  %v4407_v50 = vld [vmem:[#allocation2 + $0x18] sm:$0xff]  ;;  %v3839_v51 = vadd.f32 %v3791_v22, %v3614_v47  ;;  %v7406_v52 = vpop.f32.mrb[126].mxu0 }
 0x1e4   : > { %4502 = vst.msk [vmem:[#allocation2 + $0x10] sm:$0xff] %vm791_vm1, %v4454_v44  ;;  %v4455_v53 = vadd.f32 %v7402_v30, %v4407_v50  ;;  %3889 = vst.msk [vmem:[#allocation2 + $0x38] sm:$0xff] %vm791_vm1, %v3841_v46  ;;  %v4405_v54 = vld [vmem:[#allocation2 + $0x8] sm:$0xff]  ;;  %v4232_v55 = vpop.f32.mrb[127].mxu0  ;;  %v3802_v46 = vld [vmem:[#allocation2 + $0x80] sm:$0xff] }
 0x1e5   : > { %4500 = vst.msk [vmem:[#allocation2] sm:$0xff] %vm791_vm1, %v4452_v49  ;;  %v4453_v56 = vadd.f32 %v4405_v54, %v4216_v33  ;;  %3887 = vst.msk [vmem:[#allocation2 + $0x28] sm:$0xff] %vm791_vm1, %v3839_v51  ;;  %v3799_v33 = vld [vmem:[#allocation2 + $0x68] sm:$0xff]  ;;  %v3805_v49 = vld [vmem:[#allocation2 + $0x98] sm:$0xff] }
 0x1e6   : > { %4503 = vst.msk [vmem:[#allocation2 + $0x18] sm:$0xff] %vm791_vm1, %v4455_v53 }
 0x1e7   : > { %4501 = vst.msk [vmem:[#allocation2 + $0x8] sm:$0xff] %vm791_vm1, %v4453_v56  ;;  %v7359_v57 = vpop.f32.mrb[128].mxu1 }
 0x1e8   : > { %v3844_v59 = vadd.f32 %v7359_v57, %v3796_v58  ;;  %v3627_v60 = vpop.f32.mrb[129].mxu1 }
 0x1e9   : > { %v4410_v62 = vld [vmem:[#allocation2 + $0x30] sm:$0xff]  ;;  %v3842_v63 = vadd.f32 %v3794_v61, %v3627_v60  ;;  %v7360_v0 = vpop.f32.mrb[130].mxu1  ;;  %v7409_v2 = vpop.f32.mrb[128].mxu0 }
 0x1ea   : > { %v4458_v3 = vadd.f32 %v7405_v21, %v4410_v62  ;;  %3892 = vst.msk [vmem:[#allocation2 + $0x50] sm:$0xff] %vm791_vm1, %v3844_v59  ;;  %v4408_v4 = vld [vmem:[#allocation2 + $0x20] sm:$0xff]  ;;  %v3845_v5 = vadd.f32 %v7360_v0, %v3797_v1  ;;  %v3630_v6 = vpop.f32.mrb[131].mxu1  ;;  %v4245_v8 = vpop.f32.mrb[129].mxu0  ;;  %v3804_v21 = vld [vmem:[#allocation2 + $0x90] sm:$0xff] }
 0x1eb   : > { %v4456_v9 = vadd.f32 %v4408_v4, %v4229_v48  ;;  %3890 = vst.msk [vmem:[#allocation2 + $0x40] sm:$0xff] %vm791_vm1, %v3842_v63  ;;  %v4411_v10 = vld [vmem:[#allocation2 + $0x38] sm:$0xff]  ;;  %v3843_v11 = vadd.f32 %v3795_v7, %v3630_v6  ;;  %v7410_v12 = vpop.f32.mrb[130].mxu0 }
 0x1ec   : > { %4506 = vst.msk [vmem:[#allocation2 + $0x30] sm:$0xff] %vm791_vm1, %v4458_v3  ;;  %v4459_v13 = vadd.f32 %v7406_v52, %v4411_v10  ;;  %3893 = vst.msk [vmem:[#allocation2 + $0x58] sm:$0xff] %vm791_vm1, %v3845_v5  ;;  %v4409_v14 = vld [vmem:[#allocation2 + $0x28] sm:$0xff]  ;;  %v4248_v15 = vpop.f32.mrb[131].mxu0  ;;  %v3806_v5 = vld [vmem:[#allocation2 + $0xa0] sm:$0xff] }
 0x1ed   : > { %4504 = vst.msk [vmem:[#allocation2 + $0x20] sm:$0xff] %vm791_vm1, %v4456_v9  ;;  %v4457_v16 = vadd.f32 %v4409_v14, %v4232_v55  ;;  %3891 = vst.msk [vmem:[#allocation2 + $0x48] sm:$0xff] %vm791_vm1, %v3843_v11  ;;  %v3803_v55 = vld [vmem:[#allocation2 + $0x88] sm:$0xff]  ;;  %v3809_v9 = vld [vmem:[#allocation2 + $0xb8] sm:$0xff] }
 0x1ee   : > { %4507 = vst.msk [vmem:[#allocation2 + $0x38] sm:$0xff] %vm791_vm1, %v4459_v13 }
 0x1ef   : > { %4505 = vst.msk [vmem:[#allocation2 + $0x28] sm:$0xff] %vm791_vm1, %v4457_v16  ;;  %v7363_v17 = vpop.f32.mrb[132].mxu1 }
 0x1f0   : > { %v3848_v19 = vadd.f32 %v7363_v17, %v3800_v18  ;;  %v3643_v20 = vpop.f32.mrb[133].mxu1 }
 0x1f1   : > { %v4414_v24 = vld [vmem:[#allocation2 + $0x50] sm:$0xff]  ;;  %v3846_v25 = vadd.f32 %v3798_v23, %v3643_v20  ;;  %v7364_v26 = vpop.f32.mrb[134].mxu1  ;;  %v7413_v28 = vpop.f32.mrb[132].mxu0 }
 0x1f2   : > { %v4462_v29 = vadd.f32 %v7409_v2, %v4414_v24  ;;  %3896 = vst.msk [vmem:[#allocation2 + $0x70] sm:$0xff] %vm791_vm1, %v3848_v19  ;;  %v4412_v30 = vld [vmem:[#allocation2 + $0x40] sm:$0xff]  ;;  %v3849_v31 = vadd.f32 %v7364_v26, %v3801_v27  ;;  %v3646_v32 = vpop.f32.mrb[135].mxu1  ;;  %v4261_v34 = vpop.f32.mrb[133].mxu0  ;;  %v3808_v2 = vld [vmem:[#allocation2 + $0xb0] sm:$0xff] }
 0x1f3   : > { %v4460_v35 = vadd.f32 %v4412_v30, %v4245_v8  ;;  %3894 = vst.msk [vmem:[#allocation2 + $0x60] sm:$0xff] %vm791_vm1, %v3846_v25  ;;  %v4415_v36 = vld [vmem:[#allocation2 + $0x58] sm:$0xff]  ;;  %v3847_v37 = vadd.f32 %v3799_v33, %v3646_v32  ;;  %v7414_v38 = vpop.f32.mrb[134].mxu0 }
 0x1f4   : > { %4510 = vst.msk [vmem:[#allocation2 + $0x50] sm:$0xff] %vm791_vm1, %v4462_v29  ;;  %v4463_v39 = vadd.f32 %v7410_v12, %v4415_v36  ;;  %3897 = vst.msk [vmem:[#allocation2 + $0x78] sm:$0xff] %vm791_vm1, %v3849_v31  ;;  %v4413_v40 = vld [vmem:[#allocation2 + $0x48] sm:$0xff]  ;;  %v4264_v41 = vpop.f32.mrb[135].mxu0  ;;  %v3810_v31 = vld [vmem:[#allocation2 + $0xc0] sm:$0xff] }
 0x1f5   : > { %4508 = vst.msk [vmem:[#allocation2 + $0x40] sm:$0xff] %vm791_vm1, %v4460_v35  ;;  %v4461_v42 = vadd.f32 %v4413_v40, %v4248_v15  ;;  %3895 = vst.msk [vmem:[#allocation2 + $0x68] sm:$0xff] %vm791_vm1, %v3847_v37  ;;  %v3807_v15 = vld [vmem:[#allocation2 + $0xa8] sm:$0xff]  ;;  %v3813_v35 = vld [vmem:[#allocation2 + $0xd8] sm:$0xff] }
 0x1f6   : > { %4511 = vst.msk [vmem:[#allocation2 + $0x58] sm:$0xff] %vm791_vm1, %v4463_v39 }
 0x1f7   : > { %4509 = vst.msk [vmem:[#allocation2 + $0x48] sm:$0xff] %vm791_vm1, %v4461_v42  ;;  %v7367_v43 = vpop.f32.mrb[136].mxu1 }
 0x1f8   : > { %v3852_v44 = vadd.f32 %v7367_v43, %v3804_v21  ;;  %v3659_v45 = vpop.f32.mrb[137].mxu1 }
 0x1f9   : > { %v4418_v47 = vld [vmem:[#allocation2 + $0x70] sm:$0xff]  ;;  %v3850_v22 = vadd.f32 %v3802_v46, %v3659_v45  ;;  %v7368_v48 = vpop.f32.mrb[138].mxu1  ;;  %v7417_v50 = vpop.f32.mrb[136].mxu0 }
 0x1fa   : > { %v4466_v51 = vadd.f32 %v7413_v28, %v4418_v47  ;;  %3900 = vst.msk [vmem:[#allocation2 + $0x90] sm:$0xff] %vm791_vm1, %v3852_v44  ;;  %v4416_v52 = vld [vmem:[#allocation2 + $0x60] sm:$0xff]  ;;  %v3853_v53 = vadd.f32 %v7368_v48, %v3805_v49  ;;  %v3662_v54 = vpop.f32.mrb[139].mxu1  ;;  %v4277_v56 = vpop.f32.mrb[137].mxu0  ;;  %v3812_v28 = vld [vmem:[#allocation2 + $0xd0] sm:$0xff] }
 0x1fb   : > { %v4464_v57 = vadd.f32 %v4416_v52, %v4261_v34  ;;  %3898 = vst.msk [vmem:[#allocation2 + $0x80] sm:$0xff] %vm791_vm1, %v3850_v22  ;;  %v4419_v58 = vld [vmem:[#allocation2 + $0x78] sm:$0xff]  ;;  %v3851_v59 = vadd.f32 %v3803_v55, %v3662_v54  ;;  %v7418_v60 = vpop.f32.mrb[138].mxu0 }
 0x1fc   : > { %4514 = vst.msk [vmem:[#allocation2 + $0x70] sm:$0xff] %vm791_vm1, %v4466_v51  ;;  %v4467_v61 = vadd.f32 %v7414_v38, %v4419_v58  ;;  %3901 = vst.msk [vmem:[#allocation2 + $0x98] sm:$0xff] %vm791_vm1, %v3853_v53  ;;  %v4417_v62 = vld [vmem:[#allocation2 + $0x68] sm:$0xff]  ;;  %v4280_v63 = vpop.f32.mrb[139].mxu0  ;;  %v3814_v53 = vld [vmem:[#allocation2 + $0xe0] sm:$0xff] }
 0x1fd   : > { %4512 = vst.msk [vmem:[#allocation2 + $0x60] sm:$0xff] %vm791_vm1, %v4464_v57  ;;  %v4465_v0 = vadd.f32 %v4417_v62, %v4264_v41  ;;  %3899 = vst.msk [vmem:[#allocation2 + $0x88] sm:$0xff] %vm791_vm1, %v3851_v59  ;;  %v3811_v41 = vld [vmem:[#allocation2 + $0xc8] sm:$0xff]  ;;  %v3817_v57 = vld [vmem:[#allocation2 + $0xf8] sm:$0xff] }
 0x1fe   : > { %4515 = vst.msk [vmem:[#allocation2 + $0x78] sm:$0xff] %vm791_vm1, %v4467_v61 }
 0x1ff   : > { %4513 = vst.msk [vmem:[#allocation2 + $0x68] sm:$0xff] %vm791_vm1, %v4465_v0  ;;  %v7371_v1 = vpop.f32.mrb[140].mxu1 }
 0x200   : > { %v3856_v3 = vadd.f32 %v7371_v1, %v3808_v2  ;;  %v3675_v4 = vpop.f32.mrb[141].mxu1 }
 0x201   : > { %v4422_v6 = vld [vmem:[#allocation2 + $0x90] sm:$0xff]  ;;  %v3854_v7 = vadd.f32 %v3806_v5, %v3675_v4  ;;  %v7372_v8 = vpop.f32.mrb[142].mxu1  ;;  %v7421_v10 = vpop.f32.mrb[140].mxu0 }
 0x202   : > { %v4470_v11 = vadd.f32 %v7417_v50, %v4422_v6  ;;  %3904 = vst.msk [vmem:[#allocation2 + $0xb0] sm:$0xff] %vm791_vm1, %v3856_v3  ;;  %v4420_v12 = vld [vmem:[#allocation2 + $0x80] sm:$0xff]  ;;  %v3857_v13 = vadd.f32 %v7372_v8, %v3809_v9  ;;  %v3678_v14 = vpop.f32.mrb[143].mxu1  ;;  %v4293_v16 = vpop.f32.mrb[141].mxu0  ;;  %v3816_v50 = vld [vmem:[#allocation2 + $0xf0] sm:$0xff] }
 0x203   : > { %v4468_v17 = vadd.f32 %v4420_v12, %v4277_v56  ;;  %3902 = vst.msk [vmem:[#allocation2 + $0xa0] sm:$0xff] %vm791_vm1, %v3854_v7  ;;  %v4423_v18 = vld [vmem:[#allocation2 + $0x98] sm:$0xff]  ;;  %v3855_v19 = vadd.f32 %v3807_v15, %v3678_v14  ;;  %v7422_v20 = vpop.f32.mrb[142].mxu0 }
 0x204   : > { %4518 = vst.msk [vmem:[#allocation2 + $0x90] sm:$0xff] %vm791_vm1, %v4470_v11  ;;  %v4471_v23 = vadd.f32 %v7418_v60, %v4423_v18  ;;  %3905 = vst.msk [vmem:[#allocation2 + $0xb8] sm:$0xff] %vm791_vm1, %v3857_v13  ;;  %v4421_v24 = vld [vmem:[#allocation2 + $0x88] sm:$0xff]  ;;  %v4296_v25 = vpop.f32.mrb[143].mxu0  ;;  %v3818_v13 = vld [vmem:[#allocation2 + $0x100] sm:$0xff] }
 0x205   : > { %4516 = vst.msk [vmem:[#allocation2 + $0x80] sm:$0xff] %vm791_vm1, %v4468_v17  ;;  %v4469_v26 = vadd.f32 %v4421_v24, %v4280_v63  ;;  %3903 = vst.msk [vmem:[#allocation2 + $0xa8] sm:$0xff] %vm791_vm1, %v3855_v19  ;;  %v3815_v63 = vld [vmem:[#allocation2 + $0xe8] sm:$0xff]  ;;  %v3821_v17 = vld [vmem:[#allocation2 + $0x118] sm:$0xff] }
 0x206   : > { %4519 = vst.msk [vmem:[#allocation2 + $0x98] sm:$0xff] %vm791_vm1, %v4471_v23 }
 0x207   : > { %4517 = vst.msk [vmem:[#allocation2 + $0x88] sm:$0xff] %vm791_vm1, %v4469_v26  ;;  %v7375_v27 = vpop.f32.mrb[144].mxu1 }
 0x208   : > { %v3860_v29 = vadd.f32 %v7375_v27, %v3812_v28  ;;  %v3691_v30 = vpop.f32.mrb[145].mxu1 }
 0x209   : > { %v4426_v32 = vld [vmem:[#allocation2 + $0xb0] sm:$0xff]  ;;  %v3858_v33 = vadd.f32 %v3810_v31, %v3691_v30  ;;  %v7376_v34 = vpop.f32.mrb[146].mxu1  ;;  %v7425_v36 = vpop.f32.mrb[144].mxu0 }
 0x20a   : > { %v4474_v37 = vadd.f32 %v7421_v10, %v4426_v32  ;;  %3908 = vst.msk [vmem:[#allocation2 + $0xd0] sm:$0xff] %vm791_vm1, %v3860_v29  ;;  %v4424_v38 = vld [vmem:[#allocation2 + $0xa0] sm:$0xff]  ;;  %v3861_v39 = vadd.f32 %v7376_v34, %v3813_v35  ;;  %v3694_v40 = vpop.f32.mrb[147].mxu1  ;;  %v4309_v42 = vpop.f32.mrb[145].mxu0  ;;  %v3820_v10 = vld [vmem:[#allocation2 + $0x110] sm:$0xff] }
 0x20b   : > { %v4472_v43 = vadd.f32 %v4424_v38, %v4293_v16  ;;  %3906 = vst.msk [vmem:[#allocation2 + $0xc0] sm:$0xff] %vm791_vm1, %v3858_v33  ;;  %v4427_v21 = vld [vmem:[#allocation2 + $0xb8] sm:$0xff]  ;;  %v3859_v44 = vadd.f32 %v3811_v41, %v3694_v40  ;;  %v7426_v45 = vpop.f32.mrb[146].mxu0 }
 0x20c   : > { %4522 = vst.msk [vmem:[#allocation2 + $0xb0] sm:$0xff] %vm791_vm1, %v4474_v37  ;;  %v4475_v46 = vadd.f32 %v7422_v20, %v4427_v21  ;;  %3909 = vst.msk [vmem:[#allocation2 + $0xd8] sm:$0xff] %vm791_vm1, %v3861_v39  ;;  %v4425_v47 = vld [vmem:[#allocation2 + $0xa8] sm:$0xff]  ;;  %v4312_v22 = vpop.f32.mrb[147].mxu0  ;;  %v3822_v39 = vld [vmem:[#allocation2 + $0x120] sm:$0xff] }
 0x20d   : > { %4520 = vst.msk [vmem:[#allocation2 + $0xa0] sm:$0xff] %vm791_vm1, %v4472_v43  ;;  %v4473_v48 = vadd.f32 %v4425_v47, %v4296_v25  ;;  %3907 = vst.msk [vmem:[#allocation2 + $0xc8] sm:$0xff] %vm791_vm1, %v3859_v44  ;;  %v3819_v25 = vld [vmem:[#allocation2 + $0x108] sm:$0xff]  ;;  %v3825_v43 = vld [vmem:[#allocation2 + $0x138] sm:$0xff] }
 0x20e   : > { %4523 = vst.msk [vmem:[#allocation2 + $0xb8] sm:$0xff] %vm791_vm1, %v4475_v46 }
 0x20f   : > { %4521 = vst.msk [vmem:[#allocation2 + $0xa8] sm:$0xff] %vm791_vm1, %v4473_v48  ;;  %v7379_v49 = vpop.f32.mrb[148].mxu1 }
 0x210   : > { %v3864_v51 = vadd.f32 %v7379_v49, %v3816_v50  ;;  %v3707_v52 = vpop.f32.mrb[149].mxu1 }
 0x211   : > { %v4430_v54 = vld [vmem:[#allocation2 + $0xd0] sm:$0xff]  ;;  %v3862_v55 = vadd.f32 %v3814_v53, %v3707_v52  ;;  %v7380_v56 = vpop.f32.mrb[150].mxu1  ;;  %v7429_v58 = vpop.f32.mrb[148].mxu0 }
 0x212   : > { %v4478_v59 = vadd.f32 %v7425_v36, %v4430_v54  ;;  %3912 = vst.msk [vmem:[#allocation2 + $0xf0] sm:$0xff] %vm791_vm1, %v3864_v51  ;;  %v4428_v60 = vld [vmem:[#allocation2 + $0xc0] sm:$0xff]  ;;  %v3865_v61 = vadd.f32 %v7380_v56, %v3817_v57  ;;  %v3710_v62 = vpop.f32.mrb[151].mxu1  ;;  %v4325_v0 = vpop.f32.mrb[149].mxu0  ;;  %v3824_v36 = vld [vmem:[#allocation2 + $0x130] sm:$0xff] }
 0x213   : > { %v4476_v1 = vadd.f32 %v4428_v60, %v4309_v42  ;;  %3910 = vst.msk [vmem:[#allocation2 + $0xe0] sm:$0xff] %vm791_vm1, %v3862_v55  ;;  %v4431_v2 = vld [vmem:[#allocation2 + $0xd8] sm:$0xff]  ;;  %v3863_v3 = vadd.f32 %v3815_v63, %v3710_v62  ;;  %v7430_v4 = vpop.f32.mrb[150].mxu0 }
 0x214   : > { %4526 = vst.msk [vmem:[#allocation2 + $0xd0] sm:$0xff] %vm791_vm1, %v4478_v59  ;;  %v4479_v5 = vadd.f32 %v7426_v45, %v4431_v2  ;;  %3913 = vst.msk [vmem:[#allocation2 + $0xf8] sm:$0xff] %vm791_vm1, %v3865_v61  ;;  %v4429_v6 = vld [vmem:[#allocation2 + $0xc8] sm:$0xff]  ;;  %v4328_v7 = vpop.f32.mrb[151].mxu0  ;;  %v3826_v61 = vld [vmem:[#allocation2 + $0x140] sm:$0xff] }
 0x215   : > { %4524 = vst.msk [vmem:[#allocation2 + $0xc0] sm:$0xff] %vm791_vm1, %v4476_v1  ;;  %v4477_v8 = vadd.f32 %v4429_v6, %v4312_v22  ;;  %3911 = vst.msk [vmem:[#allocation2 + $0xe8] sm:$0xff] %vm791_vm1, %v3863_v3  ;;  %v3823_v22 = vld [vmem:[#allocation2 + $0x128] sm:$0xff]  ;;  %v3829_v1 = vld [vmem:[#allocation2 + $0x158] sm:$0xff] }
 0x216   : > { %4527 = vst.msk [vmem:[#allocation2 + $0xd8] sm:$0xff] %vm791_vm1, %v4479_v5 }
 0x217   : > { %4525 = vst.msk [vmem:[#allocation2 + $0xc8] sm:$0xff] %vm791_vm1, %v4477_v8  ;;  %v7383_v9 = vpop.f32.mrb[152].mxu1 }
 0x218   : > { %v3868_v11 = vadd.f32 %v7383_v9, %v3820_v10  ;;  %v3723_v12 = vpop.f32.mrb[153].mxu1 }
 0x219   : > { %v4434_v14 = vld [vmem:[#allocation2 + $0xf0] sm:$0xff]  ;;  %v3866_v15 = vadd.f32 %v3818_v13, %v3723_v12  ;;  %v7384_v16 = vpop.f32.mrb[154].mxu1  ;;  %v7433_v18 = vpop.f32.mrb[152].mxu0 }
 0x21a   : > { %v4482_v19 = vadd.f32 %v7429_v58, %v4434_v14  ;;  %3916 = vst.msk [vmem:[#allocation2 + $0x110] sm:$0xff] %vm791_vm1, %v3868_v11  ;;  %v4432_v20 = vld [vmem:[#allocation2 + $0xe0] sm:$0xff]  ;;  %v3869_v23 = vadd.f32 %v7384_v16, %v3821_v17  ;;  %v3726_v24 = vpop.f32.mrb[155].mxu1  ;;  %v4341_v26 = vpop.f32.mrb[153].mxu0  ;;  %v3828_v58 = vld [vmem:[#allocation2 + $0x150] sm:$0xff] }
 0x21b   : > { %v4480_v27 = vadd.f32 %v4432_v20, %v4325_v0  ;;  %3914 = vst.msk [vmem:[#allocation2 + $0x100] sm:$0xff] %vm791_vm1, %v3866_v15  ;;  %v4435_v28 = vld [vmem:[#allocation2 + $0xf8] sm:$0xff]  ;;  %v3867_v29 = vadd.f32 %v3819_v25, %v3726_v24  ;;  %v7434_v30 = vpop.f32.mrb[154].mxu0 }
 0x21c   : > { %4530 = vst.msk [vmem:[#allocation2 + $0xf0] sm:$0xff] %vm791_vm1, %v4482_v19  ;;  %v4483_v31 = vadd.f32 %v7430_v4, %v4435_v28  ;;  %3917 = vst.msk [vmem:[#allocation2 + $0x118] sm:$0xff] %vm791_vm1, %v3869_v23  ;;  %v4433_v32 = vld [vmem:[#allocation2 + $0xe8] sm:$0xff]  ;;  %v4344_v33 = vpop.f32.mrb[155].mxu0  ;;  %v3830_v23 = vld [vmem:[#allocation2 + $0x160] sm:$0xff] }
 0x21d   : > { %4528 = vst.msk [vmem:[#allocation2 + $0xe0] sm:$0xff] %vm791_vm1, %v4480_v27  ;;  %v4481_v34 = vadd.f32 %v4433_v32, %v4328_v7  ;;  %3915 = vst.msk [vmem:[#allocation2 + $0x108] sm:$0xff] %vm791_vm1, %v3867_v29  ;;  %v3827_v7 = vld [vmem:[#allocation2 + $0x148] sm:$0xff]  ;;  %v3833_v27 = vld [vmem:[#allocation2 + $0x178] sm:$0xff] }
 0x21e   : > { %4531 = vst.msk [vmem:[#allocation2 + $0xf8] sm:$0xff] %vm791_vm1, %v4483_v31 }
 0x21f   : > { %4529 = vst.msk [vmem:[#allocation2 + $0xe8] sm:$0xff] %vm791_vm1, %v4481_v34  ;;  %v7387_v35 = vpop.f32.mrb[156].mxu1 }
 0x220   : > { %v3872_v37 = vadd.f32 %v7387_v35, %v3824_v36  ;;  %v3739_v38 = vpop.f32.mrb[157].mxu1 }
 0x221   : > { %v4438_v40 = vld [vmem:[#allocation2 + $0x110] sm:$0xff]  ;;  %v3870_v41 = vadd.f32 %v3822_v39, %v3739_v38  ;;  %v7388_v42 = vpop.f32.mrb[158].mxu1  ;;  %v7437_v21 = vpop.f32.mrb[156].mxu0 }
 0x222   : > { %v4486_v44 = vadd.f32 %v7433_v18, %v4438_v40  ;;  %3920 = vst.msk [vmem:[#allocation2 + $0x130] sm:$0xff] %vm791_vm1, %v3872_v37  ;;  %v4436_v45 = vld [vmem:[#allocation2 + $0x100] sm:$0xff]  ;;  %v3873_v46 = vadd.f32 %v7388_v42, %v3825_v43  ;;  %v3742_v47 = vpop.f32.mrb[159].mxu1  ;;  %v4357_v48 = vpop.f32.mrb[157].mxu0  ;;  %v3832_v18 = vld [vmem:[#allocation2 + $0x170] sm:$0xff] }
 0x223   : > { %v4484_v49 = vadd.f32 %v4436_v45, %v4341_v26  ;;  %3918 = vst.msk [vmem:[#allocation2 + $0x120] sm:$0xff] %vm791_vm1, %v3870_v41  ;;  %v4439_v50 = vld [vmem:[#allocation2 + $0x118] sm:$0xff]  ;;  %v3871_v51 = vadd.f32 %v3823_v22, %v3742_v47  ;;  %v7438_v52 = vpop.f32.mrb[158].mxu0 }
 0x224   : > { %4534 = vst.msk [vmem:[#allocation2 + $0x110] sm:$0xff] %vm791_vm1, %v4486_v44  ;;  %v4487_v53 = vadd.f32 %v7434_v30, %v4439_v50  ;;  %3921 = vst.msk [vmem:[#allocation2 + $0x138] sm:$0xff] %vm791_vm1, %v3873_v46  ;;  %v4437_v54 = vld [vmem:[#allocation2 + $0x108] sm:$0xff]  ;;  %v4360_v55 = vpop.f32.mrb[159].mxu0  ;;  %v5022_v46 = vld [vmem:[#allocation2] sm:$0xff] }
 0x225   : > { %4532 = vst.msk [vmem:[#allocation2 + $0x100] sm:$0xff] %vm791_vm1, %v4484_v49  ;;  %v4485_v56 = vadd.f32 %v4437_v54, %v4344_v33  ;;  %3919 = vst.msk [vmem:[#allocation2 + $0x128] sm:$0xff] %vm791_vm1, %v3871_v51  ;;  %v3831_v33 = vld [vmem:[#allocation2 + $0x168] sm:$0xff]  ;;  %v5025_v49 = vld [vmem:[#allocation2 + $0x18] sm:$0xff] }
 0x226   : > { %4535 = vst.msk [vmem:[#allocation2 + $0x118] sm:$0xff] %vm791_vm1, %v4487_v53 }
 0x227   : > { %4533 = vst.msk [vmem:[#allocation2 + $0x108] sm:$0xff] %vm791_vm1, %v4485_v56  ;;  %v7391_v57 = vpop.f32.mrb[160].mxu1 }
 0x228   : > { %v3876_v59 = vadd.f32 %v7391_v57, %v3828_v58  ;;  %v3755_v60 = vpop.f32.mrb[161].mxu1 }
 0x229   : > { %v4442_v62 = vld [vmem:[#allocation2 + $0x130] sm:$0xff]  ;;  %v3874_v63 = vadd.f32 %v3826_v61, %v3755_v60  ;;  %v7392_v0 = vpop.f32.mrb[162].mxu1  ;;  %v7441_v2 = vpop.f32.mrb[160].mxu0 }
 0x22a   : > { %v4490_v3 = vadd.f32 %v7437_v21, %v4442_v62  ;;  %3924 = vst.msk [vmem:[#allocation2 + $0x150] sm:$0xff] %vm791_vm1, %v3876_v59  ;;  %v4440_v4 = vld [vmem:[#allocation2 + $0x120] sm:$0xff]  ;;  %v3877_v5 = vadd.f32 %v7392_v0, %v3829_v1  ;;  %v3758_v6 = vpop.f32.mrb[163].mxu1  ;;  %v4373_v8 = vpop.f32.mrb[161].mxu0  ;;  %v5024_v21 = vld [vmem:[#allocation2 + $0x10] sm:$0xff] }
 0x22b   : > { %v4488_v9 = vadd.f32 %v4440_v4, %v4357_v48  ;;  %3922 = vst.msk [vmem:[#allocation2 + $0x140] sm:$0xff] %vm791_vm1, %v3874_v63  ;;  %v4443_v10 = vld [vmem:[#allocation2 + $0x138] sm:$0xff]  ;;  %v3875_v11 = vadd.f32 %v3827_v7, %v3758_v6  ;;  %v7442_v12 = vpop.f32.mrb[162].mxu0 }
 0x22c   : > { %4538 = vst.msk [vmem:[#allocation2 + $0x130] sm:$0xff] %vm791_vm1, %v4490_v3  ;;  %v4491_v13 = vadd.f32 %v7438_v52, %v4443_v10  ;;  %3925 = vst.msk [vmem:[#allocation2 + $0x158] sm:$0xff] %vm791_vm1, %v3877_v5  ;;  %v4441_v14 = vld [vmem:[#allocation2 + $0x128] sm:$0xff]  ;;  %v4376_v15 = vpop.f32.mrb[163].mxu0  ;;  %v5026_v5 = vld [vmem:[#allocation2 + $0x20] sm:$0xff] }
 0x22d   : > { %4536 = vst.msk [vmem:[#allocation2 + $0x120] sm:$0xff] %vm791_vm1, %v4488_v9  ;;  %v4489_v16 = vadd.f32 %v4441_v14, %v4360_v55  ;;  %3923 = vst.msk [vmem:[#allocation2 + $0x148] sm:$0xff] %vm791_vm1, %v3875_v11  ;;  %v5023_v55 = vld [vmem:[#allocation2 + $0x8] sm:$0xff]  ;;  %v5029_v9 = vld [vmem:[#allocation2 + $0x38] sm:$0xff] }
 0x22e   : > { %4539 = vst.msk [vmem:[#allocation2 + $0x138] sm:$0xff] %vm791_vm1, %v4491_v13 }
 0x22f   : > { %4537 = vst.msk [vmem:[#allocation2 + $0x128] sm:$0xff] %vm791_vm1, %v4489_v16  ;;  %v7395_v17 = vpop.f32.mrb[164].mxu1 }
 0x230   : > { %v3880_v19 = vadd.f32 %v7395_v17, %v3832_v18  ;;  %v3771_v20 = vpop.f32.mrb[165].mxu1 }
 0x231   : > { %v4446_v24 = vld [vmem:[#allocation2 + $0x150] sm:$0xff]  ;;  %v3878_v25 = vadd.f32 %v3830_v23, %v3771_v20  ;;  %v7396_v26 = vpop.f32.mrb[166].mxu1  ;;  %v7445_v28 = vpop.f32.mrb[164].mxu0 }
 0x232   : > { %v4494_v29 = vadd.f32 %v7441_v2, %v4446_v24  ;;  %3928 = vst.msk [vmem:[#allocation2 + $0x170] sm:$0xff] %vm791_vm1, %v3880_v19  ;;  %v4444_v30 = vld [vmem:[#allocation2 + $0x140] sm:$0xff]  ;;  %v3881_v31 = vadd.f32 %v7396_v26, %v3833_v27  ;;  %v3774_v32 = vpop.f32.mrb[167].mxu1  ;;  %v4389_v34 = vpop.f32.mrb[165].mxu0  ;;  %v5028_v2 = vld [vmem:[#allocation2 + $0x30] sm:$0xff] }
 0x233   : > { %v4492_v35 = vadd.f32 %v4444_v30, %v4373_v8  ;;  %3926 = vst.msk [vmem:[#allocation2 + $0x160] sm:$0xff] %vm791_vm1, %v3878_v25  ;;  %v4447_v36 = vld [vmem:[#allocation2 + $0x158] sm:$0xff]  ;;  %v3879_v37 = vadd.f32 %v3831_v33, %v3774_v32  ;;  %v7446_v38 = vpop.f32.mrb[166].mxu0  ;;  %v8730_v32 = vld [vmem:[%s8974_s4] ss:$0 sm:$0xff] }
 0x234   : > { %4542 = vst.msk [vmem:[#allocation2 + $0x150] sm:$0xff] %vm791_vm1, %v4494_v29  ;;  %v4495_v39 = vadd.f32 %v7442_v12, %v4447_v36  ;;  %3929 = vst.msk [vmem:[#allocation2 + $0x178] sm:$0xff] %vm791_vm1, %v3881_v31  ;;  %v4445_v40 = vld [vmem:[#allocation2 + $0x148] sm:$0xff]  ;;  %v4392_v41 = vpop.f32.mrb[167].mxu0  ;;  %v5030_v31 = vld [vmem:[#allocation2 + $0x40] sm:$0xff] }
 0x235   : > { %4540 = vst.msk [vmem:[#allocation2 + $0x140] sm:$0xff] %vm791_vm1, %v4492_v35  ;;  %v4493_v42 = vadd.f32 %v4445_v40, %v4376_v15  ;;  %3927 = vst.msk [vmem:[#allocation2 + $0x168] sm:$0xff] %vm791_vm1, %v3879_v37  ;;  %v5027_v15 = vld [vmem:[#allocation2 + $0x28] sm:$0xff]  ;;  %v5033_v36 = vld [vmem:[#allocation2 + $0x58] sm:$0xff] }
 0x236   : > { %4543 = vst.msk [vmem:[#allocation2 + $0x158] sm:$0xff] %vm791_vm1, %v4495_v39 }
 0x237   : > { %4541 = vst.msk [vmem:[#allocation2 + $0x148] sm:$0xff] %vm791_vm1, %v4493_v42  ;;  %v7451_v43 = vpop.f32.mrb[168].mxu1  ;;  %v5031_v42 = vld [vmem:[#allocation2 + $0x48] sm:$0xff] }
 0x238   : > { %v5072_v44 = vadd.f32 %v7451_v43, %v5024_v21  ;;  %v4831_v45 = vpop.f32.mrb[169].mxu1 }
 0x239   : > { %v4450_v47 = vld [vmem:[#allocation2 + $0x170] sm:$0xff]  ;;  %v5070_v22 = vadd.f32 %v5022_v46, %v4831_v45  ;;  %v7452_v48 = vpop.f32.mrb[170].mxu1  ;;  %v7501_v50 = vpop.f32.mrb[168].mxu0 }
 0x23a   : > { %v4498_v51 = vadd.f32 %v7445_v28, %v4450_v47  ;;  %v4448_v52 = vld [vmem:[#allocation2 + $0x160] sm:$0xff]  ;;  %5120 = vst.msk [vmem:[#allocation2 + $0x10] sm:$0xff] %vm791_vm1, %v5072_v44  ;;  %v5073_v53 = vadd.f32 %v7452_v48, %v5025_v49  ;;  %v4834_v54 = vpop.f32.mrb[171].mxu1  ;;  %v5449_v56 = vpop.f32.mrb[169].mxu0  ;;  %v5032_v28 = vld [vmem:[#allocation2 + $0x50] sm:$0xff] }
 0x23b   : > { %v4496_v57 = vadd.f32 %v4448_v52, %v4389_v34  ;;  %v4451_v58 = vld [vmem:[#allocation2 + $0x178] sm:$0xff]  ;;  %5118 = vst.msk [vmem:[#allocation2] sm:$0xff] %vm791_vm1, %v5070_v22  ;;  %v5071_v59 = vadd.f32 %v5023_v55, %v4834_v54  ;;  %v7502_v60 = vpop.f32.mrb[170].mxu0 }
 0x23c   : > { %4546 = vst.msk [vmem:[#allocation2 + $0x170] sm:$0xff] %vm791_vm1, %v4498_v51  ;;  %v4499_v61 = vadd.f32 %v7446_v38, %v4451_v58  ;;  %v4449_v62 = vld [vmem:[#allocation2 + $0x168] sm:$0xff]  ;;  %5121 = vst.msk [vmem:[#allocation2 + $0x18] sm:$0xff] %vm791_vm1, %v5073_v53  ;;  %v5452_v63 = vpop.f32.mrb[171].mxu0 }
 0x23d   : > { %4544 = vst.msk [vmem:[#allocation2 + $0x160] sm:$0xff] %vm791_vm1, %v4496_v57  ;;  %v4497_v0 = vadd.f32 %v4449_v62, %v4392_v41  ;;  %5119 = vst.msk [vmem:[#allocation2 + $0x8] sm:$0xff] %vm791_vm1, %v5071_v59 }
 0x23e   : > { %4547 = vst.msk [vmem:[#allocation2 + $0x178] sm:$0xff] %vm791_vm1, %v4499_v61  ;;  %v5036_v61 = vld [vmem:[#allocation2 + $0x70] sm:$0xff] }
 0x23f   : > { %4545 = vst.msk [vmem:[#allocation2 + $0x168] sm:$0xff] %vm791_vm1, %v4497_v0  ;;  %v7455_v1 = vpop.f32.mrb[172].mxu1 }
 0x240   : > { %v5076_v3 = vadd.f32 %v7455_v1, %v5028_v2  ;;  %v4847_v4 = vpop.f32.mrb[173].mxu1  ;;  %v5034_v2 = vld [vmem:[#allocation2 + $0x60] sm:$0xff] }
 0x241   : > { %v5642_v6 = vld [vmem:[#allocation2 + $0x10] sm:$0xff]  ;;  %v5074_v7 = vadd.f32 %v5026_v5, %v4847_v4  ;;  %v7456_v8 = vpop.f32.mrb[174].mxu1  ;;  %v7505_v10 = vpop.f32.mrb[172].mxu0 }
 0x242   : > { %v5690_v11 = vadd.f32 %v7501_v50, %v5642_v6  ;;  %5124 = vst.msk [vmem:[#allocation2 + $0x30] sm:$0xff] %vm791_vm1, %v5076_v3  ;;  %v5640_v12 = vld [vmem:[#allocation2] sm:$0xff]  ;;  %v5077_v13 = vadd.f32 %v7456_v8, %v5029_v9  ;;  %v4850_v14 = vpop.f32.mrb[175].mxu1  ;;  %v5465_v16 = vpop.f32.mrb[173].mxu0  ;;  %v5037_v8 = vld [vmem:[#allocation2 + $0x78] sm:$0xff] }
 0x243   : > { %v5688_v17 = vadd.f32 %v5640_v12, %v5449_v56  ;;  %5122 = vst.msk [vmem:[#allocation2 + $0x20] sm:$0xff] %vm791_vm1, %v5074_v7  ;;  %v5643_v18 = vld [vmem:[#allocation2 + $0x18] sm:$0xff]  ;;  %v5075_v19 = vadd.f32 %v5027_v15, %v4850_v14  ;;  %v7506_v20 = vpop.f32.mrb[174].mxu0  ;;  %v5035_v15 = vld [vmem:[#allocation2 + $0x68] sm:$0xff] }
 0x244   : > { %5738 = vst.msk [vmem:[#allocation2 + $0x10] sm:$0xff] %vm791_vm1, %v5690_v11  ;;  %v5691_v23 = vadd.f32 %v7502_v60, %v5643_v18  ;;  %5125 = vst.msk [vmem:[#allocation2 + $0x38] sm:$0xff] %vm791_vm1, %v5077_v13  ;;  %v5641_v24 = vld [vmem:[#allocation2 + $0x8] sm:$0xff]  ;;  %v5468_v25 = vpop.f32.mrb[175].mxu0 }
 0x245   : > { %5736 = vst.msk [vmem:[#allocation2] sm:$0xff] %vm791_vm1, %v5688_v17  ;;  %v5689_v26 = vadd.f32 %v5641_v24, %v5452_v63  ;;  %5123 = vst.msk [vmem:[#allocation2 + $0x28] sm:$0xff] %vm791_vm1, %v5075_v19 }
 0x246   : > { %5739 = vst.msk [vmem:[#allocation2 + $0x18] sm:$0xff] %vm791_vm1, %v5691_v23 }
 0x247   : > { %5737 = vst.msk [vmem:[#allocation2 + $0x8] sm:$0xff] %vm791_vm1, %v5689_v26  ;;  %v7459_v27 = vpop.f32.mrb[176].mxu1 }
 0x248   : > { %v5080_v29 = vadd.f32 %v7459_v27, %v5032_v28  ;;  %v4863_v30 = vpop.f32.mrb[177].mxu1 }
 0x249   : > { %v5646_v33 = vld [vmem:[#allocation2 + $0x30] sm:$0xff]  ;;  %v5078_v34 = vadd.f32 %v5030_v31, %v4863_v30  ;;  %v7460_v35 = vpop.f32.mrb[178].mxu1  ;;  %v7509_v37 = vpop.f32.mrb[176].mxu0 }
 0x24a   : > { %v5694_v38 = vadd.f32 %v7505_v10, %v5646_v33  ;;  %5128 = vst.msk [vmem:[#allocation2 + $0x50] sm:$0xff] %vm791_vm1, %v5080_v29  ;;  %v5644_v39 = vld [vmem:[#allocation2 + $0x20] sm:$0xff]  ;;  %v5081_v40 = vadd.f32 %v7460_v35, %v5033_v36  ;;  %v4866_v41 = vpop.f32.mrb[179].mxu1  ;;  %v5481_v43 = vpop.f32.mrb[177].mxu0 }
 0x24b   : > { %v5786_v21 = vld [vmem:[#allocation2 + $0x10] sm:$0xff]  ;;  %v5692_v44 = vadd.f32 %v5644_v39, %v5465_v16  ;;  %5126 = vst.msk [vmem:[#allocation2 + $0x40] sm:$0xff] %vm791_vm1, %v5078_v34  ;;  %v5647_v45 = vld [vmem:[#allocation2 + $0x38] sm:$0xff]  ;;  %v5079_v46 = vadd.f32 %v5031_v42, %v4866_v41  ;;  %v7510_v47 = vpop.f32.mrb[178].mxu0 }
 0x24c   : > { %v5841_v22 = vadd.f32 %v8730_v32, %v5786_v21  ;;  %v5784_v48 = vld [vmem:[#allocation2] sm:$0xff]  ;;  %5742 = vst.msk [vmem:[#allocation2 + $0x30] sm:$0xff] %vm791_vm1, %v5694_v38  ;;  %v5695_v49 = vadd.f32 %v7506_v20, %v5647_v45  ;;  %5129 = vst.msk [vmem:[#allocation2 + $0x58] sm:$0xff] %vm791_vm1, %v5081_v40  ;;  %v5645_v50 = vld [vmem:[#allocation2 + $0x28] sm:$0xff]  ;;  %v5484_v51 = vpop.f32.mrb[179].mxu0 }
 0x24d   : > { %v5839_v52 = vadd.f32 %v8730_v32, %v5784_v48  ;;  %v5787_v53 = vld [vmem:[#allocation2 + $0x18] sm:$0xff]  ;;  %5740 = vst.msk [vmem:[#allocation2 + $0x20] sm:$0xff] %vm791_vm1, %v5692_v44  ;;  %v5693_v54 = vadd.f32 %v5645_v50, %v5468_v25  ;;  %5127 = vst.msk [vmem:[#allocation2 + $0x48] sm:$0xff] %vm791_vm1, %v5079_v46  ;;  %v5040_v40 = vld [vmem:[#allocation2 + $0x90] sm:$0xff] }
 0x24e   : > { %v5889_v55 = vmax.f32 %v5841_v22, 0.0  ;;  %v5842_v56 = vadd.f32 %v8730_v32, %v5787_v53  ;;  %v5785_v57 = vld [vmem:[#allocation2 + $0x8] sm:$0xff]  ;;  %5743 = vst.msk [vmem:[#allocation2 + $0x38] sm:$0xff] %vm791_vm1, %v5695_v49  ;;  %v5038_v44 = vld [vmem:[#allocation2 + $0x80] sm:$0xff]  ;;  %v5041_v49 = vld [vmem:[#allocation2 + $0x98] sm:$0xff] }
 0x24f   : > { %v5887_v58 = vmax.f32 %v5839_v52, 0.0  ;;  %v5840_v59 = vadd.f32 %v8730_v32, %v5785_v57  ;;  %5741 = vst.msk [vmem:[#allocation2 + $0x28] sm:$0xff] %vm791_vm1, %v5693_v54  ;;  %v7463_v60 = vpop.f32.mrb[180].mxu1 }
 0x250   : > { %v6826_v62 = vpack.c.bf16 %v5889_v55, %v5889_v55  ;;  %v5890_v63 = vmax.f32 %v5842_v56, 0.0  ;;  %v5084_v0 = vadd.f32 %v7463_v60, %v5036_v61  ;;  %v4879_v1 = vpop.f32.mrb[181].mxu1  ;;  %v5039_v56 = vld [vmem:[#allocation2 + $0x88] sm:$0xff] }
 0x251   : > { %v6824_v3 = vpack.c.bf16 %v5887_v58, %v5887_v58  ;;  %v5888_v4 = vmax.f32 %v5840_v59, 0.0  ;;  %v5650_v5 = vld [vmem:[#allocation2 + $0x50] sm:$0xff]  ;;  %v5082_v6 = vadd.f32 %v5034_v2, %v4879_v1  ;;  %v7464_v7 = vpop.f32.mrb[182].mxu1  ;;  %v7513_v9 = vpop.f32.mrb[180].mxu0 }
 0x252   : > { %6130 = vst.msk [vmem:[%s8746_s8 + $0x8] sm:$0xf] %vm6127_vm2, %v6826_v62  ;;  %v6827_v10 = vpack.c.bf16 %v5890_v63, %v5890_v63  ;;  %v5698_v11 = vadd.f32 %v7509_v37, %v5650_v5  ;;  %v5648_v12 = vld [vmem:[#allocation2 + $0x40] sm:$0xff]  ;;  %v5085_v13 = vadd.f32 %v7464_v7, %v5037_v8  ;;  %v4882_v14 = vpop.f32.mrb[183].mxu1  ;;  %v5497_v16 = vpop.f32.mrb[181].mxu0 }
 0x253   : > { %5132 = vst.msk [vmem:[#allocation2 + $0x70] sm:$0xff] %vm791_vm1, %v5084_v0  ;;  %v6825_v17 = vpack.c.bf16 %v5888_v4, %v5888_v4  ;;  %v5790_v18 = vld [vmem:[#allocation2 + $0x30] sm:$0xff]  ;;  %v5696_v19 = vadd.f32 %v5648_v12, %v5481_v43  ;;  %5130 = vst.msk [vmem:[#allocation2 + $0x60] sm:$0xff] %vm791_vm1, %v5082_v6  ;;  %v5651_v20 = vld [vmem:[#allocation2 + $0x58] sm:$0xff]  ;;  %v5083_v23 = vadd.f32 %v5035_v15, %v4882_v14  ;;  %v7514_v24 = vpop.f32.mrb[182].mxu0 }
 0x254   : > { %6128 = vst.msk [vmem:[%s8746_s8] sm:$0xf] %vm6127_vm2, %v6824_v3  ;;  %6131 = vst.msk [vmem:[%s8746_s8 + $0xc] sm:$0xf] %vm6127_vm2, %v6827_v10  ;;  %v5845_v25 = vadd.f32 %v8730_v32, %v5790_v18  ;;  %v5788_v26 = vld [vmem:[#allocation2 + $0x20] sm:$0xff]  ;;  %v5699_v27 = vadd.f32 %v7510_v47, %v5651_v20  ;;  %v5649_v28 = vld [vmem:[#allocation2 + $0x48] sm:$0xff] }
 0x255   : > { %5746 = vst.msk [vmem:[#allocation2 + $0x50] sm:$0xff] %vm791_vm1, %v5698_v11  ;;  %5133 = vst.msk [vmem:[#allocation2 + $0x78] sm:$0xff] %vm791_vm1, %v5085_v13  ;;  %v5500_v29 = vpop.f32.mrb[183].mxu0  ;;  %v5843_v30 = vadd.f32 %v8730_v32, %v5788_v26  ;;  %v5791_v31 = vld [vmem:[#allocation2 + $0x38] sm:$0xff]  ;;  %v5697_v33 = vadd.f32 %v5649_v28, %v5484_v51  ;;  %v5044_v14 = vld [vmem:[#allocation2 + $0xb0] sm:$0xff] }
 0x256   : > { %6129 = vst.msk [vmem:[%s8746_s8 + $0x4] sm:$0xf] %vm6127_vm2, %v6825_v17  ;;  %v5893_v34 = vmax.f32 %v5845_v25, 0.0  ;;  %v5846_v35 = vadd.f32 %v8730_v32, %v5791_v31  ;;  %v5789_v36 = vld [vmem:[#allocation2 + $0x28] sm:$0xff] }
 0x257   : > { %5744 = vst.msk [vmem:[#allocation2 + $0x40] sm:$0xff] %vm791_vm1, %v5696_v19  ;;  %5131 = vst.msk [vmem:[#allocation2 + $0x68] sm:$0xff] %vm791_vm1, %v5083_v23  ;;  %v5891_v37 = vmax.f32 %v5843_v30, 0.0  ;;  %v5844_v38 = vadd.f32 %v8730_v32, %v5789_v36  ;;  %v7467_v39 = vpop.f32.mrb[184].mxu1  ;;  %v5042_v19 = vld [vmem:[#allocation2 + $0xa0] sm:$0xff] }
 0x258   : > { %5747 = vst.msk [vmem:[#allocation2 + $0x58] sm:$0xff] %vm791_vm1, %v5699_v27  ;;  %5745 = vst.msk [vmem:[#allocation2 + $0x48] sm:$0xff] %vm791_vm1, %v5697_v33  ;;  %v6830_v41 = vpack.c.bf16 %v5893_v34, %v5893_v34  ;;  %v5894_v42 = vmax.f32 %v5846_v35, 0.0  ;;  %v5088_v43 = vadd.f32 %v7467_v39, %v5040_v40  ;;  %v4895_v21 = vpop.f32.mrb[185].mxu1  ;;  %v5045_v27 = vld [vmem:[#allocation2 + $0xb8] sm:$0xff]  ;;  %v5043_v35 = vld [vmem:[#allocation2 + $0xa8] sm:$0xff] }
 0x259   : > { %v6828_v45 = vpack.c.bf16 %v5891_v37, %v5891_v37  ;;  %v5892_v46 = vmax.f32 %v5844_v38, 0.0  ;;  %v5086_v22 = vadd.f32 %v5038_v44, %v4895_v21  ;;  %v7468_v48 = vpop.f32.mrb[186].mxu1  ;;  %v7517_v50 = vpop.f32.mrb[184].mxu0 }
 0x25a   : > { %v5654_v47 = vld [vmem:[#allocation2 + $0x70] sm:$0xff]  ;;  %6134 = vst.msk [vmem:[%s8746_s8 + $0x18] sm:$0xf] %vm6127_vm2, %v6830_v41  ;;  %v6831_v51 = vpack.c.bf16 %v5894_v42, %v5894_v42  ;;  %v5652_v53 = vld [vmem:[#allocation2 + $0x60] sm:$0xff]  ;;  %v5089_v54 = vadd.f32 %v7468_v48, %v5041_v49  ;;  %v4898_v55 = vpop.f32.mrb[187].mxu1  ;;  %v5513_v57 = vpop.f32.mrb[185].mxu0 }
 0x25b   : > { %v5702_v52 = vadd.f32 %v7513_v9, %v5654_v47  ;;  %5136 = vst.msk [vmem:[#allocation2 + $0x90] sm:$0xff] %vm791_vm1, %v5088_v43  ;;  %v6829_v58 = vpack.c.bf16 %v5892_v46, %v5892_v46  ;;  %v5700_v60 = vadd.f32 %v5652_v53, %v5497_v16  ;;  %5134 = vst.msk [vmem:[#allocation2 + $0x80] sm:$0xff] %vm791_vm1, %v5086_v22  ;;  %v7518_v63 = vpop.f32.mrb[186].mxu0 }
 0x25c   : > { %6132 = vst.msk [vmem:[%s8746_s8 + $0x10] sm:$0xf] %vm6127_vm2, %v6828_v45  ;;  %v5794_v59 = vld [vmem:[#allocation2 + $0x50] sm:$0xff]  ;;  %v5655_v61 = vld [vmem:[#allocation2 + $0x78] sm:$0xff]  ;;  %v5087_v62 = vadd.f32 %v5039_v56, %v4898_v55  ;;  %6135 = vst.msk [vmem:[%s8746_s8 + $0x1c] sm:$0xf] %vm6127_vm2, %v6831_v51 }
 0x25d   : > { %v5849_v0 = vadd.f32 %v8730_v32, %v5794_v59  ;;  %5750 = vst.msk [vmem:[#allocation2 + $0x70] sm:$0xff] %vm791_vm1, %v5702_v52  ;;  %v5703_v2 = vadd.f32 %v7514_v24, %v5655_v61  ;;  %5137 = vst.msk [vmem:[#allocation2 + $0x98] sm:$0xff] %vm791_vm1, %v5089_v54  ;;  %v5516_v4 = vpop.f32.mrb[187].mxu0  ;;  %v5048_v55 = vld [vmem:[#allocation2 + $0xd0] sm:$0xff] }
 0x25e   : > { %v5792_v1 = vld [vmem:[#allocation2 + $0x40] sm:$0xff]  ;;  %v5653_v3 = vld [vmem:[#allocation2 + $0x68] sm:$0xff]  ;;  %6133 = vst.msk [vmem:[%s8746_s8 + $0x14] sm:$0xf] %vm6127_vm2, %v6829_v58 }
 0x25f   : > { %v5847_v5 = vadd.f32 %v8730_v32, %v5792_v1  ;;  %v5795_v6 = vld [vmem:[#allocation2 + $0x58] sm:$0xff]  ;;  %5748 = vst.msk [vmem:[#allocation2 + $0x60] sm:$0xff] %vm791_vm1, %v5700_v60  ;;  %v5701_v7 = vadd.f32 %v5653_v3, %v5500_v29  ;;  %5135 = vst.msk [vmem:[#allocation2 + $0x88] sm:$0xff] %vm791_vm1, %v5087_v62  ;;  %v5897_v8 = vmax.f32 %v5849_v0, 0.0  ;;  %v5793_v10 = vld [vmem:[#allocation2 + $0x48] sm:$0xff]  ;;  %v7471_v13 = vpop.f32.mrb[188].mxu1 }
 0x260   : > { %v5850_v9 = vadd.f32 %v8730_v32, %v5795_v6  ;;  %5751 = vst.msk [vmem:[#allocation2 + $0x78] sm:$0xff] %vm791_vm1, %v5703_v2  ;;  %v5848_v12 = vadd.f32 %v8730_v32, %v5793_v10  ;;  %v5092_v17 = vadd.f32 %v7471_v13, %v5044_v14  ;;  %v4911_v18 = vpop.f32.mrb[189].mxu1  ;;  %v5046_v60 = vld [vmem:[#allocation2 + $0xc0] sm:$0xff]  ;;  %v5049_v2 = vld [vmem:[#allocation2 + $0xd8] sm:$0xff] }
 0x261   : > { %v5895_v11 = vmax.f32 %v5847_v5, 0.0  ;;  %5749 = vst.msk [vmem:[#allocation2 + $0x68] sm:$0xff] %vm791_vm1, %v5701_v7  ;;  %v6834_v15 = vpack.c.bf16 %v5897_v8, %v5897_v8  ;;  %v5090_v25 = vadd.f32 %v5042_v19, %v4911_v18  ;;  %v7472_v26 = vpop.f32.mrb[190].mxu1  ;;  %v7521_v28 = vpop.f32.mrb[188].mxu0 }
 0x262   : > { %v5898_v16 = vmax.f32 %v5850_v9, 0.0  ;;  %v5896_v23 = vmax.f32 %v5848_v12, 0.0  ;;  %v5658_v24 = vld [vmem:[#allocation2 + $0x90] sm:$0xff]  ;;  %5140 = vst.msk [vmem:[#allocation2 + $0xb0] sm:$0xff] %vm791_vm1, %v5092_v17  ;;  %v5656_v31 = vld [vmem:[#allocation2 + $0x80] sm:$0xff]  ;;  %v5093_v33 = vadd.f32 %v7472_v26, %v5045_v27  ;;  %v4914_v34 = vpop.f32.mrb[191].mxu1 }
 0x263   : > { %v6832_v20 = vpack.c.bf16 %v5895_v11, %v5895_v11  ;;  %6138 = vst.msk [vmem:[%s8746_s8 + $0x28] sm:$0xf] %vm6127_vm2, %v6834_v15  ;;  %v5706_v30 = vadd.f32 %v7517_v50, %v5658_v24  ;;  %v5529_v36 = vpop.f32.mrb[189].mxu0  ;;  %v5704_v39 = vadd.f32 %v5656_v31, %v5513_v57  ;;  %v5091_v41 = vadd.f32 %v5043_v35, %v4914_v34  ;;  %v5047_v9 = vld [vmem:[#allocation2 + $0xc8] sm:$0xff]  ;;  %v5052_v34 = vld [vmem:[#allocation2 + $0xf0] sm:$0xff] }
 0x264   : > { %v6835_v29 = vpack.c.bf16 %v5898_v16, %v5898_v16  ;;  %v6833_v37 = vpack.c.bf16 %v5896_v23, %v5896_v23  ;;  %v5798_v38 = vld [vmem:[#allocation2 + $0x70] sm:$0xff]  ;;  %5138 = vst.msk [vmem:[#allocation2 + $0xa0] sm:$0xff] %vm791_vm1, %v5090_v25  ;;  %v5659_v40 = vld [vmem:[#allocation2 + $0x98] sm:$0xff]  ;;  %v7522_v42 = vpop.f32.mrb[190].mxu0  ;;  %5141 = vst.msk [vmem:[#allocation2 + $0xb8] sm:$0xff] %vm791_vm1, %v5093_v33 }
 0x265   : > { %6136 = vst.msk [vmem:[%s8746_s8 + $0x20] sm:$0xf] %vm6127_vm2, %v6832_v20  ;;  %v5853_v43 = vadd.f32 %v8730_v32, %v5798_v38  ;;  %v5707_v44 = vadd.f32 %v7518_v63, %v5659_v40  ;;  %v5532_v46 = vpop.f32.mrb[191].mxu0 }
 0x266   : > { %6139 = vst.msk [vmem:[%s8746_s8 + $0x2c] sm:$0xf] %vm6127_vm2, %v6835_v29  ;;  %v5796_v21 = vld [vmem:[#allocation2 + $0x60] sm:$0xff]  ;;  %v5657_v45 = vld [vmem:[#allocation2 + $0x88] sm:$0xff]  ;;  %6137 = vst.msk [vmem:[%s8746_s8 + $0x24] sm:$0xf] %vm6127_vm2, %v6833_v37 }
 0x267   : > { %5754 = vst.msk [vmem:[#allocation2 + $0x90] sm:$0xff] %vm791_vm1, %v5706_v30  ;;  %v5851_v47 = vadd.f32 %v8730_v32, %v5796_v21  ;;  %v5799_v22 = vld [vmem:[#allocation2 + $0x78] sm:$0xff]  ;;  %5752 = vst.msk [vmem:[#allocation2 + $0x80] sm:$0xff] %vm791_vm1, %v5704_v39  ;;  %v5705_v48 = vadd.f32 %v5657_v45, %v5516_v4  ;;  %v5901_v49 = vmax.f32 %v5853_v43, 0.0  ;;  %v7475_v54 = vpop.f32.mrb[192].mxu1  ;;  %v5050_v39 = vld [vmem:[#allocation2 + $0xe0] sm:$0xff] }
 0x268   : > { %5139 = vst.msk [vmem:[#allocation2 + $0xa8] sm:$0xff] %vm791_vm1, %v5091_v41  ;;  %v5854_v50 = vadd.f32 %v8730_v32, %v5799_v22  ;;  %v5797_v51 = vld [vmem:[#allocation2 + $0x68] sm:$0xff]  ;;  %5755 = vst.msk [vmem:[#allocation2 + $0x98] sm:$0xff] %vm791_vm1, %v5707_v44  ;;  %v5096_v58 = vadd.f32 %v7475_v54, %v5048_v55  ;;  %v4927_v59 = vpop.f32.mrb[193].mxu1  ;;  %v5053_v44 = vld [vmem:[#allocation2 + $0xf8] sm:$0xff] }
 0x269   : > { %v5899_v52 = vmax.f32 %v5851_v47, 0.0  ;;  %v5852_v53 = vadd.f32 %v8730_v32, %v5797_v51  ;;  %5753 = vst.msk [vmem:[#allocation2 + $0x88] sm:$0xff] %vm791_vm1, %v5705_v48  ;;  %v6838_v56 = vpack.c.bf16 %v5901_v49, %v5901_v49  ;;  %v5662_v63 = vld [vmem:[#allocation2 + $0xb0] sm:$0xff]  ;;  %v5094_v0 = vadd.f32 %v5046_v60, %v4927_v59  ;;  %v7476_v1 = vpop.f32.mrb[194].mxu1  ;;  %v7525_v3 = vpop.f32.mrb[192].mxu0 }
 0x26a   : > { %v5902_v57 = vmax.f32 %v5854_v50, 0.0  ;;  %v5710_v5 = vadd.f32 %v7521_v28, %v5662_v63  ;;  %5144 = vst.msk [vmem:[#allocation2 + $0xd0] sm:$0xff] %vm791_vm1, %v5096_v58  ;;  %v5097_v7 = vadd.f32 %v7476_v1, %v5049_v2  ;;  %v4930_v8 = vpop.f32.mrb[195].mxu1  ;;  %v5545_v10 = vpop.f32.mrb[193].mxu0  ;;  %v5051_v50 = vld [vmem:[#allocation2 + $0xe8] sm:$0xff] }
 0x26b   : > { %v6836_v61 = vpack.c.bf16 %v5899_v52, %v5899_v52  ;;  %v5900_v62 = vmax.f32 %v5852_v53, 0.0  ;;  %6142 = vst.msk [vmem:[%s8746_s8 + $0x38] sm:$0xf] %vm6127_vm2, %v6838_v56  ;;  %v5660_v6 = vld [vmem:[#allocation2 + $0xa0] sm:$0xff]  ;;  %v5663_v14 = vld [vmem:[#allocation2 + $0xb8] sm:$0xff]  ;;  %v5095_v15 = vadd.f32 %v5047_v9, %v4930_v8  ;;  %v7526_v16 = vpop.f32.mrb[194].mxu0 }
 0x26c   : > { %v6839_v4 = vpack.c.bf16 %v5902_v57, %v5902_v57  ;;  %v5708_v13 = vadd.f32 %v5660_v6, %v5529_v36  ;;  %5142 = vst.msk [vmem:[#allocation2 + $0xc0] sm:$0xff] %vm791_vm1, %v5094_v0  ;;  %5758 = vst.msk [vmem:[#allocation2 + $0xb0] sm:$0xff] %vm791_vm1, %v5710_v5  ;;  %v5711_v19 = vadd.f32 %v7522_v42, %v5663_v14  ;;  %v5548_v23 = vpop.f32.mrb[195].mxu0  ;;  %v5056_v8 = vld [vmem:[#allocation2 + $0x110] sm:$0xff] }
 0x26d   : > { %6140 = vst.msk [vmem:[%s8746_s8 + $0x30] sm:$0xf] %vm6127_vm2, %v6836_v61  ;;  %v6837_v11 = vpack.c.bf16 %v5900_v62, %v5900_v62 }
 0x26e   : > { %v5802_v12 = vld [vmem:[#allocation2 + $0x90] sm:$0xff]  ;;  %6143 = vst.msk [vmem:[%s8746_s8 + $0x3c] sm:$0xf] %vm6127_vm2, %v6839_v4  ;;  %v5800_v18 = vld [vmem:[#allocation2 + $0x80] sm:$0xff] }
 0x26f   : > { %v5857_v17 = vadd.f32 %v8730_v32, %v5802_v12  ;;  %5145 = vst.msk [vmem:[#allocation2 + $0xd8] sm:$0xff] %vm791_vm1, %v5097_v7  ;;  %v5661_v20 = vld [vmem:[#allocation2 + $0xa8] sm:$0xff]  ;;  %v5855_v24 = vadd.f32 %v8730_v32, %v5800_v18  ;;  %v5803_v25 = vld [vmem:[#allocation2 + $0x98] sm:$0xff]  ;;  %5756 = vst.msk [vmem:[#allocation2 + $0xa0] sm:$0xff] %vm791_vm1, %v5708_v13  ;;  %v7479_v33 = vpop.f32.mrb[196].mxu1 }
 0x270   : > { %6141 = vst.msk [vmem:[%s8746_s8 + $0x34] sm:$0xf] %vm6127_vm2, %v6837_v11  ;;  %v5709_v26 = vadd.f32 %v5661_v20, %v5532_v46  ;;  %v5858_v28 = vadd.f32 %v8730_v32, %v5803_v25  ;;  %v5801_v29 = vld [vmem:[#allocation2 + $0x88] sm:$0xff]  ;;  %v5100_v37 = vadd.f32 %v7479_v33, %v5052_v34  ;;  %v4943_v38 = vpop.f32.mrb[197].mxu1  ;;  %v5054_v13 = vld [vmem:[#allocation2 + $0x100] sm:$0xff] }
 0x271   : > { %5143 = vst.msk [vmem:[#allocation2 + $0xc8] sm:$0xff] %vm791_vm1, %v5095_v15  ;;  %v5905_v27 = vmax.f32 %v5857_v17, 0.0  ;;  %5759 = vst.msk [vmem:[#allocation2 + $0xb8] sm:$0xff] %vm791_vm1, %v5711_v19  ;;  %v5903_v30 = vmax.f32 %v5855_v24, 0.0  ;;  %v5856_v31 = vadd.f32 %v8730_v32, %v5801_v29  ;;  %v5666_v42 = vld [vmem:[#allocation2 + $0xd0] sm:$0xff]  ;;  %v5098_v43 = vadd.f32 %v5050_v39, %v4943_v38  ;;  %v7480_v21 = vpop.f32.mrb[198].mxu1 }
 0x272   : > { %5757 = vst.msk [vmem:[#allocation2 + $0xa8] sm:$0xff] %vm791_vm1, %v5709_v26  ;;  %v5906_v36 = vmax.f32 %v5858_v28, 0.0  ;;  %v7529_v45 = vpop.f32.mrb[196].mxu0  ;;  %v5714_v47 = vadd.f32 %v7525_v3, %v5666_v42  ;;  %5148 = vst.msk [vmem:[#allocation2 + $0xf0] sm:$0xff] %vm791_vm1, %v5100_v37  ;;  %v5101_v48 = vadd.f32 %v7480_v21, %v5053_v44  ;;  %v4946_v49 = vpop.f32.mrb[199].mxu1  ;;  %v5057_v19 = vld [vmem:[#allocation2 + $0x118] sm:$0xff] }
 0x273   : > { %v6842_v35 = vpack.c.bf16 %v5905_v27, %v5905_v27  ;;  %v6840_v40 = vpack.c.bf16 %v5903_v30, %v5903_v30  ;;  %v5904_v41 = vmax.f32 %v5856_v31, 0.0  ;;  %v5664_v22 = vld [vmem:[#allocation2 + $0xc0] sm:$0xff]  ;;  %v5561_v51 = vpop.f32.mrb[197].mxu0  ;;  %v5806_v53 = vld [vmem:[#allocation2 + $0xb0] sm:$0xff]  ;;  %5146 = vst.msk [vmem:[#allocation2 + $0xe0] sm:$0xff] %vm791_vm1, %v5098_v43  ;;  %v5099_v56 = vadd.f32 %v5051_v50, %v4946_v49  ;;  %v5055_v28 = vld [vmem:[#allocation2 + $0x108] sm:$0xff] }
 0x274   : > { %v6843_v46 = vpack.c.bf16 %v5906_v36, %v5906_v36  ;;  %v5712_v54 = vadd.f32 %v5664_v22, %v5545_v10  ;;  %v7530_v57 = vpop.f32.mrb[198].mxu0  ;;  %v5861_v58 = vadd.f32 %v8730_v32, %v5806_v53  ;;  %5762 = vst.msk [vmem:[#allocation2 + $0xd0] sm:$0xff] %vm791_vm1, %v5714_v47  ;;  %5149 = vst.msk [vmem:[#allocation2 + $0xf8] sm:$0xff] %vm791_vm1, %v5101_v48  ;;  %v5060_v49 = vld [vmem:[#allocation2 + $0x130] sm:$0xff] }
 0x275   : > { %6146 = vst.msk [vmem:[%s8746_s8 + $0x48] sm:$0xf] %vm6127_vm2, %v6842_v35  ;;  %6144 = vst.msk [vmem:[%s8746_s8 + $0x40] sm:$0xf] %vm6127_vm2, %v6840_v40  ;;  %v6841_v52 = vpack.c.bf16 %v5904_v41, %v5904_v41  ;;  %v5564_v62 = vpop.f32.mrb[199].mxu0 }
 0x276   : > { %v5667_v55 = vld [vmem:[#allocation2 + $0xd8] sm:$0xff]  ;;  %6147 = vst.msk [vmem:[%s8746_s8 + $0x4c] sm:$0xf] %vm6127_vm2, %v6843_v46  ;;  %v5804_v59 = vld [vmem:[#allocation2 + $0xa0] sm:$0xff]  ;;  %v5909_v2 = vmax.f32 %v5861_v58, 0.0 }
 0x277   : > { %v5715_v60 = vadd.f32 %v7526_v16, %v5667_v55  ;;  %6145 = vst.msk [vmem:[%s8746_s8 + $0x44] sm:$0xf] %vm6127_vm2, %v6841_v52  ;;  %v5859_v63 = vadd.f32 %v8730_v32, %v5804_v59  ;;  %v7483_v7 = vpop.f32.mrb[200].mxu1 }
 0x278   : > { %v5665_v61 = vld [vmem:[#allocation2 + $0xc8] sm:$0xff]  ;;  %v5807_v0 = vld [vmem:[#allocation2 + $0xb8] sm:$0xff]  ;;  %5760 = vst.msk [vmem:[#allocation2 + $0xc0] sm:$0xff] %vm791_vm1, %v5712_v54  ;;  %5147 = vst.msk [vmem:[#allocation2 + $0xe8] sm:$0xff] %vm791_vm1, %v5099_v56  ;;  %v6846_v9 = vpack.c.bf16 %v5909_v2, %v5909_v2  ;;  %v5104_v11 = vadd.f32 %v7483_v7, %v5056_v8  ;;  %v4959_v12 = vpop.f32.mrb[201].mxu1 }
 0x279   : > { %v5713_v1 = vadd.f32 %v5665_v61, %v5548_v23  ;;  %v5862_v3 = vadd.f32 %v8730_v32, %v5807_v0  ;;  %v5805_v4 = vld [vmem:[#allocation2 + $0xa8] sm:$0xff]  ;;  %5763 = vst.msk [vmem:[#allocation2 + $0xd8] sm:$0xff] %vm791_vm1, %v5715_v60  ;;  %v5907_v5 = vmax.f32 %v5859_v63, 0.0  ;;  %v5670_v16 = vld [vmem:[#allocation2 + $0xf0] sm:$0xff]  ;;  %v5102_v17 = vadd.f32 %v5054_v13, %v4959_v12  ;;  %v7484_v18 = vpop.f32.mrb[202].mxu1  ;;  %v7533_v20 = vpop.f32.mrb[200].mxu0 }
 0x27a   : > { %v5860_v6 = vadd.f32 %v8730_v32, %v5805_v4  ;;  %6150 = vst.msk [vmem:[%s8746_s8 + $0x58] sm:$0xf] %vm6127_vm2, %v6846_v9  ;;  %v5718_v24 = vadd.f32 %v7529_v45, %v5670_v16  ;;  %v5668_v25 = vld [vmem:[#allocation2 + $0xe0] sm:$0xff]  ;;  %v5105_v26 = vadd.f32 %v7484_v18, %v5057_v19  ;;  %v4962_v27 = vpop.f32.mrb[203].mxu1  ;;  %v5577_v29 = vpop.f32.mrb[201].mxu0  ;;  %v5061_v60 = vld [vmem:[#allocation2 + $0x138] sm:$0xff] }
 0x27b   : > { %5761 = vst.msk [vmem:[#allocation2 + $0xc8] sm:$0xff] %vm791_vm1, %v5713_v1  ;;  %v5910_v10 = vmax.f32 %v5862_v3, 0.0  ;;  %v6844_v14 = vpack.c.bf16 %v5907_v5, %v5907_v5  ;;  %5152 = vst.msk [vmem:[#allocation2 + $0x110] sm:$0xff] %vm791_vm1, %v5104_v11  ;;  %v5810_v31 = vld [vmem:[#allocation2 + $0xd0] sm:$0xff]  ;;  %v5716_v33 = vadd.f32 %v5668_v25, %v5561_v51  ;;  %v5671_v34 = vld [vmem:[#allocation2 + $0xf8] sm:$0xff]  ;;  %v5103_v35 = vadd.f32 %v5055_v28, %v4962_v27  ;;  %v7534_v36 = vpop.f32.mrb[202].mxu0 }
 0x27c   : > { %v5908_v15 = vmax.f32 %v5860_v6, 0.0  ;;  %5150 = vst.msk [vmem:[#allocation2 + $0x100] sm:$0xff] %vm791_vm1, %v5102_v17  ;;  %v5865_v37 = vadd.f32 %v8730_v32, %v5810_v31  ;;  %5766 = vst.msk [vmem:[#allocation2 + $0xf0] sm:$0xff] %vm791_vm1, %v5718_v24  ;;  %v5719_v39 = vadd.f32 %v7530_v57, %v5671_v34  ;;  %v5580_v41 = vpop.f32.mrb[203].mxu0  ;;  %v5058_v54 = vld [vmem:[#allocation2 + $0x120] sm:$0xff]  ;;  %v5059_v3 = vld [vmem:[#allocation2 + $0x128] sm:$0xff] }
 0x27d   : > { %v6847_v23 = vpack.c.bf16 %v5910_v10, %v5910_v10  ;;  %6148 = vst.msk [vmem:[%s8746_s8 + $0x50] sm:$0xf] %vm6127_vm2, %v6844_v14  ;;  %v5064_v27 = vld [vmem:[#allocation2 + $0x150] sm:$0xff] }
 0x27e   : > { %v6845_v30 = vpack.c.bf16 %v5908_v15, %v5908_v15  ;;  %5153 = vst.msk [vmem:[#allocation2 + $0x118] sm:$0xff] %vm791_vm1, %v5105_v26  ;;  %5764 = vst.msk [vmem:[#allocation2 + $0xe0] sm:$0xff] %vm791_vm1, %v5716_v33  ;;  %v5913_v44 = vmax.f32 %v5865_v37, 0.0  ;;  %v5062_v33 = vld [vmem:[#allocation2 + $0x140] sm:$0xff] }
 0x27f   : > { %6151 = vst.msk [vmem:[%s8746_s8 + $0x5c] sm:$0xf] %vm6127_vm2, %v6847_v23  ;;  %v5808_v38 = vld [vmem:[#allocation2 + $0xc0] sm:$0xff]  ;;  %v5669_v40 = vld [vmem:[#allocation2 + $0xe8] sm:$0xff]  ;;  %v7487_v48 = vpop.f32.mrb[204].mxu1 }
 0x280   : > { %6149 = vst.msk [vmem:[%s8746_s8 + $0x54] sm:$0xf] %vm6127_vm2, %v6845_v30  ;;  %v5863_v42 = vadd.f32 %v8730_v32, %v5808_v38  ;;  %v5811_v43 = vld [vmem:[#allocation2 + $0xd8] sm:$0xff]  ;;  %v5717_v21 = vadd.f32 %v5669_v40, %v5564_v62  ;;  %v6850_v50 = vpack.c.bf16 %v5913_v44, %v5913_v44  ;;  %v5108_v52 = vadd.f32 %v7487_v48, %v5060_v49  ;;  %v4975_v53 = vpop.f32.mrb[205].mxu1 }
 0x281   : > { %5151 = vst.msk [vmem:[#allocation2 + $0x108] sm:$0xff] %vm791_vm1, %v5103_v35  ;;  %v5866_v45 = vadd.f32 %v8730_v32, %v5811_v43  ;;  %5767 = vst.msk [vmem:[#allocation2 + $0xf8] sm:$0xff] %vm791_vm1, %v5719_v39  ;;  %v5106_v58 = vadd.f32 %v5058_v54, %v4975_v53  ;;  %v7488_v59 = vpop.f32.mrb[206].mxu1  ;;  %v7537_v61 = vpop.f32.mrb[204].mxu0  ;;  %v5065_v39 = vld [vmem:[#allocation2 + $0x158] sm:$0xff] }
 0x282   : > { %v5809_v46 = vld [vmem:[#allocation2 + $0xc8] sm:$0xff]  ;;  %v5911_v47 = vmax.f32 %v5863_v42, 0.0  ;;  %5765 = vst.msk [vmem:[#allocation2 + $0xe8] sm:$0xff] %vm791_vm1, %v5717_v21  ;;  %v5674_v57 = vld [vmem:[#allocation2 + $0x110] sm:$0xff]  ;;  %5156 = vst.msk [vmem:[#allocation2 + $0x130] sm:$0xff] %vm791_vm1, %v5108_v52  ;;  %v5109_v1 = vadd.f32 %v7488_v59, %v5061_v60  ;;  %v4978_v2 = vpop.f32.mrb[207].mxu1 }
 0x283   : > { %v5864_v22 = vadd.f32 %v8730_v32, %v5809_v46  ;;  %v5914_v51 = vmax.f32 %v5866_v45, 0.0  ;;  %6154 = vst.msk [vmem:[%s8746_s8 + $0x68] sm:$0xf] %vm6127_vm2, %v6850_v50  ;;  %v5722_v63 = vadd.f32 %v7533_v20, %v5674_v57  ;;  %v5672_v0 = vld [vmem:[#allocation2 + $0x100] sm:$0xff]  ;;  %v5593_v4 = vpop.f32.mrb[205].mxu0  ;;  %v5814_v6 = vld [vmem:[#allocation2 + $0xf0] sm:$0xff]  ;;  %v5107_v9 = vadd.f32 %v5059_v3, %v4978_v2 }
 0x284   : > { %v6848_v55 = vpack.c.bf16 %v5911_v47, %v5911_v47  ;;  %v5720_v7 = vadd.f32 %v5672_v0, %v5577_v29  ;;  %5154 = vst.msk [vmem:[#allocation2 + $0x120] sm:$0xff] %vm791_vm1, %v5106_v58  ;;  %v7538_v10 = vpop.f32.mrb[206].mxu0  ;;  %v5869_v11 = vadd.f32 %v8730_v32, %v5814_v6  ;;  %5157 = vst.msk [vmem:[#allocation2 + $0x138] sm:$0xff] %vm791_vm1, %v5109_v1  ;;  %v5063_v45 = vld [vmem:[#allocation2 + $0x148] sm:$0xff]  ;;  %v5068_v2 = vld [vmem:[#allocation2 + $0x170] sm:$0xff] }
 0x285   : > { %v5912_v56 = vmax.f32 %v5864_v22, 0.0  ;;  %v6851_v62 = vpack.c.bf16 %v5914_v51, %v5914_v51  ;;  %v5675_v8 = vld [vmem:[#allocation2 + $0x118] sm:$0xff]  ;;  %v5812_v12 = vld [vmem:[#allocation2 + $0xe0] sm:$0xff]  ;;  %5770 = vst.msk [vmem:[#allocation2 + $0x110] sm:$0xff] %vm791_vm1, %v5722_v63  ;;  %v5596_v15 = vpop.f32.mrb[207].mxu0  ;;  %5155 = vst.msk [vmem:[#allocation2 + $0x128] sm:$0xff] %vm791_vm1, %v5107_v9 }
 0x286   : > { %6152 = vst.msk [vmem:[%s8746_s8 + $0x60] sm:$0xf] %vm6127_vm2, %v6848_v55  ;;  %v5723_v13 = vadd.f32 %v7534_v36, %v5675_v8  ;;  %v5867_v16 = vadd.f32 %v8730_v32, %v5812_v12  ;;  %v5917_v19 = vmax.f32 %v5869_v11, 0.0 }
 0x287   : > { %v6849_v5 = vpack.c.bf16 %v5912_v56, %v5912_v56  ;;  %6155 = vst.msk [vmem:[%s8746_s8 + $0x6c] sm:$0xf] %vm6127_vm2, %v6851_v62  ;;  %v7491_v26 = vpop.f32.mrb[208].mxu1 }
 0x288   : > { %v5673_v14 = vld [vmem:[#allocation2 + $0x108] sm:$0xff]  ;;  %v5815_v17 = vld [vmem:[#allocation2 + $0xf8] sm:$0xff]  ;;  %5768 = vst.msk [vmem:[#allocation2 + $0x100] sm:$0xff] %vm791_vm1, %v5720_v7  ;;  %5771 = vst.msk [vmem:[#allocation2 + $0x118] sm:$0xff] %vm791_vm1, %v5723_v13  ;;  %v5915_v24 = vmax.f32 %v5867_v16, 0.0  ;;  %v6854_v28 = vpack.c.bf16 %v5917_v19, %v5917_v19  ;;  %v5112_v30 = vadd.f32 %v7491_v26, %v5064_v27  ;;  %v4991_v31 = vpop.f32.mrb[209].mxu1 }
 0x289   : > { %6153 = vst.msk [vmem:[%s8746_s8 + $0x64] sm:$0xf] %vm6127_vm2, %v6849_v5  ;;  %v5721_v18 = vadd.f32 %v5673_v14, %v5580_v41  ;;  %v5870_v20 = vadd.f32 %v8730_v32, %v5815_v17  ;;  %v5813_v23 = vld [vmem:[#allocation2 + $0xe8] sm:$0xff]  ;;  %v5678_v36 = vld [vmem:[#allocation2 + $0x130] sm:$0xff]  ;;  %v5110_v37 = vadd.f32 %v5062_v33, %v4991_v31  ;;  %v7492_v38 = vpop.f32.mrb[210].mxu1  ;;  %v7541_v40 = vpop.f32.mrb[208].mxu0 }
 0x28a   : > { %v5868_v25 = vadd.f32 %v8730_v32, %v5813_v23  ;;  %v6852_v34 = vpack.c.bf16 %v5915_v24, %v5915_v24  ;;  %6158 = vst.msk [vmem:[%s8746_s8 + $0x78] sm:$0xf] %vm6127_vm2, %v6854_v28  ;;  %v5726_v42 = vadd.f32 %v7537_v61, %v5678_v36  ;;  %v5113_v21 = vadd.f32 %v7492_v38, %v5065_v39  ;;  %v4994_v44 = vpop.f32.mrb[211].mxu1  ;;  %v5609_v46 = vpop.f32.mrb[209].mxu0  ;;  %v5066_v7 = vld [vmem:[#allocation2 + $0x160] sm:$0xff]  ;;  %v5069_v13 = vld [vmem:[#allocation2 + $0x178] sm:$0xff] }
 0x28b   : > { %5769 = vst.msk [vmem:[#allocation2 + $0x108] sm:$0xff] %vm791_vm1, %v5721_v18  ;;  %v5918_v29 = vmax.f32 %v5870_v20, 0.0  ;;  %5160 = vst.msk [vmem:[#allocation2 + $0x150] sm:$0xff] %vm791_vm1, %v5112_v30  ;;  %v5676_v43 = vld [vmem:[#allocation2 + $0x120] sm:$0xff]  ;;  %v5679_v49 = vld [vmem:[#allocation2 + $0x138] sm:$0xff]  ;;  %v5111_v50 = vadd.f32 %v5063_v45, %v4994_v44  ;;  %v7542_v51 = vpop.f32.mrb[210].mxu0 }
 0x28c   : > { %v5916_v35 = vmax.f32 %v5868_v25, 0.0  ;;  %6156 = vst.msk [vmem:[%s8746_s8 + $0x70] sm:$0xf] %vm6127_vm2, %v6852_v34  ;;  %v5818_v22 = vld [vmem:[#allocation2 + $0x110] sm:$0xff]  ;;  %v5724_v48 = vadd.f32 %v5676_v43, %v5593_v4  ;;  %v5727_v54 = vadd.f32 %v7538_v10, %v5679_v49  ;;  %v5677_v55 = vld [vmem:[#allocation2 + $0x128] sm:$0xff]  ;;  %v5612_v56 = vpop.f32.mrb[211].mxu0 }
 0x28d   : > { %v6855_v41 = vpack.c.bf16 %v5918_v29, %v5918_v29  ;;  %5158 = vst.msk [vmem:[#allocation2 + $0x140] sm:$0xff] %vm791_vm1, %v5110_v37  ;;  %v5873_v52 = vadd.f32 %v8730_v32, %v5818_v22  ;;  %5774 = vst.msk [vmem:[#allocation2 + $0x130] sm:$0xff] %vm791_vm1, %v5726_v42  ;;  %v5725_v59 = vadd.f32 %v5677_v55, %v5596_v15  ;;  %v5067_v20 = vld [vmem:[#allocation2 + $0x168] sm:$0xff] }
 0x28e   : > { %v6853_v47 = vpack.c.bf16 %v5916_v35, %v5916_v35  ;;  %5161 = vst.msk [vmem:[#allocation2 + $0x158] sm:$0xff] %vm791_vm1, %v5113_v21  ;;  %5772 = vst.msk [vmem:[#allocation2 + $0x120] sm:$0xff] %vm791_vm1, %v5724_v48 }
 0x28f   : > { %6159 = vst.msk [vmem:[%s8746_s8 + $0x7c] sm:$0xf] %vm6127_vm2, %v6855_v41  ;;  %v5816_v53 = vld [vmem:[#allocation2 + $0x100] sm:$0xff]  ;;  %v5819_v58 = vld [vmem:[#allocation2 + $0x118] sm:$0xff]  ;;  %v5921_v60 = vmax.f32 %v5873_v52, 0.0  ;;  %v7495_v1 = vpop.f32.mrb[212].mxu1 }
 0x290   : > { %6157 = vst.msk [vmem:[%s8746_s8 + $0x74] sm:$0xf] %vm6127_vm2, %v6853_v47  ;;  %v5871_v57 = vadd.f32 %v8730_v32, %v5816_v53  ;;  %v5874_v61 = vadd.f32 %v8730_v32, %v5819_v58  ;;  %v5116_v5 = vadd.f32 %v7495_v1, %v5068_v2  ;;  %v5007_v6 = vpop.f32.mrb[213].mxu1  ;;  %v7800_v53 = vld [vmem:[%s8974_s4] ss:$0 sm:$0xff] }
 0x291   : > { %5159 = vst.msk [vmem:[#allocation2 + $0x148] sm:$0xff] %vm791_vm1, %v5111_v50  ;;  %5775 = vst.msk [vmem:[#allocation2 + $0x138] sm:$0xff] %vm791_vm1, %v5727_v54  ;;  %v6858_v3 = vpack.c.bf16 %v5921_v60, %v5921_v60  ;;  %v5114_v11 = vadd.f32 %v5066_v7, %v5007_v6  ;;  %v7496_v12 = vpop.f32.mrb[214].mxu1  ;;  %v7545_v14 = vpop.f32.mrb[212].mxu0 }
 0x292   : > { %v5817_v62 = vld [vmem:[#allocation2 + $0x108] sm:$0xff]  ;;  %v5919_v63 = vmax.f32 %v5871_v57, 0.0  ;;  %5773 = vst.msk [vmem:[#allocation2 + $0x128] sm:$0xff] %vm791_vm1, %v5725_v59  ;;  %v5922_v4 = vmax.f32 %v5874_v61, 0.0  ;;  %v5682_v10 = vld [vmem:[#allocation2 + $0x150] sm:$0xff]  ;;  %5164 = vst.msk [vmem:[#allocation2 + $0x170] sm:$0xff] %vm791_vm1, %v5116_v5  ;;  %v5117_v18 = vadd.f32 %v7496_v12, %v5069_v13 }
 0x293   : > { %v5872_v0 = vadd.f32 %v8730_v32, %v5817_v62  ;;  %6162 = vst.msk [vmem:[%s8746_s8 + $0x88] sm:$0xf] %vm6127_vm2, %v6858_v3  ;;  %v5730_v16 = vadd.f32 %v7541_v40, %v5682_v10  ;;  %v5010_v19 = vpop.f32.mrb[215].mxu1  ;;  %v5625_v23 = vpop.f32.mrb[213].mxu0 }
 0x294   : > { %v6856_v8 = vpack.c.bf16 %v5919_v63, %v5919_v63  ;;  %v6859_v15 = vpack.c.bf16 %v5922_v4, %v5922_v4  ;;  %v5680_v17 = vld [vmem:[#allocation2 + $0x140] sm:$0xff]  ;;  %v5822_v25 = vld [vmem:[#allocation2 + $0x130] sm:$0xff]  ;;  %5162 = vst.msk [vmem:[#allocation2 + $0x160] sm:$0xff] %vm791_vm1, %v5114_v11  ;;  %v5115_v28 = vadd.f32 %v5067_v20, %v5010_v19  ;;  %v7546_v29 = vpop.f32.mrb[214].mxu0  ;;  %5165 = vst.msk [vmem:[#allocation2 + $0x178] sm:$0xff] %vm791_vm1, %v5117_v18 }
 0x295   : > { %v5920_v9 = vmax.f32 %v5872_v0, 0.0  ;;  %v5728_v26 = vadd.f32 %v5680_v17, %v5609_v46  ;;  %v5683_v27 = vld [vmem:[#allocation2 + $0x158] sm:$0xff]  ;;  %v5877_v30 = vadd.f32 %v8730_v32, %v5822_v25  ;;  %v5820_v31 = vld [vmem:[#allocation2 + $0x120] sm:$0xff]  ;;  %5778 = vst.msk [vmem:[#allocation2 + $0x150] sm:$0xff] %vm791_vm1, %v5730_v16  ;;  %v5628_v35 = vpop.f32.mrb[215].mxu0 }
 0x296   : > { %6160 = vst.msk [vmem:[%s8746_s8 + $0x80] sm:$0xf] %vm6127_vm2, %v6856_v8  ;;  %6163 = vst.msk [vmem:[%s8746_s8 + $0x8c] sm:$0xf] %vm6127_vm2, %v6859_v15  ;;  %v5731_v33 = vadd.f32 %v7542_v51, %v5683_v27  ;;  %v5875_v36 = vadd.f32 %v8730_v32, %v5820_v31 }
 0x297   : > { %v6857_v24 = vpack.c.bf16 %v5920_v9, %v5920_v9  ;;  %5776 = vst.msk [vmem:[#allocation2 + $0x140] sm:$0xff] %vm791_vm1, %v5728_v26  ;;  %5163 = vst.msk [vmem:[#allocation2 + $0x168] sm:$0xff] %vm791_vm1, %v5115_v28  ;;  %v5925_v39 = vmax.f32 %v5877_v30, 0.0 }
 0x298   : > { %v5681_v34 = vld [vmem:[#allocation2 + $0x148] sm:$0xff]  ;;  %v5823_v37 = vld [vmem:[#allocation2 + $0x138] sm:$0xff]  ;;  %5779 = vst.msk [vmem:[#allocation2 + $0x158] sm:$0xff] %vm791_vm1, %v5731_v33  ;;  %v5923_v42 = vmax.f32 %v5875_v36, 0.0 }
 0x299   : > { %6161 = vst.msk [vmem:[%s8746_s8 + $0x84] sm:$0xf] %vm6127_vm2, %v6857_v24  ;;  %v5729_v38 = vadd.f32 %v5681_v34, %v5612_v56  ;;  %v5878_v40 = vadd.f32 %v8730_v32, %v5823_v37  ;;  %v5821_v41 = vld [vmem:[#allocation2 + $0x128] sm:$0xff]  ;;  %v6862_v21 = vpack.c.bf16 %v5925_v39, %v5925_v39  ;;  %v5686_v47 = vld [vmem:[#allocation2 + $0x170] sm:$0xff] }
 0x29a   : > { %v5876_v43 = vadd.f32 %v8730_v32, %v5821_v41  ;;  %v6860_v45 = vpack.c.bf16 %v5923_v42, %v5923_v42  ;;  %v5734_v48 = vadd.f32 %v7545_v14, %v5686_v47 }
 0x29b   : > { %5777 = vst.msk [vmem:[#allocation2 + $0x148] sm:$0xff] %vm791_vm1, %v5729_v38  ;;  %v5926_v44 = vmax.f32 %v5878_v40, 0.0  ;;  %v5684_v49 = vld [vmem:[#allocation2 + $0x160] sm:$0xff]  ;;  %v5687_v32 = vld [vmem:[#allocation2 + $0x178] sm:$0xff] }
 0x29c   : > { %v5924_v46 = vmax.f32 %v5876_v43, 0.0  ;;  %6166 = vst.msk [vmem:[%s8746_s8 + $0x98] sm:$0xf] %vm6127_vm2, %v6862_v21  ;;  %6164 = vst.msk [vmem:[%s8746_s8 + $0x90] sm:$0xf] %vm6127_vm2, %v6860_v45  ;;  %v5826_v51 = vld [vmem:[#allocation2 + $0x150] sm:$0xff]  ;;  %v5732_v52 = vadd.f32 %v5684_v49, %v5625_v23  ;;  %v5735_v56 = vadd.f32 %v7546_v29, %v5687_v32 }
 0x29d   : > { %v6863_v22 = vpack.c.bf16 %v5926_v44, %v5926_v44  ;;  %v5881_v54 = vadd.f32 %v7800_v53, %v5826_v51  ;;  %5782 = vst.msk [vmem:[#allocation2 + $0x170] sm:$0xff] %vm791_vm1, %v5734_v48 }
 0x29e   : > { %v6861_v50 = vpack.c.bf16 %v5924_v46, %v5924_v46  ;;  %v5824_v55 = vld [vmem:[#allocation2 + $0x140] sm:$0xff]  ;;  %v5685_v57 = vld [vmem:[#allocation2 + $0x168] sm:$0xff]  ;;  %5780 = vst.msk [vmem:[#allocation2 + $0x160] sm:$0xff] %vm791_vm1, %v5732_v52  ;;  %5783 = vst.msk [vmem:[#allocation2 + $0x178] sm:$0xff] %vm791_vm1, %v5735_v56 }
 0x29f   : > { %6167 = vst.msk [vmem:[%s8746_s8 + $0x9c] sm:$0xf] %vm6127_vm2, %v6863_v22  ;;  %v5879_v58 = vadd.f32 %v7800_v53, %v5824_v55  ;;  %v5827_v59 = vld [vmem:[#allocation2 + $0x158] sm:$0xff]  ;;  %v5733_v60 = vadd.f32 %v5685_v57, %v5628_v35  ;;  %v5929_v61 = vmax.f32 %v5881_v54, 0.0 }
 0x2a0   : > { %6165 = vst.msk [vmem:[%s8746_s8 + $0x94] sm:$0xf] %vm6127_vm2, %v6861_v50  ;;  %v5882_v62 = vadd.f32 %v7800_v53, %v5827_v59 }
 0x2a1   : > { %v5927_v0 = vmax.f32 %v5879_v58, 0.0  ;;  %5781 = vst.msk [vmem:[#allocation2 + $0x168] sm:$0xff] %vm791_vm1, %v5733_v60  ;;  %v6866_v2 = vpack.c.bf16 %v5929_v61, %v5929_v61 }
 0x2a2   : > { %v5825_v63 = vld [vmem:[#allocation2 + $0x148] sm:$0xff]  ;;  %v5930_v3 = vmax.f32 %v5882_v62, 0.0 }
 0x2a3   : > { %v5880_v1 = vadd.f32 %v7800_v53, %v5825_v63  ;;  %v6864_v4 = vpack.c.bf16 %v5927_v0, %v5927_v0  ;;  %6170 = vst.msk [vmem:[%s8746_s8 + $0xa8] sm:$0xf] %vm6127_vm2, %v6866_v2 }
 0x2a4   : > { %v6867_v6 = vpack.c.bf16 %v5930_v3, %v5930_v3  ;;  %v5830_v8 = vld [vmem:[#allocation2 + $0x170] sm:$0xff] }
 0x2a5   : > { %v5928_v5 = vmax.f32 %v5880_v1, 0.0  ;;  %6168 = vst.msk [vmem:[%s8746_s8 + $0xa0] sm:$0xf] %vm6127_vm2, %v6864_v4  ;;  %v5885_v9 = vadd.f32 %v7800_v53, %v5830_v8  ;;  %v5828_v10 = vld [vmem:[#allocation2 + $0x160] sm:$0xff]  ;;  %v5831_v12 = vld [vmem:[#allocation2 + $0x178] sm:$0xff] }
 0x2a6   : > { %6171 = vst.msk [vmem:[%s8746_s8 + $0xac] sm:$0xf] %vm6127_vm2, %v6867_v6  ;;  %v5883_v11 = vadd.f32 %v7800_v53, %v5828_v10  ;;  %v5886_v14 = vadd.f32 %v7800_v53, %v5831_v12 }
 0x2a7   : > { %v6865_v7 = vpack.c.bf16 %v5928_v5, %v5928_v5  ;;  %v5933_v13 = vmax.f32 %v5885_v9, 0.0 }
 0x2a8   : > { %v5829_v15 = vld [vmem:[#allocation2 + $0x168] sm:$0xff]  ;;  %v5931_v16 = vmax.f32 %v5883_v11, 0.0  ;;  %v5934_v19 = vmax.f32 %v5886_v14, 0.0 }
 0x2a9   : > { %6169 = vst.msk [vmem:[%s8746_s8 + $0xa4] sm:$0xf] %vm6127_vm2, %v6865_v7  ;;  %v5884_v17 = vadd.f32 %v7800_v53, %v5829_v15  ;;  %v6870_v18 = vpack.c.bf16 %v5933_v13, %v5933_v13 }
 0x2aa   : > { %v6868_v20 = vpack.c.bf16 %v5931_v16, %v5931_v16  ;;  %v6871_v24 = vpack.c.bf16 %v5934_v19, %v5934_v19 }
 0x2ab   : > { %v5932_v23 = vmax.f32 %v5884_v17, 0.0  ;;  %6174 = vst.msk [vmem:[%s8746_s8 + $0xb8] sm:$0xf] %vm6127_vm2, %v6870_v18 }
 0x2ac   : > { %6172 = vst.msk [vmem:[%s8746_s8 + $0xb0] sm:$0xf] %vm6127_vm2, %v6868_v20  ;;  %6175 = vst.msk [vmem:[%s8746_s8 + $0xbc] sm:$0xf] %vm6127_vm2, %v6871_v24 }
 0x2ad   : > { %v6869_v25 = vpack.c.bf16 %v5932_v23, %v5932_v23 }
 0x2af   : > { %6173 = vst.msk [vmem:[%s8746_s8 + $0xb4] sm:$0xf] %vm6127_vm2, %v6869_v25 }
 0x2b0 PF: > { %s15_s20 = sadd.s32 1, %s7823_s20   ;;  %s8976_s18 = smov %s7819_s19 }
 0x2b1   : > { %p12_p5 = scmp.ge.s32.totalorder %s15_s20, 4   ;;  %s8977_s19 = smov %s8979_s21 }
 0x2b3   :  { %14 = sbr.rel (!%p12_p5) target bundleno = 2 (0x2), region = 90 }

</bundles_post_ra>
